<compile_context>
chip_gen: v6e
topology: v6e:2x2x1
jax: 0.10.0
libtpu: 0.0.40
codegen_flags: <defaults>
</compile_context>

<pallas_src>
import numpy as np
import jax
import jax.numpy as jnp
from jax.experimental import pallas as pl
from jax.experimental.pallas import tpu as pltpu

HEADS = 4
PROJ_W = 128  # lane-padded width of the per-layer attention-projection matmul


def _vmem():
    return pl.BlockSpec(memory_space=pltpu.MemorySpace.VMEM)


def _smem():
    return pl.BlockSpec(memory_space=pltpu.MemorySpace.SMEM)


def _vmem_limit_bytes():
    # Size the scoped VMEM limit per generation (defaults are only 16/32 MiB).
    try:
        info = pltpu.get_tpu_info()
        cap = int(getattr(info, "vmem_capacity_bytes", 0))
    except Exception:
        cap = 0
    if cap <= 0:
        return 48 * 1024 * 1024          # safe everywhere, > default scoped limit
    return int(min(cap - 8 * 1024 * 1024, 100 * 1024 * 1024))  # ~56 MiB v7x, 100 MiB v5e/v6e


# ---------------------------------------------------------------------------
# Fused kernel: conv1+bn1+relu -> conv2+bn2+relu -> conv3+bn3+relu -> pool -> fc1
# -> relu -> fc2.  Single program, everything resident in VMEM.
# ---------------------------------------------------------------------------
def fused_gat_kernel(x_ref, adj_ref, ea_ref, pool_ref,
                     w1_ref, ap1_ref, sc1_ref, sh1_ref,
                     w2_ref, ap2_ref, sc2_ref, sh2_ref,
                     w3_ref, ap3_ref, sc3_ref, sh3_ref,
                     fw1_ref, fb1_ref, fw2_ref, fb2_ref,
                     ecoef_ref,
                     o_ref,
                     h1_ref, h2_ref):
    ea = ea_ref[...]                                        # [N, N] edge attrs (self-loop filled)
    # Additive edge mask, built ONCE and reused by all 3 layers x 4 heads.
    maskadd = jnp.where(adj_ref[...] > 0.0,
                        jnp.float32(0.0), jnp.float32(-1e30))   # [N, N]

    def gat(x_bf, w_ref, ap_ref, sc_ref, sh_ref, ec_base, C, concat, out_slab_ref):
        # Feature transform on the MXU (bf16 operands, f32 accumulate).
        xw = jnp.dot(x_bf, w_ref[...], preferred_element_type=jnp.float32)      # [N, H*C]
        xw_bf = xw.astype(jnp.bfloat16)
        # All src/dst attention projections in one natural [M,K]x[K,128] MXU matmul:
        # column h = att_src[h] (block-structured), column H+h = att_dst[h].
        proj = jnp.dot(xw_bf, ap_ref[...], preferred_element_type=jnp.float32)  # [N, 128]
        # a_src must be lane-oriented ([1,N] rows): one small aligned transpose/layer.
        projT = jnp.transpose(proj)                                              # [128, N]
        ecs = [ecoef_ref[ec_base + h] for h in range(HEADS)]                     # hoisted SMEM reads
        acc = None
        for h in range(HEADS):
            xh_bf = xw_bf[:, h * C:(h + 1) * C]                                  # lane-aligned slab
            a_dst = proj[:, HEADS + h:HEADS + h + 1]                             # [N, 1]
            a_src = projT[h:h + 1, :]                                            # [1, N]
            raw = a_dst + a_src + ea * ecs[h]                                    # [N, N]
            logits = jnp.maximum(raw, 0.2 * raw) + maskadd                       # LeakyReLU + mask
            m = jnp.max(logits, axis=-1, keepdims=True)
            p = jnp.exp(logits - m)                                              # exact 0 off-edge
            inv = pl.reciprocal(jnp.sum(p, axis=-1, keepdims=True), approx=True)  # [N, 1]
            # Aggregate with UNnormalized weights; normalize the [N,C] result after.
            agg = jnp.dot(p.astype(jnp.bfloat16), xh_bf,
                          preferred_element_type=jnp.float32)                    # [N, C]
            if concat:
                # fused (GATConv bias + eval BatchNorm) affine + ReLU, direct slab write
                y = (agg * inv) * sc_ref[:, h * C:(h + 1) * C] + sh_ref[:, h * C:(h + 1) * C]
                out_slab_ref[:, h * C:(h + 1) * C] = jnp.maximum(y, 0.0).astype(out_slab_ref.dtype)
            else:
                contrib = agg * inv
                acc = contrib if acc is None else acc + contrib
        if not concat:
            y = (acc * jnp.float32(1.0 / HEADS)) * sc_ref[...] + sh_ref[...]
            return jnp.maximum(y, 0.0)
        return None

    # conv1 + bn1 + relu : 32 -> 4 x 128 (concat) -> bf16 slab scratch
    gat(x_ref[...].astype(jnp.bfloat16),
        w1_ref, ap1_ref, sc1_ref, sh1_ref, 0, 128, True, h1_ref)
    # conv2 + bn2 + relu : 512 -> 4 x 256 (concat) -> bf16 slab scratch
    gat(h1_ref[...],
        w2_ref, ap2_ref, sc2_ref, sh2_ref, 4, 256, True, h2_ref)
    # conv3 + bn3 + relu : 1024 -> 64 (mean over heads); per-head slab padded to 128 lanes
    h3 = gat(h2_ref[...],
             w3_ref, ap3_ref, sc3_ref, sh3_ref, 8, 128, False, None)

    # global_mean_pool as a matmul, then fc1 + ReLU + fc2 (all lane-padded to 128).
    pooled = jnp.dot(pool_ref[...].astype(jnp.bfloat16), h3.astype(jnp.bfloat16),
                     preferred_element_type=jnp.float32)                         # [G, 128]
    hid = jnp.dot(pooled.astype(jnp.bfloat16), fw1_ref[...],
                  preferred_element_type=jnp.float32) + fb1_ref[...]             # [G, 128]
    hid = jnp.maximum(hid, 0.0)
    # TODO(synk): Dropout is identity in eval mode; stochastic dropout not implemented.
    o_ref[...] = jnp.dot(hid.astype(jnp.bfloat16), fw2_ref[...],
                         preferred_element_type=jnp.float32) + fb2_ref[...]      # [G, 128]


# ---------------------------------------------------------------------------
# Host-side parameter packing (padding / bf16 cast / BN fusion / block layouts).
# ---------------------------------------------------------------------------
def pack_layer(params, heads, C, concat, C_pad=None):
    (w, att_src, att_dst, w_edge, att_edge, bias, bn_scale, bn_shift) = params
    if C_pad is None:
        C_pad = C
    in_dim = w.shape[0]
    if C_pad == C:
        w_p, src_p, dst_p = w, att_src, att_dst
    else:
        # zero-pad each head's slab to a 128-lane boundary
        w_p = jnp.zeros((in_dim, heads * C_pad), jnp.float32)
        for h in range(heads):
            w_p = w_p.at[:, h * C_pad:h * C_pad + C].set(w[:, h * C:(h + 1) * C])
        src_p = jnp.zeros((heads, C_pad), jnp.float32).at[:, :C].set(att_src)
        dst_p = jnp.zeros((heads, C_pad), jnp.float32).at[:, :C].set(att_dst)
    # Attention-projection matrix [H*C_pad, 128]: column h carries att_src[h] in slab h,
    # column H+h carries att_dst[h] in slab h; remaining columns are zero (lane padding).
    attproj = jnp.zeros((heads * C_pad, PROJ_W), jnp.float32)
    for h in range(heads):
        attproj = attproj.at[h * C_pad:(h + 1) * C_pad, h].set(src_p[h])
        attproj = attproj.at[h * C_pad:(h + 1) * C_pad, heads + h].set(dst_p[h])
    # fuse GATConv bias with eval-mode BatchNorm: (agg + b) * s + t  ==  agg*s + (b*s + t)
    scale = bn_scale
    shift = bias * bn_scale + bn_shift
    D = heads * C if concat else C
    D_pad = heads * C_pad if concat else C_pad
    if D_pad != D:
        if concat:
            sc_p = jnp.zeros((heads * C_pad,), jnp.float32)
            sh_p = jnp.zeros((heads * C_pad,), jnp.float32)
            for h in range(heads):
                sc_p = sc_p.at[h * C_pad:h * C_pad + C].set(scale[h * C:(h + 1) * C])
                sh_p = sh_p.at[h * C_pad:h * C_pad + C].set(shift[h * C:(h + 1) * C])
            scale, shift = sc_p, sh_p
        else:
            scale = jnp.concatenate([scale, jnp.zeros((D_pad - D,), jnp.float32)])
            shift = jnp.concatenate([shift, jnp.zeros((D_pad - D,), jnp.float32)])
    # edge-attention coefficient: lin_edge(e)=e*w_edge[h], alpha_e = e * <w_edge[h], att_edge[h]>
    ecoef = jnp.sum(w_edge * att_edge, axis=-1).astype(jnp.float32)              # [H]
    return (w_p.astype(jnp.bfloat16), attproj.astype(jnp.bfloat16),
            scale.reshape(1, -1), shift.reshape(1, -1), ecoef)


def pack_head(w1, b1, w2, b2, pad=128):
    fin, hid = w1.shape
    w1p = jnp.zeros((pad, pad), jnp.float32).at[:fin, :hid].set(w1)
    b1p = jnp.zeros((1, pad), jnp.float32).at[0, :hid].set(b1)
    w2p = jnp.zeros((pad, pad), jnp.float32).at[:hid, :1].set(w2)
    b2p = jnp.zeros((1, pad), jnp.float32).at[0, :1].set(b2)
    return w1p.astype(jnp.bfloat16), b1p, w2p.astype(jnp.bfloat16), b2p


def gat_classifier_forward(x, adj, ea, pool, params):
    p1, p2, p3, (w1, b1, w2, b2) = params
    N = x.shape[0]
    G = pool.shape[0]
    L1 = pack_layer(p1, HEADS, 128, True)
    L2 = pack_layer(p2, HEADS, 256, True)
    L3 = pack_layer(p3, HEADS, 64, False, C_pad=128)
    fw1, fb1, fw2, fb2 = pack_head(w1, b1, w2, b2)
    ecoef = jnp.concatenate([L1[4], L2[4], L3[4]])                               # [12] -> SMEM

    out = pl.pallas_call(
        fused_gat_kernel,
        out_shape=jax.ShapeDtypeStruct((G, 128), jnp.float32),                   # lane-dense output
        in_specs=[_vmem()] * 20 + [_smem()],
        out_specs=_vmem(),
        scratch_shapes=[pltpu.VMEM((N, HEADS * 128), jnp.bfloat16),              # conv1 activations
                        pltpu.VMEM((N, HEADS * 256), jnp.bfloat16)],             # conv2 activations
        compiler_params=pltpu.CompilerParams(vmem_limit_bytes=_vmem_limit_bytes()),
    )(x, adj, ea, pool,
      L1[0], L1[1], L1[2], L1[3],
      L2[0], L2[1], L2[2], L2[3],
      L3[0], L3[1], L3[2], L3[3],
      fw1, fb1, fw2, fb2, ecoef)
    return out[:, :1]


# ---------------------------------------------------------------------------
# Parameter init (deterministic, glorot-style) and dense graph construction.
# ---------------------------------------------------------------------------
def glorot(key, shape, fan_in, fan_out):
    lim = float(np.sqrt(6.0 / (fan_in + fan_out)))
    return jax.random.uniform(key, shape, jnp.float32, -lim, lim)


def init_gat_params(key, in_dim, out_ch, heads, concat):
    ks = jax.random.split(key, 8)
    D = heads * out_ch if concat else out_ch
    w = glorot(ks[0], (in_dim, heads * out_ch), in_dim, heads * out_ch)          # lin (no bias)
    att_src = glorot(ks[1], (heads, out_ch), out_ch, 1)
    att_dst = glorot(ks[2], (heads, out_ch), out_ch, 1)
    w_edge = glorot(ks[3], (heads, out_ch), 1, heads * out_ch)                   # lin_edge (edge_dim=1)
    att_edge = glorot(ks[4], (heads, out_ch), out_ch, 1)
    bias = jnp.zeros((D,), jnp.float32)                                          # GATConv bias init
    # BatchNorm1d eval: running_mean=0, running_var=1, eps=1e-5
    gamma = 1.0 + 0.1 * jax.random.uniform(ks[5], (D,), jnp.float32, -1.0, 1.0)
    beta = 0.05 * jax.random.uniform(ks[6], (D,), jnp.float32, -1.0, 1.0)
    eps = 1e-5
    bn_scale = gamma / jnp.sqrt(1.0 + eps)
    bn_shift = beta
    return (w, att_src, att_dst, w_edge, att_edge, bias, bn_scale, bn_shift)


def build_dense_graph(edge_index, edge_attr, num_nodes):
    src = edge_index[0]
    dst = edge_index[1]
    A = jnp.zeros((num_nodes, num_nodes), jnp.float32).at[dst, src].set(1.0)
    EA = jnp.zeros((num_nodes, num_nodes), jnp.float32).at[dst, src].set(edge_attr[:, 0])
    eye = jnp.eye(num_nodes, dtype=jnp.float32)
    # GATConv default: remove existing self loops, add self loops with
    # fill_value='mean' (per-target-node mean of incoming edge attrs, 0 if none).
    A = A * (1.0 - eye)
    EA = EA * (1.0 - eye)
    deg = jnp.sum(A, axis=1, keepdims=True)
    fill = jnp.where(deg > 0,
                     jnp.sum(EA * A, axis=1, keepdims=True) / jnp.maximum(deg, 1.0),
                     0.0)
    A = A + eye
    EA = EA + eye * fill
    return A, EA


if __name__ == "__main__":
    key = jax.random.PRNGKey(0)
    N, G, input_dim = 16, 2, 32
    k_x, k_e, k1, k2, k3, k_fc1, k_fc2 = jax.random.split(key, 7)

    # node features
    x = jax.random.normal(k_x, (N, input_dim), jnp.float32)

    # two graphs of 8 nodes each; bidirectional ring edges within each graph
    src, dst = [], []
    for g in range(G):
        off = g * 8
        for i in range(8):
            a, b = off + i, off + (i + 1) % 8
            src += [a, b]
            dst += [b, a]
    edge_index = jnp.array([src, dst], dtype=jnp.int32)                          # [2, E]
    E = edge_index.shape[1]
    edge_attr = jax.random.normal(k_e, (E, 1), jnp.float32)                      # edge_dim = 1
    batch = jnp.array([0] * 8 + [1] * 8, dtype=jnp.int32)

    adj, ea = build_dense_graph(edge_index, edge_attr, N)
    onehot = (batch[None, :] == jnp.arange(G)[:, None]).astype(jnp.float32)
    pool = onehot / jnp.sum(onehot, axis=1, keepdims=True)                       # global_mean_pool

    p1 = init_gat_params(k1, input_dim, 128, 4, True)
    p2 = init_gat_params(k2, 128 * 4, 256, 4, True)
    p3 = init_gat_params(k3, 256 * 4, 64, 4, False)
    kw1, kb1 = jax.random.split(k_fc1)
    kw2, kb2 = jax.random.split(k_fc2)
    w1 = glorot(kw1, (64, 32), 64, 32)
    b1 = 0.01 * jax.random.normal(kb1, (32,), jnp.float32)
    w2 = glorot(kw2, (32, 1), 32, 1)
    b2 = 0.01 * jax.random.normal(kb2, (1,), jnp.float32)

    out = gat_classifier_forward(x, adj, ea, pool, (p1, p2, p3, (w1, b1, w2, b2)))
    out = jax.block_until_ready(out)
    assert out.shape == (G, 1) and bool(jnp.all(jnp.isfinite(out)))
    print("KERNEL_OK")
</pallas_src>

<mosaic_0001>
module attributes {stable_mosaic.version = 11 : i64} {
  func.func @fused_gat_kernel(%arg0: memref<16x32xf32, #tpu.memory_space<vmem>>, %arg1: memref<16x16xf32, #tpu.memory_space<vmem>>, %arg2: memref<16x16xf32, #tpu.memory_space<vmem>>, %arg3: memref<2x16xf32, #tpu.memory_space<vmem>>, %arg4: memref<32x512xbf16, #tpu.memory_space<vmem>>, %arg5: memref<512x128xbf16, #tpu.memory_space<vmem>>, %arg6: memref<1x512xf32, #tpu.memory_space<vmem>>, %arg7: memref<1x512xf32, #tpu.memory_space<vmem>>, %arg8: memref<512x1024xbf16, #tpu.memory_space<vmem>>, %arg9: memref<1024x128xbf16, #tpu.memory_space<vmem>>, %arg10: memref<1x1024xf32, #tpu.memory_space<vmem>>, %arg11: memref<1x1024xf32, #tpu.memory_space<vmem>>, %arg12: memref<1024x512xbf16, #tpu.memory_space<vmem>>, %arg13: memref<512x128xbf16, #tpu.memory_space<vmem>>, %arg14: memref<1x128xf32, #tpu.memory_space<vmem>>, %arg15: memref<1x128xf32, #tpu.memory_space<vmem>>, %arg16: memref<128x128xbf16, #tpu.memory_space<vmem>>, %arg17: memref<1x128xf32, #tpu.memory_space<vmem>>, %arg18: memref<128x128xbf16, #tpu.memory_space<vmem>>, %arg19: memref<1x128xf32, #tpu.memory_space<vmem>>, %arg20: memref<12xf32, #tpu.memory_space<smem>>, %arg21: memref<2x128xf32, #tpu.memory_space<vmem>>, %arg22: memref<16x512xbf16, #tpu.memory_space<vmem>>, %arg23: memref<16x1024xbf16, #tpu.memory_space<vmem>>) attributes {dimension_semantics = [], scalar_prefetch = 0 : i64, scratch_operands = 2 : i64, tpu.core_type = #tpu.core_type<tc>} {
    %c0 = arith.constant 0 : index
    %c0_0 = arith.constant 0 : index
    %0 = vector.load %arg2[%c0, %c0_0] : memref<16x16xf32, #tpu.memory_space<vmem>>, vector<16x16xf32>
    %c0_1 = arith.constant 0 : index
    %c0_2 = arith.constant 0 : index
    %1 = vector.load %arg1[%c0_1, %c0_2] : memref<16x16xf32, #tpu.memory_space<vmem>>, vector<16x16xf32>
    %cst = arith.constant 0.000000e+00 : f32
    %2 = vector.broadcast %cst : f32 to vector<16x16xf32>
    %3 = arith.cmpf ogt, %1, %2 : vector<16x16xf32>
    %cst_3 = arith.constant 0.000000e+00 : f32
    %cst_4 = arith.constant -1.000000e+30 : f32
    %4 = vector.broadcast %cst_3 : f32 to vector<16x16xf32>
    %5 = vector.broadcast %cst_4 : f32 to vector<16x16xf32>
    %6 = arith.select %3, %4, %5 : vector<16x16xi1>, vector<16x16xf32>
    %c0_5 = arith.constant 0 : index
    %c0_6 = arith.constant 0 : index
    %7 = vector.load %arg0[%c0_5, %c0_6] : memref<16x32xf32, #tpu.memory_space<vmem>>, vector<16x32xf32>
    %8 = arith.truncf %7 : vector<16x32xf32> to vector<16x32xbf16>
    %c0_7 = arith.constant 0 : index
    %c0_8 = arith.constant 0 : index
    %9 = vector.load %arg4[%c0_7, %c0_8] : memref<32x512xbf16, #tpu.memory_space<vmem>>, vector<32x512xbf16>
    %cst_9 = arith.constant dense<0.000000e+00> : vector<16x512xf32>
    %10 = tpu.matmul %8, %9, %cst_9 {dimension_numbers = #tpu.dot_dimension_numbers<[1], [0], [0], [1], [0, 0, 1, 1], [], []>} : vector<16x32xbf16>, vector<32x512xbf16>, vector<16x512xf32> -> vector<16x512xf32>
    %11 = arith.truncf %10 : vector<16x512xf32> to vector<16x512xbf16>
    %c0_10 = arith.constant 0 : index
    %c0_11 = arith.constant 0 : index
    %12 = vector.load %arg5[%c0_10, %c0_11] : memref<512x128xbf16, #tpu.memory_space<vmem>>, vector<512x128xbf16>
    %cst_12 = arith.constant dense<0.000000e+00> : vector<16x128xf32>
    %13 = tpu.matmul %11, %12, %cst_12 {dimension_numbers = #tpu.dot_dimension_numbers<[1], [0], [0], [1], [0, 0, 1, 1], [], []>} : vector<16x512xbf16>, vector<512x128xbf16>, vector<16x128xf32> -> vector<16x128xf32>
    %14 = tpu.transpose %13, [1, 0] : vector<16x128xf32> -> vector<128x16xf32>
    %c0_13 = arith.constant 0 : index
    %15 = memref.load %arg20[%c0_13] : memref<12xf32, #tpu.memory_space<smem>>
    %c1 = arith.constant 1 : index
    %16 = memref.load %arg20[%c1] : memref<12xf32, #tpu.memory_space<smem>>
    %c2 = arith.constant 2 : index
    %17 = memref.load %arg20[%c2] : memref<12xf32, #tpu.memory_space<smem>>
    %c3 = arith.constant 3 : index
    %18 = memref.load %arg20[%c3] : memref<12xf32, #tpu.memory_space<smem>>
    %19 = vector.extract_strided_slice %11 {offsets = [0, 0], sizes = [16, 128], strides = [1, 1]} : vector<16x512xbf16> to vector<16x128xbf16>
    %20 = vector.extract_strided_slice %13 {offsets = [0, 4], sizes = [16, 1], strides = [1, 1]} : vector<16x128xf32> to vector<16x1xf32>
    %21 = vector.extract_strided_slice %14 {offsets = [0, 0], sizes = [1, 16], strides = [1, 1]} : vector<128x16xf32> to vector<1x16xf32>
    %22 = vector.broadcast %20 : vector<16x1xf32> to vector<16x16xf32>
    %23 = vector.broadcast %21 : vector<1x16xf32> to vector<16x16xf32>
    %24 = arith.addf %22, %23 : vector<16x16xf32>
    %25 = vector.broadcast %15 : f32 to vector<16x16xf32>
    %26 = arith.mulf %0, %25 : vector<16x16xf32>
    %27 = arith.addf %24, %26 : vector<16x16xf32>
    %cst_14 = arith.constant 2.000000e-01 : f32
    %28 = vector.broadcast %cst_14 : f32 to vector<16x16xf32>
    %29 = arith.mulf %28, %27 : vector<16x16xf32>
    %30 = arith.maximumf %27, %29 : vector<16x16xf32>
    %31 = arith.addf %30, %6 : vector<16x16xf32>
    %cst_15 = arith.constant dense<0xFF800000> : vector<16xf32>
    %32 = vector.multi_reduction <maximumf>, %31, %cst_15 [1] : vector<16x16xf32> to vector<16xf32>
    %33 = vector.shape_cast %32 : vector<16xf32> to vector<16x1xf32>
    %34 = vector.broadcast %33 : vector<16x1xf32> to vector<16x16xf32>
    %35 = arith.subf %31, %34 : vector<16x16xf32>
    %36 = math.exp %35 : vector<16x16xf32>
    %cst_16 = arith.constant dense<0.000000e+00> : vector<16xf32>
    %37 = vector.multi_reduction <add>, %36, %cst_16 [1] : vector<16x16xf32> to vector<16xf32>
    %38 = vector.shape_cast %37 : vector<16xf32> to vector<16x1xf32>
    %39 = tpu.reciprocal %38 {approx = true} : vector<16x1xf32> -> vector<16x1xf32>
    %40 = arith.truncf %36 : vector<16x16xf32> to vector<16x16xbf16>
    %cst_17 = arith.constant dense<0.000000e+00> : vector<16x128xf32>
    %41 = tpu.matmul %40, %19, %cst_17 {dimension_numbers = #tpu.dot_dimension_numbers<[1], [0], [0], [1], [0, 0, 1, 1], [], []>} : vector<16x16xbf16>, vector<16x128xbf16>, vector<16x128xf32> -> vector<16x128xf32>
    %42 = vector.broadcast %39 : vector<16x1xf32> to vector<16x128xf32>
    %43 = arith.mulf %41, %42 : vector<16x128xf32>
    %c0_18 = arith.constant 0 : index
    %c0_19 = arith.constant 0 : index
    %44 = vector.load %arg6[%c0_18, %c0_19] : memref<1x512xf32, #tpu.memory_space<vmem>>, vector<1x128xf32>
    %45 = vector.broadcast %44 : vector<1x128xf32> to vector<16x128xf32>
    %46 = arith.mulf %43, %45 : vector<16x128xf32>
    %c0_20 = arith.constant 0 : index
    %c0_21 = arith.constant 0 : index
    %47 = vector.load %arg7[%c0_20, %c0_21] : memref<1x512xf32, #tpu.memory_space<vmem>>, vector<1x128xf32>
    %48 = vector.broadcast %47 : vector<1x128xf32> to vector<16x128xf32>
    %49 = arith.addf %46, %48 : vector<16x128xf32>
    %cst_22 = arith.constant 0.000000e+00 : f32
    %50 = vector.broadcast %cst_22 : f32 to vector<16x128xf32>
    %51 = arith.maximumf %49, %50 : vector<16x128xf32>
    %52 = arith.truncf %51 : vector<16x128xf32> to vector<16x128xbf16>
    %c0_23 = arith.constant 0 : index
    %c0_24 = arith.constant 0 : index
    %53 = vector.load %arg22[%c0_23, %c0_24] : memref<16x512xbf16, #tpu.memory_space<vmem>>, vector<16x128xbf16>
    tpu.vector_store %arg22[%c0_23, %c0_24], %52 {strides = array<i32>} : memref<16x512xbf16, #tpu.memory_space<vmem>>, vector<16x128xbf16>,
    %54 = vector.extract_strided_slice %11 {offsets = [0, 128], sizes = [16, 128], strides = [1, 1]} : vector<16x512xbf16> to vector<16x128xbf16>
    %55 = vector.extract_strided_slice %13 {offsets = [0, 5], sizes = [16, 1], strides = [1, 1]} : vector<16x128xf32> to vector<16x1xf32>
    %56 = vector.extract_strided_slice %14 {offsets = [1, 0], sizes = [1, 16], strides = [1, 1]} : vector<128x16xf32> to vector<1x16xf32>
    %57 = vector.broadcast %55 : vector<16x1xf32> to vector<16x16xf32>
    %58 = vector.broadcast %56 : vector<1x16xf32> to vector<16x16xf32>
    %59 = arith.addf %57, %58 : vector<16x16xf32>
    %60 = vector.broadcast %16 : f32 to vector<16x16xf32>
    %61 = arith.mulf %0, %60 : vector<16x16xf32>
    %62 = arith.addf %59, %61 : vector<16x16xf32>
    %cst_25 = arith.constant 2.000000e-01 : f32
    %63 = vector.broadcast %cst_25 : f32 to vector<16x16xf32>
    %64 = arith.mulf %63, %62 : vector<16x16xf32>
    %65 = arith.maximumf %62, %64 : vector<16x16xf32>
    %66 = arith.addf %65, %6 : vector<16x16xf32>
    %cst_26 = arith.constant dense<0xFF800000> : vector<16xf32>
    %67 = vector.multi_reduction <maximumf>, %66, %cst_26 [1] : vector<16x16xf32> to vector<16xf32>
    %68 = vector.shape_cast %67 : vector<16xf32> to vector<16x1xf32>
    %69 = vector.broadcast %68 : vector<16x1xf32> to vector<16x16xf32>
    %70 = arith.subf %66, %69 : vector<16x16xf32>
    %71 = math.exp %70 : vector<16x16xf32>
    %cst_27 = arith.constant dense<0.000000e+00> : vector<16xf32>
    %72 = vector.multi_reduction <add>, %71, %cst_27 [1] : vector<16x16xf32> to vector<16xf32>
    %73 = vector.shape_cast %72 : vector<16xf32> to vector<16x1xf32>
    %74 = tpu.reciprocal %73 {approx = true} : vector<16x1xf32> -> vector<16x1xf32>
    %75 = arith.truncf %71 : vector<16x16xf32> to vector<16x16xbf16>
    %cst_28 = arith.constant dense<0.000000e+00> : vector<16x128xf32>
    %76 = tpu.matmul %75, %54, %cst_28 {dimension_numbers = #tpu.dot_dimension_numbers<[1], [0], [0], [1], [0, 0, 1, 1], [], []>} : vector<16x16xbf16>, vector<16x128xbf16>, vector<16x128xf32> -> vector<16x128xf32>
    %77 = vector.broadcast %74 : vector<16x1xf32> to vector<16x128xf32>
    %78 = arith.mulf %76, %77 : vector<16x128xf32>
    %c0_29 = arith.constant 0 : index
    %c128 = arith.constant 128 : index
    %79 = vector.load %arg6[%c0_29, %c128] : memref<1x512xf32, #tpu.memory_space<vmem>>, vector<1x128xf32>
    %80 = vector.broadcast %79 : vector<1x128xf32> to vector<16x128xf32>
    %81 = arith.mulf %78, %80 : vector<16x128xf32>
    %c0_30 = arith.constant 0 : index
    %c128_31 = arith.constant 128 : index
    %82 = vector.load %arg7[%c0_30, %c128_31] : memref<1x512xf32, #tpu.memory_space<vmem>>, vector<1x128xf32>
    %83 = vector.broadcast %82 : vector<1x128xf32> to vector<16x128xf32>
    %84 = arith.addf %81, %83 : vector<16x128xf32>
    %cst_32 = arith.constant 0.000000e+00 : f32
    %85 = vector.broadcast %cst_32 : f32 to vector<16x128xf32>
    %86 = arith.maximumf %84, %85 : vector<16x128xf32>
    %87 = arith.truncf %86 : vector<16x128xf32> to vector<16x128xbf16>
    %c0_33 = arith.constant 0 : index
    %c128_34 = arith.constant 128 : index
    %88 = vector.load %arg22[%c0_33, %c128_34] : memref<16x512xbf16, #tpu.memory_space<vmem>>, vector<16x128xbf16>
    tpu.vector_store %arg22[%c0_33, %c128_34], %87 {strides = array<i32>} : memref<16x512xbf16, #tpu.memory_space<vmem>>, vector<16x128xbf16>,
    %89 = vector.extract_strided_slice %11 {offsets = [0, 256], sizes = [16, 128], strides = [1, 1]} : vector<16x512xbf16> to vector<16x128xbf16>
    %90 = vector.extract_strided_slice %13 {offsets = [0, 6], sizes = [16, 1], strides = [1, 1]} : vector<16x128xf32> to vector<16x1xf32>
    %91 = vector.extract_strided_slice %14 {offsets = [2, 0], sizes = [1, 16], strides = [1, 1]} : vector<128x16xf32> to vector<1x16xf32>
    %92 = vector.broadcast %90 : vector<16x1xf32> to vector<16x16xf32>
    %93 = vector.broadcast %91 : vector<1x16xf32> to vector<16x16xf32>
    %94 = arith.addf %92, %93 : vector<16x16xf32>
    %95 = vector.broadcast %17 : f32 to vector<16x16xf32>
    %96 = arith.mulf %0, %95 : vector<16x16xf32>
    %97 = arith.addf %94, %96 : vector<16x16xf32>
    %cst_35 = arith.constant 2.000000e-01 : f32
    %98 = vector.broadcast %cst_35 : f32 to vector<16x16xf32>
    %99 = arith.mulf %98, %97 : vector<16x16xf32>
    %100 = arith.maximumf %97, %99 : vector<16x16xf32>
    %101 = arith.addf %100, %6 : vector<16x16xf32>
    %cst_36 = arith.constant dense<0xFF800000> : vector<16xf32>
    %102 = vector.multi_reduction <maximumf>, %101, %cst_36 [1] : vector<16x16xf32> to vector<16xf32>
    %103 = vector.shape_cast %102 : vector<16xf32> to vector<16x1xf32>
    %104 = vector.broadcast %103 : vector<16x1xf32> to vector<16x16xf32>
    %105 = arith.subf %101, %104 : vector<16x16xf32>
    %106 = math.exp %105 : vector<16x16xf32>
    %cst_37 = arith.constant dense<0.000000e+00> : vector<16xf32>
    %107 = vector.multi_reduction <add>, %106, %cst_37 [1] : vector<16x16xf32> to vector<16xf32>
    %108 = vector.shape_cast %107 : vector<16xf32> to vector<16x1xf32>
    %109 = tpu.reciprocal %108 {approx = true} : vector<16x1xf32> -> vector<16x1xf32>
    %110 = arith.truncf %106 : vector<16x16xf32> to vector<16x16xbf16>
    %cst_38 = arith.constant dense<0.000000e+00> : vector<16x128xf32>
    %111 = tpu.matmul %110, %89, %cst_38 {dimension_numbers = #tpu.dot_dimension_numbers<[1], [0], [0], [1], [0, 0, 1, 1], [], []>} : vector<16x16xbf16>, vector<16x128xbf16>, vector<16x128xf32> -> vector<16x128xf32>
    %112 = vector.broadcast %109 : vector<16x1xf32> to vector<16x128xf32>
    %113 = arith.mulf %111, %112 : vector<16x128xf32>
    %c0_39 = arith.constant 0 : index
    %c256 = arith.constant 256 : index
    %114 = vector.load %arg6[%c0_39, %c256] : memref<1x512xf32, #tpu.memory_space<vmem>>, vector<1x128xf32>
    %115 = vector.broadcast %114 : vector<1x128xf32> to vector<16x128xf32>
    %116 = arith.mulf %113, %115 : vector<16x128xf32>
    %c0_40 = arith.constant 0 : index
    %c256_41 = arith.constant 256 : index
    %117 = vector.load %arg7[%c0_40, %c256_41] : memref<1x512xf32, #tpu.memory_space<vmem>>, vector<1x128xf32>
    %118 = vector.broadcast %117 : vector<1x128xf32> to vector<16x128xf32>
    %119 = arith.addf %116, %118 : vector<16x128xf32>
    %cst_42 = arith.constant 0.000000e+00 : f32
    %120 = vector.broadcast %cst_42 : f32 to vector<16x128xf32>
    %121 = arith.maximumf %119, %120 : vector<16x128xf32>
    %122 = arith.truncf %121 : vector<16x128xf32> to vector<16x128xbf16>
    %c0_43 = arith.constant 0 : index
    %c256_44 = arith.constant 256 : index
    %123 = vector.load %arg22[%c0_43, %c256_44] : memref<16x512xbf16, #tpu.memory_space<vmem>>, vector<16x128xbf16>
    tpu.vector_store %arg22[%c0_43, %c256_44], %122 {strides = array<i32>} : memref<16x512xbf16, #tpu.memory_space<vmem>>, vector<16x128xbf16>,
    %124 = vector.extract_strided_slice %11 {offsets = [0, 384], sizes = [16, 128], strides = [1, 1]} : vector<16x512xbf16> to vector<16x128xbf16>
    %125 = vector.extract_strided_slice %13 {offsets = [0, 7], sizes = [16, 1], strides = [1, 1]} : vector<16x128xf32> to vector<16x1xf32>
    %126 = vector.extract_strided_slice %14 {offsets = [3, 0], sizes = [1, 16], strides = [1, 1]} : vector<128x16xf32> to vector<1x16xf32>
    %127 = vector.broadcast %125 : vector<16x1xf32> to vector<16x16xf32>
    %128 = vector.broadcast %126 : vector<1x16xf32> to vector<16x16xf32>
    %129 = arith.addf %127, %128 : vector<16x16xf32>
    %130 = vector.broadcast %18 : f32 to vector<16x16xf32>
    %131 = arith.mulf %0, %130 : vector<16x16xf32>
    %132 = arith.addf %129, %131 : vector<16x16xf32>
    %cst_45 = arith.constant 2.000000e-01 : f32
    %133 = vector.broadcast %cst_45 : f32 to vector<16x16xf32>
    %134 = arith.mulf %133, %132 : vector<16x16xf32>
    %135 = arith.maximumf %132, %134 : vector<16x16xf32>
    %136 = arith.addf %135, %6 : vector<16x16xf32>
    %cst_46 = arith.constant dense<0xFF800000> : vector<16xf32>
    %137 = vector.multi_reduction <maximumf>, %136, %cst_46 [1] : vector<16x16xf32> to vector<16xf32>
    %138 = vector.shape_cast %137 : vector<16xf32> to vector<16x1xf32>
    %139 = vector.broadcast %138 : vector<16x1xf32> to vector<16x16xf32>
    %140 = arith.subf %136, %139 : vector<16x16xf32>
    %141 = math.exp %140 : vector<16x16xf32>
    %cst_47 = arith.constant dense<0.000000e+00> : vector<16xf32>
    %142 = vector.multi_reduction <add>, %141, %cst_47 [1] : vector<16x16xf32> to vector<16xf32>
    %143 = vector.shape_cast %142 : vector<16xf32> to vector<16x1xf32>
    %144 = tpu.reciprocal %143 {approx = true} : vector<16x1xf32> -> vector<16x1xf32>
    %145 = arith.truncf %141 : vector<16x16xf32> to vector<16x16xbf16>
    %cst_48 = arith.constant dense<0.000000e+00> : vector<16x128xf32>
    %146 = tpu.matmul %145, %124, %cst_48 {dimension_numbers = #tpu.dot_dimension_numbers<[1], [0], [0], [1], [0, 0, 1, 1], [], []>} : vector<16x16xbf16>, vector<16x128xbf16>, vector<16x128xf32> -> vector<16x128xf32>
    %147 = vector.broadcast %144 : vector<16x1xf32> to vector<16x128xf32>
    %148 = arith.mulf %146, %147 : vector<16x128xf32>
    %c0_49 = arith.constant 0 : index
    %c384 = arith.constant 384 : index
    %149 = vector.load %arg6[%c0_49, %c384] : memref<1x512xf32, #tpu.memory_space<vmem>>, vector<1x128xf32>
    %150 = vector.broadcast %149 : vector<1x128xf32> to vector<16x128xf32>
    %151 = arith.mulf %148, %150 : vector<16x128xf32>
    %c0_50 = arith.constant 0 : index
    %c384_51 = arith.constant 384 : index
    %152 = vector.load %arg7[%c0_50, %c384_51] : memref<1x512xf32, #tpu.memory_space<vmem>>, vector<1x128xf32>
    %153 = vector.broadcast %152 : vector<1x128xf32> to vector<16x128xf32>
    %154 = arith.addf %151, %153 : vector<16x128xf32>
    %cst_52 = arith.constant 0.000000e+00 : f32
    %155 = vector.broadcast %cst_52 : f32 to vector<16x128xf32>
    %156 = arith.maximumf %154, %155 : vector<16x128xf32>
    %157 = arith.truncf %156 : vector<16x128xf32> to vector<16x128xbf16>
    %c0_53 = arith.constant 0 : index
    %c384_54 = arith.constant 384 : index
    %158 = vector.load %arg22[%c0_53, %c384_54] : memref<16x512xbf16, #tpu.memory_space<vmem>>, vector<16x128xbf16>
    tpu.vector_store %arg22[%c0_53, %c384_54], %157 {strides = array<i32>} : memref<16x512xbf16, #tpu.memory_space<vmem>>, vector<16x128xbf16>,
    %c0_55 = arith.constant 0 : index
    %c0_56 = arith.constant 0 : index
    %159 = vector.load %arg22[%c0_55, %c0_56] : memref<16x512xbf16, #tpu.memory_space<vmem>>, vector<16x512xbf16>
    %c0_57 = arith.constant 0 : index
    %c0_58 = arith.constant 0 : index
    %160 = vector.load %arg8[%c0_57, %c0_58] : memref<512x1024xbf16, #tpu.memory_space<vmem>>, vector<512x1024xbf16>
    %cst_59 = arith.constant dense<0.000000e+00> : vector<16x1024xf32>
    %161 = tpu.matmul %159, %160, %cst_59 {dimension_numbers = #tpu.dot_dimension_numbers<[1], [0], [0], [1], [0, 0, 1, 1], [], []>} : vector<16x512xbf16>, vector<512x1024xbf16>, vector<16x1024xf32> -> vector<16x1024xf32>
    %162 = arith.truncf %161 : vector<16x1024xf32> to vector<16x1024xbf16>
    %c0_60 = arith.constant 0 : index
    %c0_61 = arith.constant 0 : index
    %163 = vector.load %arg9[%c0_60, %c0_61] : memref<1024x128xbf16, #tpu.memory_space<vmem>>, vector<1024x128xbf16>
    %cst_62 = arith.constant dense<0.000000e+00> : vector<16x128xf32>
    %164 = tpu.matmul %162, %163, %cst_62 {dimension_numbers = #tpu.dot_dimension_numbers<[1], [0], [0], [1], [0, 0, 1, 1], [], []>} : vector<16x1024xbf16>, vector<1024x128xbf16>, vector<16x128xf32> -> vector<16x128xf32>
    %165 = tpu.transpose %164, [1, 0] : vector<16x128xf32> -> vector<128x16xf32>
    %c4 = arith.constant 4 : index
    %166 = memref.load %arg20[%c4] : memref<12xf32, #tpu.memory_space<smem>>
    %c5 = arith.constant 5 : index
    %167 = memref.load %arg20[%c5] : memref<12xf32, #tpu.memory_space<smem>>
    %c6 = arith.constant 6 : index
    %168 = memref.load %arg20[%c6] : memref<12xf32, #tpu.memory_space<smem>>
    %c7 = arith.constant 7 : index
    %169 = memref.load %arg20[%c7] : memref<12xf32, #tpu.memory_space<smem>>
    %170 = vector.extract_strided_slice %162 {offsets = [0, 0], sizes = [16, 256], strides = [1, 1]} : vector<16x1024xbf16> to vector<16x256xbf16>
    %171 = vector.extract_strided_slice %164 {offsets = [0, 4], sizes = [16, 1], strides = [1, 1]} : vector<16x128xf32> to vector<16x1xf32>
    %172 = vector.extract_strided_slice %165 {offsets = [0, 0], sizes = [1, 16], strides = [1, 1]} : vector<128x16xf32> to vector<1x16xf32>
    %173 = vector.broadcast %171 : vector<16x1xf32> to vector<16x16xf32>
    %174 = vector.broadcast %172 : vector<1x16xf32> to vector<16x16xf32>
    %175 = arith.addf %173, %174 : vector<16x16xf32>
    %176 = vector.broadcast %166 : f32 to vector<16x16xf32>
    %177 = arith.mulf %0, %176 : vector<16x16xf32>
    %178 = arith.addf %175, %177 : vector<16x16xf32>
    %cst_63 = arith.constant 2.000000e-01 : f32
    %179 = vector.broadcast %cst_63 : f32 to vector<16x16xf32>
    %180 = arith.mulf %179, %178 : vector<16x16xf32>
    %181 = arith.maximumf %178, %180 : vector<16x16xf32>
    %182 = arith.addf %181, %6 : vector<16x16xf32>
    %cst_64 = arith.constant dense<0xFF800000> : vector<16xf32>
    %183 = vector.multi_reduction <maximumf>, %182, %cst_64 [1] : vector<16x16xf32> to vector<16xf32>
    %184 = vector.shape_cast %183 : vector<16xf32> to vector<16x1xf32>
    %185 = vector.broadcast %184 : vector<16x1xf32> to vector<16x16xf32>
    %186 = arith.subf %182, %185 : vector<16x16xf32>
    %187 = math.exp %186 : vector<16x16xf32>
    %cst_65 = arith.constant dense<0.000000e+00> : vector<16xf32>
    %188 = vector.multi_reduction <add>, %187, %cst_65 [1] : vector<16x16xf32> to vector<16xf32>
    %189 = vector.shape_cast %188 : vector<16xf32> to vector<16x1xf32>
    %190 = tpu.reciprocal %189 {approx = true} : vector<16x1xf32> -> vector<16x1xf32>
    %191 = arith.truncf %187 : vector<16x16xf32> to vector<16x16xbf16>
    %cst_66 = arith.constant dense<0.000000e+00> : vector<16x256xf32>
    %192 = tpu.matmul %191, %170, %cst_66 {dimension_numbers = #tpu.dot_dimension_numbers<[1], [0], [0], [1], [0, 0, 1, 1], [], []>} : vector<16x16xbf16>, vector<16x256xbf16>, vector<16x256xf32> -> vector<16x256xf32>
    %193 = vector.broadcast %190 : vector<16x1xf32> to vector<16x256xf32>
    %194 = arith.mulf %192, %193 : vector<16x256xf32>
    %c0_67 = arith.constant 0 : index
    %c0_68 = arith.constant 0 : index
    %195 = vector.load %arg10[%c0_67, %c0_68] : memref<1x1024xf32, #tpu.memory_space<vmem>>, vector<1x256xf32>
    %196 = vector.broadcast %195 : vector<1x256xf32> to vector<16x256xf32>
    %197 = arith.mulf %194, %196 : vector<16x256xf32>
    %c0_69 = arith.constant 0 : index
    %c0_70 = arith.constant 0 : index
    %198 = vector.load %arg11[%c0_69, %c0_70] : memref<1x1024xf32, #tpu.memory_space<vmem>>, vector<1x256xf32>
    %199 = vector.broadcast %198 : vector<1x256xf32> to vector<16x256xf32>
    %200 = arith.addf %197, %199 : vector<16x256xf32>
    %cst_71 = arith.constant 0.000000e+00 : f32
    %201 = vector.broadcast %cst_71 : f32 to vector<16x256xf32>
    %202 = arith.maximumf %200, %201 : vector<16x256xf32>
    %203 = arith.truncf %202 : vector<16x256xf32> to vector<16x256xbf16>
    %c0_72 = arith.constant 0 : index
    %c0_73 = arith.constant 0 : index
    %204 = vector.load %arg23[%c0_72, %c0_73] : memref<16x1024xbf16, #tpu.memory_space<vmem>>, vector<16x256xbf16>
    tpu.vector_store %arg23[%c0_72, %c0_73], %203 {strides = array<i32>} : memref<16x1024xbf16, #tpu.memory_space<vmem>>, vector<16x256xbf16>,
    %205 = vector.extract_strided_slice %162 {offsets = [0, 256], sizes = [16, 256], strides = [1, 1]} : vector<16x1024xbf16> to vector<16x256xbf16>
    %206 = vector.extract_strided_slice %164 {offsets = [0, 5], sizes = [16, 1], strides = [1, 1]} : vector<16x128xf32> to vector<16x1xf32>
    %207 = vector.extract_strided_slice %165 {offsets = [1, 0], sizes = [1, 16], strides = [1, 1]} : vector<128x16xf32> to vector<1x16xf32>
    %208 = vector.broadcast %206 : vector<16x1xf32> to vector<16x16xf32>
    %209 = vector.broadcast %207 : vector<1x16xf32> to vector<16x16xf32>
    %210 = arith.addf %208, %209 : vector<16x16xf32>
    %211 = vector.broadcast %167 : f32 to vector<16x16xf32>
    %212 = arith.mulf %0, %211 : vector<16x16xf32>
    %213 = arith.addf %210, %212 : vector<16x16xf32>
    %cst_74 = arith.constant 2.000000e-01 : f32
    %214 = vector.broadcast %cst_74 : f32 to vector<16x16xf32>
    %215 = arith.mulf %214, %213 : vector<16x16xf32>
    %216 = arith.maximumf %213, %215 : vector<16x16xf32>
    %217 = arith.addf %216, %6 : vector<16x16xf32>
    %cst_75 = arith.constant dense<0xFF800000> : vector<16xf32>
    %218 = vector.multi_reduction <maximumf>, %217, %cst_75 [1] : vector<16x16xf32> to vector<16xf32>
    %219 = vector.shape_cast %218 : vector<16xf32> to vector<16x1xf32>
    %220 = vector.broadcast %219 : vector<16x1xf32> to vector<16x16xf32>
    %221 = arith.subf %217, %220 : vector<16x16xf32>
    %222 = math.exp %221 : vector<16x16xf32>
    %cst_76 = arith.constant dense<0.000000e+00> : vector<16xf32>
    %223 = vector.multi_reduction <add>, %222, %cst_76 [1] : vector<16x16xf32> to vector<16xf32>
    %224 = vector.shape_cast %223 : vector<16xf32> to vector<16x1xf32>
    %225 = tpu.reciprocal %224 {approx = true} : vector<16x1xf32> -> vector<16x1xf32>
    %226 = arith.truncf %222 : vector<16x16xf32> to vector<16x16xbf16>
    %cst_77 = arith.constant dense<0.000000e+00> : vector<16x256xf32>
    %227 = tpu.matmul %226, %205, %cst_77 {dimension_numbers = #tpu.dot_dimension_numbers<[1], [0], [0], [1], [0, 0, 1, 1], [], []>} : vector<16x16xbf16>, vector<16x256xbf16>, vector<16x256xf32> -> vector<16x256xf32>
    %228 = vector.broadcast %225 : vector<16x1xf32> to vector<16x256xf32>
    %229 = arith.mulf %227, %228 : vector<16x256xf32>
    %c0_78 = arith.constant 0 : index
    %c256_79 = arith.constant 256 : index
    %230 = vector.load %arg10[%c0_78, %c256_79] : memref<1x1024xf32, #tpu.memory_space<vmem>>, vector<1x256xf32>
    %231 = vector.broadcast %230 : vector<1x256xf32> to vector<16x256xf32>
    %232 = arith.mulf %229, %231 : vector<16x256xf32>
    %c0_80 = arith.constant 0 : index
    %c256_81 = arith.constant 256 : index
    %233 = vector.load %arg11[%c0_80, %c256_81] : memref<1x1024xf32, #tpu.memory_space<vmem>>, vector<1x256xf32>
    %234 = vector.broadcast %233 : vector<1x256xf32> to vector<16x256xf32>
    %235 = arith.addf %232, %234 : vector<16x256xf32>
    %cst_82 = arith.constant 0.000000e+00 : f32
    %236 = vector.broadcast %cst_82 : f32 to vector<16x256xf32>
    %237 = arith.maximumf %235, %236 : vector<16x256xf32>
    %238 = arith.truncf %237 : vector<16x256xf32> to vector<16x256xbf16>
    %c0_83 = arith.constant 0 : index
    %c256_84 = arith.constant 256 : index
    %239 = vector.load %arg23[%c0_83, %c256_84] : memref<16x1024xbf16, #tpu.memory_space<vmem>>, vector<16x256xbf16>
    tpu.vector_store %arg23[%c0_83, %c256_84], %238 {strides = array<i32>} : memref<16x1024xbf16, #tpu.memory_space<vmem>>, vector<16x256xbf16>,
    %240 = vector.extract_strided_slice %162 {offsets = [0, 512], sizes = [16, 256], strides = [1, 1]} : vector<16x1024xbf16> to vector<16x256xbf16>
    %241 = vector.extract_strided_slice %164 {offsets = [0, 6], sizes = [16, 1], strides = [1, 1]} : vector<16x128xf32> to vector<16x1xf32>
    %242 = vector.extract_strided_slice %165 {offsets = [2, 0], sizes = [1, 16], strides = [1, 1]} : vector<128x16xf32> to vector<1x16xf32>
    %243 = vector.broadcast %241 : vector<16x1xf32> to vector<16x16xf32>
    %244 = vector.broadcast %242 : vector<1x16xf32> to vector<16x16xf32>
    %245 = arith.addf %243, %244 : vector<16x16xf32>
    %246 = vector.broadcast %168 : f32 to vector<16x16xf32>
    %247 = arith.mulf %0, %246 : vector<16x16xf32>
    %248 = arith.addf %245, %247 : vector<16x16xf32>
    %cst_85 = arith.constant 2.000000e-01 : f32
    %249 = vector.broadcast %cst_85 : f32 to vector<16x16xf32>
    %250 = arith.mulf %249, %248 : vector<16x16xf32>
    %251 = arith.maximumf %248, %250 : vector<16x16xf32>
    %252 = arith.addf %251, %6 : vector<16x16xf32>
    %cst_86 = arith.constant dense<0xFF800000> : vector<16xf32>
    %253 = vector.multi_reduction <maximumf>, %252, %cst_86 [1] : vector<16x16xf32> to vector<16xf32>
    %254 = vector.shape_cast %253 : vector<16xf32> to vector<16x1xf32>
    %255 = vector.broadcast %254 : vector<16x1xf32> to vector<16x16xf32>
    %256 = arith.subf %252, %255 : vector<16x16xf32>
    %257 = math.exp %256 : vector<16x16xf32>
    %cst_87 = arith.constant dense<0.000000e+00> : vector<16xf32>
    %258 = vector.multi_reduction <add>, %257, %cst_87 [1] : vector<16x16xf32> to vector<16xf32>
    %259 = vector.shape_cast %258 : vector<16xf32> to vector<16x1xf32>
    %260 = tpu.reciprocal %259 {approx = true} : vector<16x1xf32> -> vector<16x1xf32>
    %261 = arith.truncf %257 : vector<16x16xf32> to vector<16x16xbf16>
    %cst_88 = arith.constant dense<0.000000e+00> : vector<16x256xf32>
    %262 = tpu.matmul %261, %240, %cst_88 {dimension_numbers = #tpu.dot_dimension_numbers<[1], [0], [0], [1], [0, 0, 1, 1], [], []>} : vector<16x16xbf16>, vector<16x256xbf16>, vector<16x256xf32> -> vector<16x256xf32>
    %263 = vector.broadcast %260 : vector<16x1xf32> to vector<16x256xf32>
    %264 = arith.mulf %262, %263 : vector<16x256xf32>
    %c0_89 = arith.constant 0 : index
    %c512 = arith.constant 512 : index
    %265 = vector.load %arg10[%c0_89, %c512] : memref<1x1024xf32, #tpu.memory_space<vmem>>, vector<1x256xf32>
    %266 = vector.broadcast %265 : vector<1x256xf32> to vector<16x256xf32>
    %267 = arith.mulf %264, %266 : vector<16x256xf32>
    %c0_90 = arith.constant 0 : index
    %c512_91 = arith.constant 512 : index
    %268 = vector.load %arg11[%c0_90, %c512_91] : memref<1x1024xf32, #tpu.memory_space<vmem>>, vector<1x256xf32>
    %269 = vector.broadcast %268 : vector<1x256xf32> to vector<16x256xf32>
    %270 = arith.addf %267, %269 : vector<16x256xf32>
    %cst_92 = arith.constant 0.000000e+00 : f32
    %271 = vector.broadcast %cst_92 : f32 to vector<16x256xf32>
    %272 = arith.maximumf %270, %271 : vector<16x256xf32>
    %273 = arith.truncf %272 : vector<16x256xf32> to vector<16x256xbf16>
    %c0_93 = arith.constant 0 : index
    %c512_94 = arith.constant 512 : index
    %274 = vector.load %arg23[%c0_93, %c512_94] : memref<16x1024xbf16, #tpu.memory_space<vmem>>, vector<16x256xbf16>
    tpu.vector_store %arg23[%c0_93, %c512_94], %273 {strides = array<i32>} : memref<16x1024xbf16, #tpu.memory_space<vmem>>, vector<16x256xbf16>,
    %275 = vector.extract_strided_slice %162 {offsets = [0, 768], sizes = [16, 256], strides = [1, 1]} : vector<16x1024xbf16> to vector<16x256xbf16>
    %276 = vector.extract_strided_slice %164 {offsets = [0, 7], sizes = [16, 1], strides = [1, 1]} : vector<16x128xf32> to vector<16x1xf32>
    %277 = vector.extract_strided_slice %165 {offsets = [3, 0], sizes = [1, 16], strides = [1, 1]} : vector<128x16xf32> to vector<1x16xf32>
    %278 = vector.broadcast %276 : vector<16x1xf32> to vector<16x16xf32>
    %279 = vector.broadcast %277 : vector<1x16xf32> to vector<16x16xf32>
    %280 = arith.addf %278, %279 : vector<16x16xf32>
    %281 = vector.broadcast %169 : f32 to vector<16x16xf32>
    %282 = arith.mulf %0, %281 : vector<16x16xf32>
    %283 = arith.addf %280, %282 : vector<16x16xf32>
    %cst_95 = arith.constant 2.000000e-01 : f32
    %284 = vector.broadcast %cst_95 : f32 to vector<16x16xf32>
    %285 = arith.mulf %284, %283 : vector<16x16xf32>
    %286 = arith.maximumf %283, %285 : vector<16x16xf32>
    %287 = arith.addf %286, %6 : vector<16x16xf32>
    %cst_96 = arith.constant dense<0xFF800000> : vector<16xf32>
    %288 = vector.multi_reduction <maximumf>, %287, %cst_96 [1] : vector<16x16xf32> to vector<16xf32>
    %289 = vector.shape_cast %288 : vector<16xf32> to vector<16x1xf32>
    %290 = vector.broadcast %289 : vector<16x1xf32> to vector<16x16xf32>
    %291 = arith.subf %287, %290 : vector<16x16xf32>
    %292 = math.exp %291 : vector<16x16xf32>
    %cst_97 = arith.constant dense<0.000000e+00> : vector<16xf32>
    %293 = vector.multi_reduction <add>, %292, %cst_97 [1] : vector<16x16xf32> to vector<16xf32>
    %294 = vector.shape_cast %293 : vector<16xf32> to vector<16x1xf32>
    %295 = tpu.reciprocal %294 {approx = true} : vector<16x1xf32> -> vector<16x1xf32>
    %296 = arith.truncf %292 : vector<16x16xf32> to vector<16x16xbf16>
    %cst_98 = arith.constant dense<0.000000e+00> : vector<16x256xf32>
    %297 = tpu.matmul %296, %275, %cst_98 {dimension_numbers = #tpu.dot_dimension_numbers<[1], [0], [0], [1], [0, 0, 1, 1], [], []>} : vector<16x16xbf16>, vector<16x256xbf16>, vector<16x256xf32> -> vector<16x256xf32>
    %298 = vector.broadcast %295 : vector<16x1xf32> to vector<16x256xf32>
    %299 = arith.mulf %297, %298 : vector<16x256xf32>
    %c0_99 = arith.constant 0 : index
    %c768 = arith.constant 768 : index
    %300 = vector.load %arg10[%c0_99, %c768] : memref<1x1024xf32, #tpu.memory_space<vmem>>, vector<1x256xf32>
    %301 = vector.broadcast %300 : vector<1x256xf32> to vector<16x256xf32>
    %302 = arith.mulf %299, %301 : vector<16x256xf32>
    %c0_100 = arith.constant 0 : index
    %c768_101 = arith.constant 768 : index
    %303 = vector.load %arg11[%c0_100, %c768_101] : memref<1x1024xf32, #tpu.memory_space<vmem>>, vector<1x256xf32>
    %304 = vector.broadcast %303 : vector<1x256xf32> to vector<16x256xf32>
    %305 = arith.addf %302, %304 : vector<16x256xf32>
    %cst_102 = arith.constant 0.000000e+00 : f32
    %306 = vector.broadcast %cst_102 : f32 to vector<16x256xf32>
    %307 = arith.maximumf %305, %306 : vector<16x256xf32>
    %308 = arith.truncf %307 : vector<16x256xf32> to vector<16x256xbf16>
    %c0_103 = arith.constant 0 : index
    %c768_104 = arith.constant 768 : index
    %309 = vector.load %arg23[%c0_103, %c768_104] : memref<16x1024xbf16, #tpu.memory_space<vmem>>, vector<16x256xbf16>
    tpu.vector_store %arg23[%c0_103, %c768_104], %308 {strides = array<i32>} : memref<16x1024xbf16, #tpu.memory_space<vmem>>, vector<16x256xbf16>,
    %c0_105 = arith.constant 0 : index
    %c0_106 = arith.constant 0 : index
    %310 = vector.load %arg23[%c0_105, %c0_106] : memref<16x1024xbf16, #tpu.memory_space<vmem>>, vector<16x1024xbf16>
    %c0_107 = arith.constant 0 : index
    %c0_108 = arith.constant 0 : index
    %311 = vector.load %arg12[%c0_107, %c0_108] : memref<1024x512xbf16, #tpu.memory_space<vmem>>, vector<1024x512xbf16>
    %cst_109 = arith.constant dense<0.000000e+00> : vector<16x512xf32>
    %312 = tpu.matmul %310, %311, %cst_109 {dimension_numbers = #tpu.dot_dimension_numbers<[1], [0], [0], [1], [0, 0, 1, 1], [], []>} : vector<16x1024xbf16>, vector<1024x512xbf16>, vector<16x512xf32> -> vector<16x512xf32>
    %313 = arith.truncf %312 : vector<16x512xf32> to vector<16x512xbf16>
    %c0_110 = arith.constant 0 : index
    %c0_111 = arith.constant 0 : index
    %314 = vector.load %arg13[%c0_110, %c0_111] : memref<512x128xbf16, #tpu.memory_space<vmem>>, vector<512x128xbf16>
    %cst_112 = arith.constant dense<0.000000e+00> : vector<16x128xf32>
    %315 = tpu.matmul %313, %314, %cst_112 {dimension_numbers = #tpu.dot_dimension_numbers<[1], [0], [0], [1], [0, 0, 1, 1], [], []>} : vector<16x512xbf16>, vector<512x128xbf16>, vector<16x128xf32> -> vector<16x128xf32>
    %316 = tpu.transpose %315, [1, 0] : vector<16x128xf32> -> vector<128x16xf32>
    %c8 = arith.constant 8 : index
    %317 = memref.load %arg20[%c8] : memref<12xf32, #tpu.memory_space<smem>>
    %c9 = arith.constant 9 : index
    %318 = memref.load %arg20[%c9] : memref<12xf32, #tpu.memory_space<smem>>
    %c10 = arith.constant 10 : index
    %319 = memref.load %arg20[%c10] : memref<12xf32, #tpu.memory_space<smem>>
    %c11 = arith.constant 11 : index
    %320 = memref.load %arg20[%c11] : memref<12xf32, #tpu.memory_space<smem>>
    %321 = vector.extract_strided_slice %313 {offsets = [0, 0], sizes = [16, 128], strides = [1, 1]} : vector<16x512xbf16> to vector<16x128xbf16>
    %322 = vector.extract_strided_slice %315 {offsets = [0, 4], sizes = [16, 1], strides = [1, 1]} : vector<16x128xf32> to vector<16x1xf32>
    %323 = vector.extract_strided_slice %316 {offsets = [0, 0], sizes = [1, 16], strides = [1, 1]} : vector<128x16xf32> to vector<1x16xf32>
    %324 = vector.broadcast %322 : vector<16x1xf32> to vector<16x16xf32>
    %325 = vector.broadcast %323 : vector<1x16xf32> to vector<16x16xf32>
    %326 = arith.addf %324, %325 : vector<16x16xf32>
    %327 = vector.broadcast %317 : f32 to vector<16x16xf32>
    %328 = arith.mulf %0, %327 : vector<16x16xf32>
    %329 = arith.addf %326, %328 : vector<16x16xf32>
    %cst_113 = arith.constant 2.000000e-01 : f32
    %330 = vector.broadcast %cst_113 : f32 to vector<16x16xf32>
    %331 = arith.mulf %330, %329 : vector<16x16xf32>
    %332 = arith.maximumf %329, %331 : vector<16x16xf32>
    %333 = arith.addf %332, %6 : vector<16x16xf32>
    %cst_114 = arith.constant dense<0xFF800000> : vector<16xf32>
    %334 = vector.multi_reduction <maximumf>, %333, %cst_114 [1] : vector<16x16xf32> to vector<16xf32>
    %335 = vector.shape_cast %334 : vector<16xf32> to vector<16x1xf32>
    %336 = vector.broadcast %335 : vector<16x1xf32> to vector<16x16xf32>
    %337 = arith.subf %333, %336 : vector<16x16xf32>
    %338 = math.exp %337 : vector<16x16xf32>
    %cst_115 = arith.constant dense<0.000000e+00> : vector<16xf32>
    %339 = vector.multi_reduction <add>, %338, %cst_115 [1] : vector<16x16xf32> to vector<16xf32>
    %340 = vector.shape_cast %339 : vector<16xf32> to vector<16x1xf32>
    %341 = tpu.reciprocal %340 {approx = true} : vector<16x1xf32> -> vector<16x1xf32>
    %342 = arith.truncf %338 : vector<16x16xf32> to vector<16x16xbf16>
    %cst_116 = arith.constant dense<0.000000e+00> : vector<16x128xf32>
    %343 = tpu.matmul %342, %321, %cst_116 {dimension_numbers = #tpu.dot_dimension_numbers<[1], [0], [0], [1], [0, 0, 1, 1], [], []>} : vector<16x16xbf16>, vector<16x128xbf16>, vector<16x128xf32> -> vector<16x128xf32>
    %344 = vector.broadcast %341 : vector<16x1xf32> to vector<16x128xf32>
    %345 = arith.mulf %343, %344 : vector<16x128xf32>
    %346 = vector.extract_strided_slice %313 {offsets = [0, 128], sizes = [16, 128], strides = [1, 1]} : vector<16x512xbf16> to vector<16x128xbf16>
    %347 = vector.extract_strided_slice %315 {offsets = [0, 5], sizes = [16, 1], strides = [1, 1]} : vector<16x128xf32> to vector<16x1xf32>
    %348 = vector.extract_strided_slice %316 {offsets = [1, 0], sizes = [1, 16], strides = [1, 1]} : vector<128x16xf32> to vector<1x16xf32>
    %349 = vector.broadcast %347 : vector<16x1xf32> to vector<16x16xf32>
    %350 = vector.broadcast %348 : vector<1x16xf32> to vector<16x16xf32>
    %351 = arith.addf %349, %350 : vector<16x16xf32>
    %352 = vector.broadcast %318 : f32 to vector<16x16xf32>
    %353 = arith.mulf %0, %352 : vector<16x16xf32>
    %354 = arith.addf %351, %353 : vector<16x16xf32>
    %cst_117 = arith.constant 2.000000e-01 : f32
    %355 = vector.broadcast %cst_117 : f32 to vector<16x16xf32>
    %356 = arith.mulf %355, %354 : vector<16x16xf32>
    %357 = arith.maximumf %354, %356 : vector<16x16xf32>
    %358 = arith.addf %357, %6 : vector<16x16xf32>
    %cst_118 = arith.constant dense<0xFF800000> : vector<16xf32>
    %359 = vector.multi_reduction <maximumf>, %358, %cst_118 [1] : vector<16x16xf32> to vector<16xf32>
    %360 = vector.shape_cast %359 : vector<16xf32> to vector<16x1xf32>
    %361 = vector.broadcast %360 : vector<16x1xf32> to vector<16x16xf32>
    %362 = arith.subf %358, %361 : vector<16x16xf32>
    %363 = math.exp %362 : vector<16x16xf32>
    %cst_119 = arith.constant dense<0.000000e+00> : vector<16xf32>
    %364 = vector.multi_reduction <add>, %363, %cst_119 [1] : vector<16x16xf32> to vector<16xf32>
    %365 = vector.shape_cast %364 : vector<16xf32> to vector<16x1xf32>
    %366 = tpu.reciprocal %365 {approx = true} : vector<16x1xf32> -> vector<16x1xf32>
    %367 = arith.truncf %363 : vector<16x16xf32> to vector<16x16xbf16>
    %cst_120 = arith.constant dense<0.000000e+00> : vector<16x128xf32>
    %368 = tpu.matmul %367, %346, %cst_120 {dimension_numbers = #tpu.dot_dimension_numbers<[1], [0], [0], [1], [0, 0, 1, 1], [], []>} : vector<16x16xbf16>, vector<16x128xbf16>, vector<16x128xf32> -> vector<16x128xf32>
    %369 = vector.broadcast %366 : vector<16x1xf32> to vector<16x128xf32>
    %370 = arith.mulf %368, %369 : vector<16x128xf32>
    %371 = arith.addf %345, %370 : vector<16x128xf32>
    %372 = vector.extract_strided_slice %313 {offsets = [0, 256], sizes = [16, 128], strides = [1, 1]} : vector<16x512xbf16> to vector<16x128xbf16>
    %373 = vector.extract_strided_slice %315 {offsets = [0, 6], sizes = [16, 1], strides = [1, 1]} : vector<16x128xf32> to vector<16x1xf32>
    %374 = vector.extract_strided_slice %316 {offsets = [2, 0], sizes = [1, 16], strides = [1, 1]} : vector<128x16xf32> to vector<1x16xf32>
    %375 = vector.broadcast %373 : vector<16x1xf32> to vector<16x16xf32>
    %376 = vector.broadcast %374 : vector<1x16xf32> to vector<16x16xf32>
    %377 = arith.addf %375, %376 : vector<16x16xf32>
    %378 = vector.broadcast %319 : f32 to vector<16x16xf32>
    %379 = arith.mulf %0, %378 : vector<16x16xf32>
    %380 = arith.addf %377, %379 : vector<16x16xf32>
    %cst_121 = arith.constant 2.000000e-01 : f32
    %381 = vector.broadcast %cst_121 : f32 to vector<16x16xf32>
    %382 = arith.mulf %381, %380 : vector<16x16xf32>
    %383 = arith.maximumf %380, %382 : vector<16x16xf32>
    %384 = arith.addf %383, %6 : vector<16x16xf32>
    %cst_122 = arith.constant dense<0xFF800000> : vector<16xf32>
    %385 = vector.multi_reduction <maximumf>, %384, %cst_122 [1] : vector<16x16xf32> to vector<16xf32>
    %386 = vector.shape_cast %385 : vector<16xf32> to vector<16x1xf32>
    %387 = vector.broadcast %386 : vector<16x1xf32> to vector<16x16xf32>
    %388 = arith.subf %384, %387 : vector<16x16xf32>
    %389 = math.exp %388 : vector<16x16xf32>
    %cst_123 = arith.constant dense<0.000000e+00> : vector<16xf32>
    %390 = vector.multi_reduction <add>, %389, %cst_123 [1] : vector<16x16xf32> to vector<16xf32>
    %391 = vector.shape_cast %390 : vector<16xf32> to vector<16x1xf32>
    %392 = tpu.reciprocal %391 {approx = true} : vector<16x1xf32> -> vector<16x1xf32>
    %393 = arith.truncf %389 : vector<16x16xf32> to vector<16x16xbf16>
    %cst_124 = arith.constant dense<0.000000e+00> : vector<16x128xf32>
    %394 = tpu.matmul %393, %372, %cst_124 {dimension_numbers = #tpu.dot_dimension_numbers<[1], [0], [0], [1], [0, 0, 1, 1], [], []>} : vector<16x16xbf16>, vector<16x128xbf16>, vector<16x128xf32> -> vector<16x128xf32>
    %395 = vector.broadcast %392 : vector<16x1xf32> to vector<16x128xf32>
    %396 = arith.mulf %394, %395 : vector<16x128xf32>
    %397 = arith.addf %371, %396 : vector<16x128xf32>
    %398 = vector.extract_strided_slice %313 {offsets = [0, 384], sizes = [16, 128], strides = [1, 1]} : vector<16x512xbf16> to vector<16x128xbf16>
    %399 = vector.extract_strided_slice %315 {offsets = [0, 7], sizes = [16, 1], strides = [1, 1]} : vector<16x128xf32> to vector<16x1xf32>
    %400 = vector.extract_strided_slice %316 {offsets = [3, 0], sizes = [1, 16], strides = [1, 1]} : vector<128x16xf32> to vector<1x16xf32>
    %401 = vector.broadcast %399 : vector<16x1xf32> to vector<16x16xf32>
    %402 = vector.broadcast %400 : vector<1x16xf32> to vector<16x16xf32>
    %403 = arith.addf %401, %402 : vector<16x16xf32>
    %404 = vector.broadcast %320 : f32 to vector<16x16xf32>
    %405 = arith.mulf %0, %404 : vector<16x16xf32>
    %406 = arith.addf %403, %405 : vector<16x16xf32>
    %cst_125 = arith.constant 2.000000e-01 : f32
    %407 = vector.broadcast %cst_125 : f32 to vector<16x16xf32>
    %408 = arith.mulf %407, %406 : vector<16x16xf32>
    %409 = arith.maximumf %406, %408 : vector<16x16xf32>
    %410 = arith.addf %409, %6 : vector<16x16xf32>
    %cst_126 = arith.constant dense<0xFF800000> : vector<16xf32>
    %411 = vector.multi_reduction <maximumf>, %410, %cst_126 [1] : vector<16x16xf32> to vector<16xf32>
    %412 = vector.shape_cast %411 : vector<16xf32> to vector<16x1xf32>
    %413 = vector.broadcast %412 : vector<16x1xf32> to vector<16x16xf32>
    %414 = arith.subf %410, %413 : vector<16x16xf32>
    %415 = math.exp %414 : vector<16x16xf32>
    %cst_127 = arith.constant dense<0.000000e+00> : vector<16xf32>
    %416 = vector.multi_reduction <add>, %415, %cst_127 [1] : vector<16x16xf32> to vector<16xf32>
    %417 = vector.shape_cast %416 : vector<16xf32> to vector<16x1xf32>
    %418 = tpu.reciprocal %417 {approx = true} : vector<16x1xf32> -> vector<16x1xf32>
    %419 = arith.truncf %415 : vector<16x16xf32> to vector<16x16xbf16>
    %cst_128 = arith.constant dense<0.000000e+00> : vector<16x128xf32>
    %420 = tpu.matmul %419, %398, %cst_128 {dimension_numbers = #tpu.dot_dimension_numbers<[1], [0], [0], [1], [0, 0, 1, 1], [], []>} : vector<16x16xbf16>, vector<16x128xbf16>, vector<16x128xf32> -> vector<16x128xf32>
    %421 = vector.broadcast %418 : vector<16x1xf32> to vector<16x128xf32>
    %422 = arith.mulf %420, %421 : vector<16x128xf32>
    %423 = arith.addf %397, %422 : vector<16x128xf32>
    %cst_129 = arith.constant 2.500000e-01 : f32
    %424 = vector.broadcast %cst_129 : f32 to vector<16x128xf32>
    %425 = arith.mulf %423, %424 : vector<16x128xf32>
    %c0_130 = arith.constant 0 : index
    %c0_131 = arith.constant 0 : index
    %426 = vector.load %arg14[%c0_130, %c0_131] : memref<1x128xf32, #tpu.memory_space<vmem>>, vector<1x128xf32>
    %427 = vector.broadcast %426 : vector<1x128xf32> to vector<16x128xf32>
    %428 = arith.mulf %425, %427 : vector<16x128xf32>
    %c0_132 = arith.constant 0 : index
    %c0_133 = arith.constant 0 : index
    %429 = vector.load %arg15[%c0_132, %c0_133] : memref<1x128xf32, #tpu.memory_space<vmem>>, vector<1x128xf32>
    %430 = vector.broadcast %429 : vector<1x128xf32> to vector<16x128xf32>
    %431 = arith.addf %428, %430 : vector<16x128xf32>
    %cst_134 = arith.constant 0.000000e+00 : f32
    %432 = vector.broadcast %cst_134 : f32 to vector<16x128xf32>
    %433 = arith.maximumf %431, %432 : vector<16x128xf32>
    %c0_135 = arith.constant 0 : index
    %c0_136 = arith.constant 0 : index
    %434 = vector.load %arg3[%c0_135, %c0_136] : memref<2x16xf32, #tpu.memory_space<vmem>>, vector<2x16xf32>
    %435 = arith.truncf %434 : vector<2x16xf32> to vector<2x16xbf16>
    %436 = arith.truncf %433 : vector<16x128xf32> to vector<16x128xbf16>
    %cst_137 = arith.constant dense<0.000000e+00> : vector<2x128xf32>
    %437 = tpu.matmul %435, %436, %cst_137 {dimension_numbers = #tpu.dot_dimension_numbers<[1], [0], [0], [1], [0, 0, 1, 1], [], []>} : vector<2x16xbf16>, vector<16x128xbf16>, vector<2x128xf32> -> vector<2x128xf32>
    %438 = arith.truncf %437 : vector<2x128xf32> to vector<2x128xbf16>
    %c0_138 = arith.constant 0 : index
    %c0_139 = arith.constant 0 : index
    %439 = vector.load %arg16[%c0_138, %c0_139] : memref<128x128xbf16, #tpu.memory_space<vmem>>, vector<128x128xbf16>
    %cst_140 = arith.constant dense<0.000000e+00> : vector<2x128xf32>
    %440 = tpu.matmul %438, %439, %cst_140 {dimension_numbers = #tpu.dot_dimension_numbers<[1], [0], [0], [1], [0, 0, 1, 1], [], []>} : vector<2x128xbf16>, vector<128x128xbf16>, vector<2x128xf32> -> vector<2x128xf32>
    %c0_141 = arith.constant 0 : index
    %c0_142 = arith.constant 0 : index
    %441 = vector.load %arg17[%c0_141, %c0_142] : memref<1x128xf32, #tpu.memory_space<vmem>>, vector<1x128xf32>
    %442 = vector.broadcast %441 : vector<1x128xf32> to vector<2x128xf32>
    %443 = arith.addf %440, %442 : vector<2x128xf32>
    %cst_143 = arith.constant 0.000000e+00 : f32
    %444 = vector.broadcast %cst_143 : f32 to vector<2x128xf32>
    %445 = arith.maximumf %443, %444 : vector<2x128xf32>
    %446 = arith.truncf %445 : vector<2x128xf32> to vector<2x128xbf16>
    %c0_144 = arith.constant 0 : index
    %c0_145 = arith.constant 0 : index
    %447 = vector.load %arg18[%c0_144, %c0_145] : memref<128x128xbf16, #tpu.memory_space<vmem>>, vector<128x128xbf16>
    %cst_146 = arith.constant dense<0.000000e+00> : vector<2x128xf32>
    %448 = tpu.matmul %446, %447, %cst_146 {dimension_numbers = #tpu.dot_dimension_numbers<[1], [0], [0], [1], [0, 0, 1, 1], [], []>} : vector<2x128xbf16>, vector<128x128xbf16>, vector<2x128xf32> -> vector<2x128xf32>
    %c0_147 = arith.constant 0 : index
    %c0_148 = arith.constant 0 : index
    %449 = vector.load %arg19[%c0_147, %c0_148] : memref<1x128xf32, #tpu.memory_space<vmem>>, vector<1x128xf32>
    %450 = vector.broadcast %449 : vector<1x128xf32> to vector<2x128xf32>
    %451 = arith.addf %448, %450 : vector<2x128xf32>
    %c0_149 = arith.constant 0 : index
    %c0_150 = arith.constant 0 : index
    %452 = vector.load %arg21[%c0_149, %c0_150] : memref<2x128xf32, #tpu.memory_space<vmem>>, vector<2x128xf32>
    tpu.vector_store %arg21[%c0_149, %c0_150], %451 {strides = array<i32>} : memref<2x128xf32, #tpu.memory_space<vmem>>, vector<2x128xf32>,
    return
  }
}

</mosaic_0001>

<bundles_post_ra>
// kernel: tpu_custom_call.1
= control target key start
LH: loop header
LB: loop body
LE: loop exit
PB: predicated region body
PF: predicated region fallthrough
CT: control target
= control target key end

     0   :  { %s10192_s0 = inlined_call_operand.hbm [shape: f32[16,32], index: 0, kind: input, shape index: {}]   ;;  %s10193_s1 = inlined_call_operand.hbm [shape: f32[16,16], index: 1, kind: input, shape index: {}]   ;;  %s10194_s2 = inlined_call_operand.hbm [shape: f32[16,16], index: 2, kind: input, shape index: {}]   ;;  %s10195_s3 = inlined_call_operand.hbm [shape: f32[2,16], index: 3, kind: input, shape index: {}]   ;;  %s10196_s4 = inlined_call_operand.hbm [shape: bf16[32,512], index: 4, kind: input, shape index: {}]   ;;  %s10197_s5 = inlined_call_operand.hbm [shape: bf16[512,128], index: 5, kind: input, shape index: {}]   ;;  %s10198_s6 = inlined_call_operand.hbm [shape: f32[1,512], index: 6, kind: input, shape index: {}]   ;;  %s10199_s7 = inlined_call_operand.hbm [shape: f32[1,512], index: 7, kind: input, shape index: {}]   ;;  %s10200_s8 = inlined_call_operand.hbm [shape: bf16[512,1024], index: 8, kind: input, shape index: {}]   ;;  %s10201_s9 = inlined_call_operand.hbm [shape: bf16[1024,128], index: 9, kind: input, shape index: {}]   ;;  %s10202_s10 = inlined_call_operand.vmem [shape: f32[1,1024], index: 10, kind: input, shape index: {}]   ;;  %s10203_s11 = inlined_call_operand.vmem [shape: f32[1,1024], index: 11, kind: input, shape index: {}]   ;;  %s10204_s12 = inlined_call_operand.hbm [shape: bf16[1024,512], index: 12, kind: input, shape index: {}]   ;;  %s10205_s13 = inlined_call_operand.hbm [shape: bf16[512,128], index: 13, kind: input, shape index: {}]   ;;  %s10206_s14 = inlined_call_operand.vmem [shape: f32[1,128], index: 14, kind: input, shape index: {}]   ;;  %s10207_s15 = inlined_call_operand.vmem [shape: f32[1,128], index: 15, kind: input, shape index: {}]   ;;  %s10208_s16 = inlined_call_operand.hbm [shape: bf16[128,128], index: 16, kind: input, shape index: {}]   ;;  %s10209_s17 = inlined_call_operand.vmem [shape: f32[1,128], index: 17, kind: input, shape index: {}]   ;;  %s10210_s18 = inlined_call_operand.hbm [shape: bf16[128,128], index: 18, kind: input, shape index: {}]   ;;  %s10211_s19 = inlined_call_operand.vmem [shape: f32[1,128], index: 19, kind: input, shape index: {}]   ;;  %s10212_s20 = inlined_call_operand.vmem [shape: f32[12], index: 20, kind: input, shape index: {}]   ;;  %s10213_s21 = inlined_call_operand.hbm [shape: f32[2,128], index: 21, kind: output, shape index: {}]  }
   0x1   :  { %10216 = sst [smem:[#allocation40_spill]] %s10192_s0 }
   0x2   :  { %10217 = sst [smem:[#allocation41_spill]] %s10193_s1 }
   0x3   :  { %10218 = sst [smem:[#allocation42_spill]] %s10194_s2 }
   0x4   :  { %10219 = sst [smem:[#allocation43_spill]] %s10195_s3 }
   0x5   :  { %10220 = sst [smem:[#allocation44_spill]] %s10196_s4 }
   0x6   :  { %10221 = sst [smem:[#allocation45_spill]] %s10197_s5 }
   0x7   :  { %26 = vsyncpa [#allocation5], 0 }
   0x8   :  { %27 = vsyncpa [#allocation9], 0 }
   0x9   :  { %28 = vsyncpa [#allocation12], 0 }
   0xa   :  { %29 = vsyncpa [#allocation15], 0 }
   0xb   :  { %30 = vsyncpa [#allocation18], 0 }
   0xc   :  { %31 = vsyncpa [#allocation21], 0 }
   0xd   :  { %32 = vsyncpa [#allocation24], 0 }
   0xe   :  { %33 = vsyncpa [#allocation27], 0 }
   0xf   :  { %34 = vsyncpa [#allocation7], 0 }
  0x10   :  { %35 = vsyncpa [#allocation6], 0  ;;  %s9589_s2 = smov [#allocation8]   ;;  %s9590_s26 = smov [#allocation11]  }
  0x11   :  { %s53_s25 = sshll.u32 %s9589_s2, 4  ;;  %s78_s27 = sshll.u32 %s9590_s26, 4  ;;  %s54_s25 = int_to_ptr.vmem [resolvable:$true] %s53_s25  ;;  %s79_s27 = int_to_ptr.vmem [resolvable:$true] %s78_s27 }
  0x12   :  { %s9265_s3 = scalar_lea.vmem %s54_s25, 256  ;;  %p9270_p1 = scmp.lt.s32.totalorder %s54_s25, %s54_s25 }
  0x13   :  { %p9266_p0 = scmp.ne.s32.totalorder %s54_s25, %s9265_s3  ;;  %p9271_p2 = scmp.lt.s32.totalorder %s9265_s3, %s9265_s3 }
  0x15   :  { %p9272_p3 = por %p9271_p2, %p9270_p1 }
  0x17   :  { %p9273_p4 = pnand %p9272_p3, %p9266_p0 }
  0x19   :  { %9276 = shalt.err (!%p9273_p4)
}
  0x1a   :  { %s10214_s28 = smov 128   ;;  %s9592_s29 = smov 8  }
  0x1b   :  { %s10222_s30 = sld [smem:[#allocation41_spill]]  ;;  %s9285_s5 = scalar_lea.vmem %s79_s27, 32 }
  0x1c   :  { %p9286_p5 = scmp.ne.s32.totalorder %s79_s27, %s9285_s5  ;;  %p9290_p6 = scmp.lt.s32.totalorder %s79_s27, %s79_s27 }
  0x1d   :  { %p9291_p7 = scmp.lt.s32.totalorder %s9285_s5, %s9285_s5 }
  0x1f   :  { %p9292_p8 = por %p9291_p7, %p9290_p6 }
  0x21   :  { %59 = dma.hbm_to_vmem [thread:$0]  %s10222_s30, 256, %s54_s25, [#allocation9], %s10214_s28, %s10214_s28, %s9592_s29  }
  0x22   :  { %p9293_p9 = pnand %p9292_p8, %p9286_p5 }
  0x24   :  { %9296 = shalt.err (!%p9293_p9)
}
  0x25   :  { %s10223_s1 = sld [smem:[#allocation43_spill]]  ;;  %s9593_s24 = smov [#allocation14]  }
  0x26   :  { %s99_s2 = sshll.u32 %s9593_s24, 4  ;;  %s100_s2 = int_to_ptr.vmem [resolvable:$true] %s99_s2 }
  0x27   :  { %s9305_s26 = scalar_lea.vmem %s100_s2, 4096  ;;  %p9310_p11 = scmp.lt.s32.totalorder %s100_s2, %s100_s2 }
  0x28   :  { %p9306_p10 = scmp.ne.s32.totalorder %s100_s2, %s9305_s26  ;;  %p9311_p12 = scmp.lt.s32.totalorder %s9305_s26, %s9305_s26 }
  0x2a   :  { %p9312_p13 = por %p9311_p12, %p9310_p11 }
  0x2b   :  { %81 = dma.hbm_to_vmem [thread:$0]  %s10223_s1, 32, %s79_s27, [#allocation12]  }
  0x2c   :  { %p9313_p0 = pnand %p9312_p13, %p9306_p10 }
  0x2e   :  { %9316 = shalt.err (!%p9313_p0)
}
  0x2f   :  { %s9594_s25 = smov 64   ;;  %s9595_s3 = smov 4  }
  0x30   :  { %s10224_s30 = sld [smem:[#allocation45_spill]]  ;;  %s9596_s27 = smov [#allocation17]  }
  0x31   :  { %s122_s5 = sshll.u32 %s9596_s27, 4  ;;  %s9597_s22 = smov [#allocation20]   ;;  %s123_s5 = int_to_ptr.vmem [resolvable:$true] %s122_s5 }
  0x32   :  { %s143_s23 = sshll.u32 %s9597_s22, 4  ;;  %s9325_s1 = scalar_lea.vmem %s123_s5, 64  ;;  %s144_s23 = int_to_ptr.vmem [resolvable:$true] %s143_s23 }
  0x33   :  { %p9326_p1 = scmp.ne.s32.totalorder %s123_s5, %s9325_s1  ;;  %p9330_p2 = scmp.lt.s32.totalorder %s123_s5, %s123_s5 }
  0x34   :  { %p9331_p3 = scmp.lt.s32.totalorder %s9325_s1, %s9325_s1 }
  0x36   :  { %105 = dma.hbm_to_vmem [thread:$0]  %s10224_s30, 4096, %s100_s2, [#allocation15], %s9594_s25, %s9594_s25, %s9595_s3  }
  0x37   :  { %p9332_p4 = por %p9331_p3, %p9330_p2 }
  0x39   :  { %p9333_p5 = pnand %p9332_p4, %p9326_p1 }
  0x3b   :  { %9336 = shalt.err (!%p9333_p5)
}
  0x3c   :  { %125 = dma.hbm_to_vmem [thread:$0]  %s10199_s7, 64, %s123_s5, [#allocation18]  }
  0x3d   :  { %s9345_s28 = scalar_lea.vmem %s144_s23, 8192  ;;  %p9350_p7 = scmp.lt.s32.totalorder %s144_s23, %s144_s23 }
  0x3e   :  { %p9346_p6 = scmp.ne.s32.totalorder %s144_s23, %s9345_s28  ;;  %p9351_p8 = scmp.lt.s32.totalorder %s9345_s28, %s9345_s28 }
  0x40   :  { %p9352_p9 = por %p9351_p8, %p9350_p7 }
  0x42   :  { %p9353_p10 = pnand %p9352_p9, %p9346_p6 }
  0x44   :  { %9356 = shalt.err (!%p9353_p10)
}
  0x45   :  { %149 = dma.hbm_to_vmem [thread:$0]  %s10201_s9, 8192, %s144_s23, [#allocation21], %s9594_s25, %s9594_s25, %s9595_s3  }
  0x46   :  { %s9598_s4 = smov [#allocation23]   ;;  %s9599_s27 = smov [#allocation4]  }
  0x47   :  { %s171_s30 = sshll.u32 %s9598_s4, 4  ;;  %s41_s7 = sshll.u32 %s9599_s27, 4  ;;  %s172_s30 = int_to_ptr.vmem [resolvable:$true] %s171_s30  ;;  %s42_s7 = int_to_ptr.vmem [resolvable:$true] %s41_s7 }
  0x48   :  { %s9365_s5 = scalar_lea.vmem %s172_s30, 4096  ;;  %p9370_p12 = scmp.lt.s32.totalorder %s172_s30, %s172_s30 }
  0x49   :  { %p9366_p11 = scmp.ne.s32.totalorder %s172_s30, %s9365_s5  ;;  %p9371_p13 = scmp.lt.s32.totalorder %s9365_s5, %s9365_s5 }
  0x4b   :  { %p9372_p0 = por %p9371_p13, %p9370_p12 }
  0x4d   :  { %p9373_p1 = pnand %p9372_p0, %p9366_p11 }
  0x4f   :  { %9376 = shalt.err (!%p9373_p1)
}
  0x50   :  { %177 = dma.hbm_to_vmem [thread:$0]  %s10205_s13, 4096, %s172_s30, [#allocation24], %s9594_s25, %s9594_s25, %s9595_s3  }
  0x51   :  { %s9385_s9 = scalar_lea.vmem %s42_s7, 256  ;;  %p9390_p3 = scmp.lt.s32.totalorder %s42_s7, %s42_s7 }
  0x52   :  { %p9386_p2 = scmp.ne.s32.totalorder %s42_s7, %s9385_s9  ;;  %p9391_p4 = scmp.lt.s32.totalorder %s9385_s9, %s9385_s9 }
  0x54   :  { %p9392_p5 = por %p9391_p4, %p9390_p3 }
  0x56   :  { %p9393_p6 = pnand %p9392_p5, %p9386_p2 }
  0x58   :  { %9396 = shalt.err (!%p9393_p6)
}
  0x59   :  { %s10225_s23 = smov 128   ;;  %s10226_s26 = sld [smem:[#allocation40_spill]] }
  0x5a   :  { %s9600_s2 = smov [#allocation10]   ;;  %s9601_s4 = smov [#allocation13]  }
  0x5b   :  { %s65_s0 = sshll.u32 %s9600_s2, 4  ;;  %s87_s13 = sshll.u32 %s9601_s4, 4  ;;  %s66_s0 = int_to_ptr.vmem [resolvable:$true] %s65_s0  ;;  %s88_s13 = int_to_ptr.vmem [resolvable:$true] %s87_s13 }
  0x5c   :  { %s9405_s30 = scalar_lea.vmem %s66_s0, 256  ;;  %p9410_p8 = scmp.lt.s32.totalorder %s66_s0, %s66_s0 }
  0x5d   :  { %p9406_p7 = scmp.ne.s32.totalorder %s66_s0, %s9405_s30  ;;  %p9411_p9 = scmp.lt.s32.totalorder %s9405_s30, %s9405_s30 }
  0x5f   :  { %47 = dma.hbm_to_vmem [thread:$0]  %s10226_s26, 256, %s42_s7, [#allocation5], %s10225_s23, %s10225_s23, %s9592_s29  }
  0x60   :  { %p9412_p10 = por %p9411_p9, %p9410_p8 }
  0x62   :  { %p9413_p11 = pnand %p9412_p10, %p9406_p7 }
  0x64   :  { %9416 = shalt.err (!%p9413_p11)
}
  0x65   :  { %s10227_s28 = sld [smem:[#allocation42_spill]]  ;;  %s9425_s7 = scalar_lea.vmem %s88_s13, 1024 }
  0x66   :  { %p9426_p12 = scmp.ne.s32.totalorder %s88_s13, %s9425_s7  ;;  %p9430_p13 = scmp.lt.s32.totalorder %s88_s13, %s88_s13 }
  0x67   :  { %p9431_p0 = scmp.lt.s32.totalorder %s9425_s7, %s9425_s7 }
  0x69   :  { %p9432_p1 = por %p9431_p0, %p9430_p13 }
  0x6b   :  { %71 = dma.hbm_to_vmem [thread:$0]  %s10227_s28, 256, %s66_s0, [#allocation9], %s10225_s23, %s10225_s23, %s9592_s29  }
  0x6c   :  { %p9433_p2 = pnand %p9432_p1, %p9426_p12 }
  0x6e   :  { %9436 = shalt.err (!%p9433_p2)
}
  0x6f   :  { %s9602_s22 = smov 256   ;;  %s9603_s9 = smov 16  }
  0x70   :  { %s10228_s26 = sld [smem:[#allocation44_spill]]  ;;  %s9604_s2 = smov [#allocation16]  }
  0x71   :  { %s112_s4 = sshll.u32 %s9604_s2, 4  ;;  %s9605_s29 = smov [#allocation19]   ;;  %s113_s4 = int_to_ptr.vmem [resolvable:$true] %s112_s4 }
  0x72   :  { %s131_s23 = sshll.u32 %s9605_s29, 4  ;;  %s9445_s0 = scalar_lea.vmem %s113_s4, 64  ;;  %s132_s23 = int_to_ptr.vmem [resolvable:$true] %s131_s23 }
  0x73   :  { %p9446_p3 = scmp.ne.s32.totalorder %s113_s4, %s9445_s0  ;;  %p9450_p4 = scmp.lt.s32.totalorder %s113_s4, %s113_s4 }
  0x74   :  { %p9451_p5 = scmp.lt.s32.totalorder %s9445_s0, %s9445_s0 }
  0x76   :  { %93 = dma.hbm_to_vmem [thread:$0]  %s10228_s26, 1024, %s88_s13, [#allocation12], %s9602_s22, %s9602_s22, %s9603_s9  }
  0x77   :  { %p9452_p6 = por %p9451_p5, %p9450_p4 }
  0x79   :  { %p9453_p7 = pnand %p9452_p6, %p9446_p3 }
  0x7b   :  { %9456 = shalt.err (!%p9453_p7)
}
  0x7c   :  { %115 = dma.hbm_to_vmem [thread:$0]  %s10198_s6, 64, %s113_s4, [#allocation15]  }
  0x7d   :  { %s9465_s5 = scalar_lea.vmem %s132_s23, 32768  ;;  %p9470_p9 = scmp.lt.s32.totalorder %s132_s23, %s132_s23 }
  0x7e   :  { %p9466_p8 = scmp.ne.s32.totalorder %s132_s23, %s9465_s5  ;;  %p9471_p10 = scmp.lt.s32.totalorder %s9465_s5, %s9465_s5 }
  0x80   :  { %p9472_p11 = por %p9471_p10, %p9470_p9 }
  0x82   :  { %p9473_p12 = pnand %p9472_p11, %p9466_p8 }
  0x84   :  { %9476 = shalt.err (!%p9473_p12)
}
  0x85   :  { %s9606_s13 = smov 512   ;;  %s9607_s28 = smov 32  }
  0x86   :  { %137 = dma.hbm_to_vmem [thread:$0]  %s10200_s8, 32768, %s132_s23, [#allocation18], %s9606_s13, %s9606_s13, %s9607_s28  }
  0x87   :  { %s9608_s24 = smov [#allocation22]   ;;  %s9609_s2 = smov [#allocation25]  }
  0x88   :  { %s159_s26 = sshll.u32 %s9608_s24, 4  ;;  %s187_s29 = sshll.u32 %s9609_s2, 4  ;;  %s160_s26 = int_to_ptr.vmem [resolvable:$true] %s159_s26  ;;  %s188_s29 = int_to_ptr.vmem [resolvable:$true] %s187_s29 }
  0x89   :  { %s9485_s6 = scalar_lea.vmem %s160_s26, 32768  ;;  %p9490_p0 = scmp.lt.s32.totalorder %s160_s26, %s160_s26 }
  0x8a   :  { %p9486_p13 = scmp.ne.s32.totalorder %s160_s26, %s9485_s6  ;;  %p9491_p1 = scmp.lt.s32.totalorder %s9485_s6, %s9485_s6 }
  0x8c   :  { %p9492_p2 = por %p9491_p1, %p9490_p0 }
  0x8e   :  { %p9493_p3 = pnand %p9492_p2, %p9486_p13 }
  0x90   :  { %9496 = shalt.err (!%p9493_p3)
}
  0x91   :  { %165 = dma.hbm_to_vmem [thread:$0]  %s10204_s12, 32768, %s160_s26, [#allocation21], %s9602_s22, %s9602_s22, %s9603_s9  }
  0x92   :  { %s9505_s8 = scalar_lea.vmem %s188_s29, 1024  ;;  %p9510_p5 = scmp.lt.s32.totalorder %s188_s29, %s188_s29 }
  0x93   :  { %p9506_p4 = scmp.ne.s32.totalorder %s188_s29, %s9505_s8  ;;  %p9511_p6 = scmp.lt.s32.totalorder %s9505_s8, %s9505_s8 }
  0x95   :  { %p9512_p7 = por %p9511_p6, %p9510_p5 }
  0x97   :  { %p9513_p8 = pnand %p9512_p7, %p9506_p4 }
  0x99   :  { %9516 = shalt.err (!%p9513_p8)
}
  0x9a   :  { %193 = dma.hbm_to_vmem [thread:$0]  %s10208_s16, 1024, %s188_s29, [#allocation24], %s9594_s25, %s9594_s25, %s9595_s3  }
  0x9b   :  { %s9610_s27 = smov [#allocation26]   ;;  %s216_s12 = sshll.u32 %s10212_s20, 4  ;;  %s217_s12 = int_to_ptr.vmem [resolvable:$true] %s216_s12 }
  0x9c   :  { %s201_s5 = sshll.u32 %s9610_s27, 4  ;;  %s202_s5 = int_to_ptr.vmem [resolvable:$true] %s201_s5 }
  0x9d   :  { %s9525_s22 = scalar_lea.vmem %s202_s5, 1024  ;;  %p9530_p10 = scmp.lt.s32.totalorder %s202_s5, %s202_s5 }
  0x9e   :  { %p9526_p9 = scmp.ne.s32.totalorder %s202_s5, %s9525_s22  ;;  %p9531_p11 = scmp.lt.s32.totalorder %s9525_s22, %s9525_s22 }
  0xa0   :  { %p9532_p12 = por %p9531_p11, %p9530_p10 }
  0xa2   :  { %p9533_p13 = pnand %p9532_p12, %p9526_p9 }
  0xa4   :  { %9536 = shalt.err (!%p9533_p13)
}
  0xa5   :  { %207 = dma.hbm_to_vmem [thread:$0]  %s10210_s18, 1024, %s202_s5, [#allocation27], %s9594_s25, %s9594_s25, %s9595_s3  }
  0xa6   :  { %s9537_s7 = scalar_lea.vmem %s217_s12, 16  ;;  %p9542_p1 = scmp.lt.s32.totalorder %s217_s12, %s217_s12 }
  0xa7   :  { %p9538_p0 = scmp.ne.s32.totalorder %s217_s12, %s9537_s7  ;;  %p9543_p2 = scmp.lt.s32.totalorder %s9537_s7, %s9537_s7 }
  0xa9   :  { %p9544_p3 = por %p9543_p2, %p9542_p1 }
  0xab   :  { %p9545_p4 = pnand %p9544_p3, %p9538_p0 }
  0xad   :  { %9548 = shalt.err (!%p9545_p4)
}
  0xae   :  { %s9611_s20 = smov [#allocation28]  }
  0xaf   :  { %219 = dma.vmem_to_smem %s217_s12, 16, %s9611_s20, [#allocation7]  }
  0xb0   :  { %9569 = dma.done.wait [#allocation5], 256  }
  0xb1   :  { %9570 = vsyncadd [#allocation5], 4294967040 }
  0xb2   :  { %9571 = dma.done.wait [#allocation9], 512  }
  0xb3   :  { %9572 = vsyncadd [#allocation9], 4294966784 }
  0xb4   :  { %9573 = dma.done.wait [#allocation12], 1056  }
  0xb5   :  { %9574 = vsyncadd [#allocation12], 4294966240 }
  0xb6   :  { %9575 = dma.done.wait [#allocation15], 4160  }
  0xb7   :  { %9576 = vsyncadd [#allocation15], 4294963136 }
  0xb8   :  { %9577 = dma.done.wait [#allocation18], 32832  }
  0xb9   :  { %9578 = vsyncadd [#allocation18], 4294934464 }
  0xba   :  { %9579 = dma.done.wait [#allocation21], 40960  }
  0xbb   :  { %9580 = vsyncadd [#allocation21], 4294926336 }
  0xbc   :  { %9581 = dma.done.wait [#allocation24], 5120  }
  0xbd   :  { %9582 = vsyncadd [#allocation24], 4294962176 }
  0xbe   :  { %9583 = dma.done.wait [#allocation27], 1024  }
  0xbf   :  { %9584 = vsyncadd [#allocation27], 4294966272 }
  0xc0   :  { %9585 = dma.done.wait [#allocation7], 16  }
  0xc1   :  { %9586 = vsyncadd [#allocation7], 4294967280 }
  0xc2   :  { %265 = sfence }
  0xc3   :  { %v8609_v0 = vld [vmem:[#allocation13 + $0x24] ss:$16 sps:$4 sm:$0xff]   ;;  %v8611_v1 = vld [vmem:[#allocation13 + $0x2c] ss:$16 sps:$4 sm:$0xff]   ;;  %v9612_v2 = vmov 0   ;;  %vm326_vm0 = vcmask 261120  }
  0xc4   :  { %362 = vmatprep.mubr.bf16.mxu0 %v9612_v2  ;;  %405 = vmatprep.mubr.bf16.mxu1 %v9612_v2  ;;  %v8613_v3 = vld [vmem:[#allocation13 + $0x20] ss:$16 sps:$4 sm:$0xff]   ;;  %v8614_v4 = vld [vmem:[#allocation13 + $0x28] ss:$16 sps:$4 sm:$0xff]   ;;  %v8615_v5 = vld [vmem:[#allocation13 + $0x4] ss:$16 sps:$4 sm:$0xff]  }
  0xc5   :  { %342 = vmatprep.subr.bf16.mxu0 %v8609_v0  ;;  %385 = vmatprep.subr.bf16.mxu1 %v8611_v1  ;;  %v8617_v6 = vld [vmem:[#allocation13 + $0xc] ss:$16 sps:$4 sm:$0xff]   ;;  %v8619_v7 = vld [vmem:[#allocation13] ss:$16 sps:$4 sm:$0xff]   ;;  %v8620_v8 = vld [vmem:[#allocation13 + $0x8] ss:$16 sps:$4 sm:$0xff]  }
  0xc6   :  { %343 = vmatpush1.bf16.msra.mxu0 %v8613_v3  ;;  %386 = vmatpush1.bf16.msra.mxu1 %v8614_v4  ;;  %v275_v9 = vld [vmem:[#allocation4] sm:$0xff]  ;;  %v276_v10 = vld [vmem:[#allocation4 + $0x8] sm:$0xff]  ;;  %v8633_v24 = vld [vmem:[#allocation14 + $0x60] sm:$0xff]   ;;  %v9613_v44 = vmov 0.0   ;;  %v9614_v57 = vmov 5   ;;  %v9615_v58 = vmov 4  }
  0xc7   :  { %344 = vmatprep.subr.bf16.mxu0 %v8615_v5  ;;  %387 = vmatprep.subr.bf16.mxu1 %v8617_v6  ;;  %v8621_v11 = vld [vmem:[#allocation14 + $0x78] sm:$0xff]   ;;  %v277_v12 = vpack.c.bf16 %v276_v10, %v275_v9  ;;  %v8625_v16 = vld [vmem:[#allocation14 + $0x70] sm:$0xff]   ;;  %v8629_v20 = vld [vmem:[#allocation14 + $0x68] sm:$0xff]   ;;  %v9616_v9 = vmov 7   ;;  %v9617_v10 = vmov 6   ;;  %s7536_s18 = sld [smem:[#allocation28 + $0x1]] }
  0xc8   :  { %v8622_v13 = vld [vmem:[#allocation14 + $0xf8] sm:$0xff]   ;;  %v8626_v17 = vld [vmem:[#allocation14 + $0xf0] sm:$0xff]   ;;  %v8630_v21 = vld [vmem:[#allocation14 + $0xe8] sm:$0xff]   ;;  %8587 = vset.pattern.permute.xlu1 %v9614_v57  ;;  %8586 = vset.pattern.permute.xlu0 %v9615_v58  ;;  %s790_s25 = sld [smem:[#allocation28]]  ;;  %vm821_vm3 = vcmask 130048   ;;  %vm9619_vm4 = vmmov 0  }
  0xc9   :  { %v8623_v14 = vld [vmem:[#allocation14 + $0x38] sm:$0xff]   ;;  %v8627_v18 = vld [vmem:[#allocation14 + $0x30] sm:$0xff]   ;;  %v8631_v22 = vld [vmem:[#allocation14 + $0x28] sm:$0xff]   ;;  %s9828_s3 = sld [smem:[#allocation28 + $0x2]]  ;;  %s9620_s6 = smov [#allocation29]  }
  0xca   :  { %345 = vmatpush1.bf16.msra.mxu0 %v8619_v7  ;;  %388 = vmatpush1.bf16.msra.mxu1 %v8620_v8  ;;  %v8624_v15 = vld [vmem:[#allocation14 + $0xb8] sm:$0xff]   ;;  %v8628_v19 = vld [vmem:[#allocation14 + $0xb0] sm:$0xff]   ;;  %v8632_v23 = vld [vmem:[#allocation14 + $0xa8] sm:$0xff]   ;;  %s9830_s1 = sld [smem:[#allocation28 + $0x3]]  ;;  %s7477_s4 = sshll.u32 %s9620_s6, 4  ;;  %s7478_s4 = int_to_ptr.vmem [resolvable:$true] %s7477_s4 }
  0xcb   :  { %8248 = vmatprep.subr.bf16.mxu0 %v8621_v11  ;;  %8270 = vmatprep.subr.bf16.mxu1 %v8622_v13  ;;  %v8634_v25 = vld [vmem:[#allocation14 + $0xe0] sm:$0xff]   ;;  %v8637_v28 = vld [vmem:[#allocation14 + $0x58] sm:$0xff]   ;;  %v8641_v32 = vld [vmem:[#allocation14 + $0x50] sm:$0xff]   ;;  %s7884_s24 = sld [smem:[#allocation28 + $0x5]]  ;;  %p9554_p6 = scmp.lt.s32.totalorder %s7478_s4, %s7478_s4 }
  0xcc   :  { %v8635_v26 = vld [vmem:[#allocation14 + $0x20] sm:$0xff]   ;;  %v8638_v29 = vld [vmem:[#allocation14 + $0xd8] sm:$0xff]   ;;  %v8642_v33 = vld [vmem:[#allocation14 + $0xd0] sm:$0xff]   ;;  %s7883_s26 = sld [smem:[#allocation28 + $0x4]] }
  0xcd   :  { %7502 = vmatmul.mubr.msk.bf16.vlgmr.msra.gmra.mxu0 %vm326_vm0, %v277_v12  ;;  %7503 = vmatmul.mubr.msk.bf16.vlgmr.msra.gmra.mxu1 %vm326_vm0, %v277_v12  ;;  %v8636_v27 = vld [vmem:[#allocation14 + $0xa0] sm:$0xff]   ;;  %v8639_v30 = vld [vmem:[#allocation14 + $0x18] sm:$0xff]   ;;  %v8643_v34 = vld [vmem:[#allocation14 + $0x10] sm:$0xff]   ;;  %s7885_s2 = sld [smem:[#allocation28 + $0x6]] }
  0xce   :  { %8249 = vmatpush3.bf16.msra.mxu0 %v8623_v14  ;;  %8271 = vmatpush3.bf16.msra.mxu1 %v8624_v15  ;;  %v8640_v31 = vld [vmem:[#allocation14 + $0x98] sm:$0xff]   ;;  %v8644_v35 = vld [vmem:[#allocation14 + $0x90] sm:$0xff]   ;;  %v8645_v36 = vld [vmem:[#allocation14 + $0x48] sm:$0xff]   ;;  %v804_v14 = vlaneseq  ;;  %s9958_s29 = sld [smem:[#allocation28 + $0x7]] }
  0xcf   :  { %8250 = vmatprep.subr.bf16.mxu0 %v8625_v16  ;;  %8272 = vmatprep.subr.bf16.mxu1 %v8626_v17  ;;  %v8646_v37 = vld [vmem:[#allocation14 + $0xc8] sm:$0xff]   ;;  %v8649_v40 = vld [vmem:[#allocation14 + $0x40] sm:$0xff]  }
  0xd0   :  { %v8647_v38 = vld [vmem:[#allocation14 + $0x8] sm:$0xff]   ;;  %v8650_v41 = vld [vmem:[#allocation14 + $0xc0] sm:$0xff]   ;;  %v805_v17 = vshrl.u32 %v804_v14, 7 }
  0xd1   :  { %v8648_v39 = vld [vmem:[#allocation14 + $0x88] sm:$0xff]   ;;  %v8651_v42 = vld [vmem:[#allocation14] sm:$0xff]  }
  0xd2   :  { %8251 = vmatpush3.bf16.msra.mxu0 %v8627_v18  ;;  %8273 = vmatpush3.bf16.msra.mxu1 %v8628_v19  ;;  %v8652_v43 = vld [vmem:[#allocation14 + $0x80] sm:$0xff]  }
  0xd3   :  { %8252 = vmatprep.subr.bf16.mxu0 %v8629_v20  ;;  %8274 = vmatprep.subr.bf16.mxu1 %v8630_v21  ;;  %v9832_v20 = vsub.s32 0, %v805_v17  ;;  %v9834_v21 = vsub.s32 1, %v805_v17 }
  0xd6   :  { %8253 = vmatpush3.bf16.msra.mxu0 %v8631_v22  ;;  %8275 = vmatpush3.bf16.msra.mxu1 %v8632_v23  ;;  %v9836_v22 = vsub.s32 2, %v805_v17  ;;  %v268_v23 = vld [vmem:[#allocation10 + $0x8] sm:$0xff] }
  0xd7   :  { %8254 = vmatprep.subr.bf16.mxu0 %v8633_v24  ;;  %8276 = vmatprep.subr.bf16.mxu1 %v8634_v25  ;;  %v933_v24 = vstv %s7536_s18  ;;  %v267_v25 = vld [vmem:[#allocation10] sm:$0xff]  ;;  %s10108_s18 = sld [smem:[#allocation28 + $0xa]] }
  0xda   :  { %8255 = vmatpush3.bf16.msra.mxu0 %v8635_v26  ;;  %8277 = vmatpush3.bf16.msra.mxu1 %v8636_v27  ;;  %v810_v26 = vstv %s790_s25  ;;  %v9838_v27 = vsub.s32 3, %v805_v17  ;;  %s10110_s25 = sld [smem:[#allocation28 + $0xb]] }
  0xdb   :  { %8256 = vmatprep.subr.bf16.mxu0 %v8637_v28  ;;  %8278 = vmatprep.subr.bf16.mxu1 %v8638_v29  ;;  %v270_v28 = vld [vmem:[#allocation8 + $0x8] sm:$0xff] }
  0xdc   :  { %vm272_vm1 = vcmp.gt.f32.partialorder %v270_v28, 0.0 }
  0xde   :  { %8257 = vmatpush3.bf16.msra.mxu0 %v8639_v30  ;;  %8279 = vmatpush3.bf16.msra.mxu1 %v8640_v31  ;;  %v935_v30 = vmul.f32 %v933_v24, %v268_v23  ;;  %v811_v31 = vmul.f32 %v810_v26, %v267_v25 }
  0xdf   :  { %8258 = vmatprep.subr.bf16.mxu0 %v8641_v32  ;;  %8280 = vmatprep.subr.bf16.mxu1 %v8642_v33  ;;  %v934_v32 = vmul.f32 %v933_v24, %v267_v25  ;;  %v812_v33 = vmul.f32 %v810_v26, %v268_v23 }
  0xe2   :  { %8259 = vmatpush3.bf16.msra.mxu0 %v8643_v34  ;;  %8281 = vmatpush3.bf16.msra.mxu1 %v8644_v35 }
  0xe3   :  { %8260 = vmatprep.subr.bf16.mxu0 %v8645_v36  ;;  %8282 = vmatprep.subr.bf16.mxu1 %v8646_v37  ;;  %v269_v37 = vld [vmem:[#allocation8] sm:$0xff] }
  0xe4   :  { %vm271_vm2 = vcmp.gt.f32.partialorder %v269_v37, 0.0 }
  0xe6   :  { %8261 = vmatpush3.bf16.msra.mxu0 %v8647_v38  ;;  %8283 = vmatpush3.bf16.msra.mxu1 %v8648_v39  ;;  %v1055_v38 = vstv %s9828_s3 }
  0xe7   :  { %8262 = vmatprep.subr.bf16.mxu0 %v8649_v40  ;;  %8284 = vmatprep.subr.bf16.mxu1 %v8650_v41  ;;  %v1177_v40 = vstv %s9830_s1 }
  0xe8   :  { %v1179_v28 = vmul.f32 %v1177_v40, %v268_v23 }
  0xea   :  { %8263 = vmatpush3.bf16.msra.mxu0 %v8651_v42  ;;  %8285 = vmatpush3.bf16.msra.mxu1 %v8652_v43 }
  0xeb   :  { %8460 = vmatprep.subr.bf16.mxu0 %v9613_v44  ;;  %8466 = vmatprep.subr.bf16.mxu1 %v9613_v44 }
 0x18d   :  { %v364_v45 = vpop.f32.mrf.mxu0  ;;  %v407_v46 = vpop.f32.mrf.mxu1 }
 0x18f   :  { %v366_v47 = vpop.f32.mrf.mxu0  ;;  %v409_v48 = vpop.f32.mrf.mxu1 }
 0x191   :  { %v368_v49 = vpop.f32.mrf.mxu0  ;;  %v411_v50 = vpop.f32.mrf.mxu1 }
 0x192   :  { %v416_v55 = vpack.c.bf16 %v368_v49, %v364_v45  ;;  %v9812_v56 = vpack.c.bf16 %v411_v50, %v407_v46 }
 0x193   :  { %v370_v51 = vpop.f32.mrf.mxu0  ;;  %v413_v52 = vpop.f32.mrf.mxu1 }
 0x194   :  { %v417_v53 = vpack.c.bf16 %v370_v51, %v366_v47  ;;  %v9810_v54 = vpack.c.bf16 %v413_v52, %v409_v48  ;;  %v1056_v48 = vmul.f32 %v1055_v38, %v267_v25 }
 0x196   :  { %708 = vmatprep.mubr.bf16.mxu0 %v417_v53  ;;  %749 = vmatprep.mubr.bf16.mxu1 %v9810_v54 }
 0x197   :  { %709 = vmatmul.mubr.bf16.vlgmr.msra.gmra.mxu0 %v416_v55  ;;  %750 = vmatmul.mubr.bf16.vlgmr.msra.gmra.mxu1 %v9812_v56 }
 0x198   :  { %8461 = vmatpush3.bf16.msra.mxu0 %v416_v55  ;;  %8467 = vmatpush3.bf16.msra.mxu1 %v417_v53  ;;  %v9618_v53 = vmov -1e+30  }
 0x199   :  { %8478 = vmatprep.subr.bf16.mxu1 %v9613_v44  ;;  %8472 = vmatprep.subr.bf16.mxu0 %v9613_v44  ;;  %v9846_v55 = vsel %vm272_vm1, 0.0, %v9618_v53 }
 0x19a   :  { %8468 = vmatprep.mubr.msk.bf16.mxu1 %vm9619_vm4, %v9613_v44  ;;  %8462 = vmatprep.mubr.msk.bf16.mxu0 %vm9619_vm4, %v9613_v44 }
 0x257   :  { %v8264_v59 = vpop.f32.mrf.mxu0  ;;  %v8286_v60 = vpop.f32.mrf.mxu1 }
 0x259   :  { %v8265_v61 = vpop.f32.mrf.mxu0  ;;  %v8287_v62 = vpop.f32.mrf.mxu1 }
 0x25a   :  { %v8266_v63 = vadd.f32 %v8265_v61, %v8264_v59  ;;  %v8288_v0 = vadd.f32 %v8287_v62, %v8286_v60 }
 0x25b   :  { %v8267_v1 = vpop.f32.mrf.mxu0  ;;  %v8289_v3 = vpop.f32.mrf.mxu1 }
 0x25c   :  { %v752_v4 = vadd.f32 %v8288_v0, %v8266_v63  ;;  %v9848_v63 = vsel %vm271_vm2, 0.0, %v9618_v53 }
 0x25d   :  { %v8268_v5 = vpop.f32.mrf.mxu0  ;;  %v8290_v6 = vpop.f32.mrf.mxu1 }
 0x25e   :  { %920 = vperm.xlu1 %8587, %v752_v4   ;;  %796 = vperm.xlu0 %8586, %v752_v4   ;;  %v8269_v7 = vadd.f32 %v8268_v5, %v8267_v1  ;;  %v8291_v8 = vadd.f32 %v8290_v6, %v8289_v3  ;;  %v1178_v1 = vmul.f32 %v1177_v40, %v267_v25 }
 0x260   :  { %v755_v11 = vadd.f32 %v8291_v8, %v8269_v7 }
 0x262   :  { %8589 = vset.pattern.permute.xlu1 %v9616_v9  ;;  %8588 = vset.pattern.permute.xlu0 %v9617_v10 }
 0x263   :  { %1164 = vperm.xlu1 %8589, %v752_v4   ;;  %1042 = vperm.xlu0 %8588, %v752_v4  }
 0x267   :  { %8591 = vset.pattern.permute.xlu1 %v9614_v57  ;;  %8590 = vset.pattern.permute.xlu0 %v9615_v58 }
 0x268   :  { %924 = vperm.xlu1 %8591, %v755_v11   ;;  %801 = vperm.xlu0 %8590, %v755_v11  }
 0x26c   :  { %8592 = vset.pattern.permute.xlu1 %v9617_v10  ;;  %8593 = vset.pattern.permute.xlu0 %v9616_v9 }
 0x26d   :  { %1046 = vperm.xlu1 %8592, %v755_v11   ;;  %1168 = vperm.xlu0 %8593, %v755_v11  }
 0x271   :  { %8596 = vset.pattern.permute.xlu0 %v9615_v58 }
 0x296   :  { %758 = vxpose.xlu1.b32.start [1/2] (short) (narrow) %v752_v4, 8 }
 0x29a   :  { %759 = vxpose.xlu1.b32.end [2/2] (short) (narrow) %v755_v11, 8 }
 0x2b8   :  { %8594 = vset.pattern.permute.xlu1 %v9615_v58 }
 0x2d9   :  { %v921_v12 = vpop.permute.xlu1 %920  ;;  %v797_v15 = vpop.permute.xlu0 %796 }
 0x2de   :  { %v1165_v13 = vpop.permute.xlu1 %1164  ;;  %v1043_v18 = vpop.permute.xlu0 %1042 }
 0x2e3   :  { %v925_v16 = vpop.permute.xlu1 %924  ;;  %v802_v39 = vpop.permute.xlu0 %801 }
 0x2e8   :  { %v1047_v19 = vpop.permute.xlu1 %1046  ;;  %v1169_v24 = vpop.permute.xlu0 %1168 }
 0x312   :  { %v774_v29 = vpop.trf.xlu1 }
 0x313   :  { %v807_v34 = vrot.slane %v774_v29, %v9832_v20  ;;  %v930_v35 = vrot.slane %v774_v29, %v9834_v21  ;;  %v1052_v36 = vrot.slane %v774_v29, %v9836_v22  ;;  %v1174_v47 = vrot.slane %v774_v29, %v9838_v27 }
 0x315   :  { %v808_v41 = vadd.f32 %v807_v34, %v797_v15  ;;  %v809_v42 = vadd.f32 %v807_v34, %v802_v39  ;;  %v931_v43 = vadd.f32 %v930_v35, %v921_v12  ;;  %v932_v45 = vadd.f32 %v930_v35, %v925_v16 }
 0x316   :  { %v1053_v46 = vadd.f32 %v1052_v36, %v1043_v18  ;;  %v1175_v62 = vadd.f32 %v1174_v47, %v1165_v13  ;;  %v1054_v11 = vadd.f32 %v1052_v36, %v1047_v19  ;;  %v1057_v15 = vmul.f32 %v1055_v38, %v268_v23 }
 0x317   :  { %v937_v49 = vadd.f32 %v935_v30, %v932_v45  ;;  %v813_v50 = vadd.f32 %v811_v31, %v808_v41  ;;  %v936_v51 = vadd.f32 %v934_v32, %v931_v43  ;;  %v814_v52 = vadd.f32 %v812_v33, %v809_v42 }
 0x318   :  { %v1058_v0 = vadd.f32 %v1056_v48, %v1053_v46  ;;  %v1180_v14 = vadd.f32 %v1178_v1, %v1175_v62  ;;  %v1176_v25 = vadd.f32 %v1174_v47, %v1169_v24  ;;  %v1059_v26 = vadd.f32 %v1057_v15, %v1054_v11 }
 0x319   :  { %v939_v59 = vmul.f32 0.2, %v937_v49  ;;  %v815_v60 = vmul.f32 0.2, %v813_v50  ;;  %v938_v61 = vmul.f32 0.2, %v936_v51 }
 0x31a   :  { %v816_v6 = vmul.f32 0.2, %v814_v52  ;;  %v1060_v12 = vmul.f32 0.2, %v1058_v0  ;;  %v1182_v31 = vmul.f32 0.2, %v1180_v14  ;;  %v1181_v32 = vadd.f32 %v1179_v28, %v1176_v25 }
 0x31b   :  { %v941_v3 = vmax.f32 %v937_v49, %v939_v59  ;;  %v817_v4 = vmax.f32 %v813_v50, %v815_v60  ;;  %v940_v5 = vmax.f32 %v936_v51, %v938_v61  ;;  %v1061_v36 = vmul.f32 0.2, %v1059_v26 }
 0x31c   :  { %v818_v18 = vmax.f32 %v814_v52, %v816_v6  ;;  %v1062_v30 = vmax.f32 %v1058_v0, %v1060_v12  ;;  %v1184_v35 = vmax.f32 %v1180_v14, %v1182_v31  ;;  %v1183_v39 = vmul.f32 0.2, %v1181_v32 }
 0x31d   :  { %v943_v7 = vadd.f32 %v941_v3, %v9846_v55  ;;  %v819_v8 = vadd.f32 %v817_v4, %v9848_v63  ;;  %v942_v17 = vadd.f32 %v940_v5, %v9848_v63  ;;  %v1063_v23 = vmax.f32 %v1059_v26, %v1061_v36 }
 0x31e   :  { %v820_v19 = vadd.f32 %v818_v18, %v9846_v55  ;;  %v1064_v34 = vadd.f32 %v1062_v30, %v9848_v63  ;;  %v1186_v38 = vadd.f32 %v1184_v35, %v9848_v63  ;;  %v1185_v42 = vmax.f32 %v1181_v32, %v1183_v39  ;;  %v1349_v39 = vld [vmem:[#allocation19 + $0x1e0] sm:$0xff] }
 0x31f   :  { %v947_v16 = vsel %vm821_vm3, %v943_v7, -inf  ;;  %v822_v13 = vsel %vm821_vm3, %v819_v8, -inf  ;;  %v944_v29 = vsel %vm821_vm3, %v942_v17, -inf  ;;  %v1065_v41 = vadd.f32 %v1063_v23, %v9846_v55  ;;  %v1345_v23 = vld [vmem:[#allocation19 + $0x1c0] sm:$0xff] }
 0x320   :  { %948 = vmax.xlane.f32.xlu1 %v947_v16  ;;  %823 = vmax.xlane.f32.xlu0 %v822_v13  ;;  %v825_v33 = vsel %vm821_vm3, %v820_v19, -inf  ;;  %v1066_v37 = vsel %vm821_vm3, %v1064_v34, -inf  ;;  %v1188_v40 = vsel %vm821_vm3, %v1186_v38, -inf  ;;  %v1187_v45 = vadd.f32 %v1185_v42, %v9846_v55  ;;  %v1337_v42 = vld [vmem:[#allocation19 + $0x180] sm:$0xff] }
 0x321   :  { %v1069_v43 = vsel %vm821_vm3, %v1065_v41, -inf }
 0x322   :  { %v1191_v46 = vsel %vm821_vm3, %v1187_v45, -inf }
 0x324   :  { %945 = vmax.xlane.f32.xlu0 %v944_v29 }
 0x328   :  { %826 = vmax.xlane.f32.xlu0 %v825_v33 }
 0x32c   :  { %1067 = vmax.xlane.f32.xlu0 %v1066_v37 }
 0x330   :  { %1189 = vmax.xlane.f32.xlu0 %v1188_v40  ;;  %v7619_v40 = vcombine.low %v1345_v23, %v1349_v39 }
 0x334   :  { %1070 = vmax.xlane.f32.xlu0 %v1069_v43  ;;  %v1341_v43 = vld [vmem:[#allocation19 + $0x1a0] sm:$0xff] }
 0x338   :  { %1192 = vmax.xlane.f32.xlu0 %v1191_v46  ;;  %v7612_v46 = vcombine.high %v1337_v42, %v1341_v43 }
 0x3a9   :  { %v949_v47 = vpop.xlane.xlu1 %948  ;;  %v824_v48 = vpop.xlane.xlu0 %823 }
 0x3aa   :  { %v951_v49 = vsub.f32 %v943_v7, %v949_v47  ;;  %v828_v50 = vsub.f32 %v819_v8, %v824_v48  ;;  %v1329_v47 = vld [vmem:[#allocation19 + $0x140] sm:$0xff] }
 0x3ab   :  { %v1333_v48 = vld [vmem:[#allocation19 + $0x160] sm:$0xff] }
 0x3ac   :  { %v830_v51 = vmul.f32 1.442695, %v828_v50  ;;  %v954_v52 = vmul.f32 1.442695, %v951_v49  ;;  %v7604_v49 = vcombine.high %v1329_v47, %v1333_v48  ;;  %v1321_v50 = vld [vmem:[#allocation19 + $0x100] sm:$0xff] }
 0x3ad   :  { %v946_v53 = vpop.xlane.xlu0 %945 }
 0x3ae   :  { %v950_v59 = vsub.f32 %v942_v17, %v946_v53  ;;  %9155 = vpow2.f32 %v830_v51  ;;  %v1325_v51 = vld [vmem:[#allocation19 + $0x120] sm:$0xff] }
 0x3af   :  { %9157 = vpow2.f32 %v954_v52  ;;  %v1473_v52 = vld [vmem:[#allocation19 + $0x5c0] sm:$0xff] }
 0x3b0   :  { %v952_v60 = vmul.f32 1.442695, %v950_v59  ;;  %v1477_v53 = vld [vmem:[#allocation19 + $0x5e0] sm:$0xff]  ;;  %v7603_v59 = vcombine.low %v1329_v47, %v1333_v48 }
 0x3b1   :  { %v827_v61 = vpop.xlane.xlu0 %826  ;;  %v1437_v47 = vld [vmem:[#allocation19 + $0x4a0] sm:$0xff] }
 0x3b2   :  { %9159 = vpow2.f32 %v952_v60  ;;  %v829_v62 = vsub.f32 %v820_v19, %v827_v61  ;;  %v7747_v60 = vcombine.low %v1473_v52, %v1477_v53  ;;  %v7748_v61 = vcombine.high %v1473_v52, %v1477_v53  ;;  %v1397_v52 = vld [vmem:[#allocation19 + $0x360] sm:$0xff] }
 0x3b3   :  { %v1425_v53 = vld [vmem:[#allocation19 + $0x440] sm:$0xff] }
 0x3b4   :  { %v832_v0 = vmul.f32 1.442695, %v829_v62  ;;  %v1465_v62 = vld [vmem:[#allocation19 + $0x580] sm:$0xff] }
 0x3b5   :  { %v1068_v1 = vpop.xlane.xlu0 %1067 }
 0x3b6   :  { %9161 = vpow2.f32 %v832_v0  ;;  %v1072_v3 = vsub.f32 %v1064_v34, %v1068_v1  ;;  %v1469_v0 = vld [vmem:[#allocation19 + $0x5a0] sm:$0xff]  ;;  %v7596_v1 = vcombine.high %v1321_v50, %v1325_v51 }
 0x3b8   :  { %v1074_v4 = vmul.f32 1.442695, %v1072_v3  ;;  %v7740_v3 = vcombine.high %v1465_v62, %v1469_v0 }
 0x3b9   :  { %v1190_v5 = vpop.xlane.xlu0 %1189 }
 0x3ba   :  { %9163 = vpow2.f32 %v1074_v4  ;;  %v1194_v6 = vsub.f32 %v1186_v38, %v1190_v5  ;;  %v1457_v4 = vld [vmem:[#allocation19 + $0x540] sm:$0xff] }
 0x3bb   :  { %v9156_v7 = vpop.eup %9155  ;;  %v1313_v5 = vld [vmem:[#allocation19 + $0xc0] sm:$0xff] }
 0x3bc   :  { %v1196_v8 = vmul.f32 1.442695, %v1194_v6  ;;  %v834_v11 = vsel %vm821_vm3, %v9156_v7, 0.0  ;;  %v9158_v14 = vpop.eup %9157  ;;  %v1317_v6 = vld [vmem:[#allocation19 + $0xe0] sm:$0xff] }
 0x3bd   :  { %v1071_v12 = vpop.xlane.xlu0 %1070  ;;  %835 = vadd.xlane.f32.xlu0 %v834_v11  ;;  %v959_v34 = vsel %vm821_vm3, %v9158_v14, 0.0  ;;  %v7595_v11 = vcombine.low %v1321_v50, %v1325_v51  ;;  %v1393_v51 = vld [vmem:[#allocation19 + $0x340] sm:$0xff] }
 0x3be   :  { %9165 = vpow2.f32 %v1196_v8  ;;  %v1073_v15 = vsub.f32 %v1065_v41, %v1071_v12  ;;  %v7620_v41 = vcombine.high %v1345_v23, %v1349_v39  ;;  %v7739_v8 = vcombine.low %v1465_v62, %v1469_v0  ;;  %v1413_v23 = vld [vmem:[#allocation19 + $0x3e0] sm:$0xff] }
 0x3bf   :  { %v9160_v16 = vpop.eup %9159 }
 0x3c0   :  { %v1076_v13 = vmul.f32 1.442695, %v1073_v15  ;;  %v956_v17 = vsel %vm821_vm3, %v9160_v16, 0.0  ;;  %v964_v18 = vpack.c.bf16 %v9158_v14, %v9160_v16  ;;  %v7588_v14 = vcombine.high %v1313_v5, %v1317_v6  ;;  %v1449_v15 = vld [vmem:[#allocation19 + $0x500] sm:$0xff] }
 0x3c1   :  { %v1193_v24 = vpop.xlane.xlu0 %1192  ;;  %957 = vadd.xlane.f32.xlu0 %v956_v17  ;;  %v1453_v16 = vld [vmem:[#allocation19 + $0x520] sm:$0xff] }
 0x3c2   :  { %9167 = vpow2.f32 %v1076_v13  ;;  %v1195_v25 = vsub.f32 %v1187_v45, %v1193_v24  ;;  %8469 = vmatmul.mubr.msk.bf16.vlgmr.msra.gmra.mxu1 %vm821_vm3, %v964_v18  ;;  %v7611_v45 = vcombine.low %v1337_v42, %v1341_v43  ;;  %v1305_v13 = vld [vmem:[#allocation19 + $0x80] sm:$0xff]  ;;  %v7587_v24 = vcombine.low %v1313_v5, %v1317_v6 }
 0x3c3   :  { %v9162_v26 = vpop.eup %9161  ;;  %8479 = vmatpush3.bf16.msra.mxu1 %v9810_v54  ;;  %8480 = vmatprep.mubr.msk.bf16.mxu1 %vm9619_vm4, %v9613_v44  ;;  %v1309_v17 = vld [vmem:[#allocation19 + $0xa0] sm:$0xff] }
 0x3c4   :  { %v1198_v28 = vmul.f32 1.442695, %v1195_v25  ;;  %v842_v29 = vpack.c.bf16 %v9162_v26, %v9156_v7  ;;  %v837_v54 = vsel %vm821_vm3, %v9162_v26, 0.0  ;;  %2888 = vmatprep.subr.bf16.mxu1 %v7748_v61  ;;  %v1461_v7 = vld [vmem:[#allocation19 + $0x560] sm:$0xff]  ;;  %v7724_v25 = vcombine.high %v1449_v15, %v1453_v16 }
 0x3c5   :  { %v7732_v12 = vcombine.high %v1457_v4, %v1461_v7  ;;  %v7731_v18 = vcombine.low %v1457_v4, %v1461_v7  ;;  %v7580_v26 = vcombine.high %v1305_v13, %v1309_v17  ;;  %v1401_v42 = vld [vmem:[#allocation19 + $0x380] sm:$0xff]  ;;  %v7667_v61 = vcombine.low %v1393_v51, %v1397_v52 }
 0x3c6   :  { %9169 = vpow2.f32 %v1198_v28  ;;  %8463 = vmatmul.mubr.msk.bf16.vlgmr.msra.gmra.mxu0 %vm821_vm3, %v842_v29  ;;  %v1441_v28 = vld [vmem:[#allocation19 + $0x4c0] sm:$0xff] }
 0x3c7   :  { %v9164_v19 = vpop.eup %9163  ;;  %8473 = vmatpush3.bf16.msra.mxu0 %v9812_v56  ;;  %8474 = vmatprep.mubr.msk.bf16.mxu0 %vm9619_vm4, %v9613_v44  ;;  %v1445_v29 = vld [vmem:[#allocation19 + $0x4e0] sm:$0xff] }
 0x3c8   :  { %v1078_v30 = vsel %vm821_vm3, %v9164_v19, 0.0  ;;  %2845 = vmatprep.subr.bf16.mxu0 %v7620_v41  ;;  %v1405_v43 = vld [vmem:[#allocation19 + $0x3a0] sm:$0xff] }
 0x3c9   :  { %1079 = vadd.xlane.f32.xlu0 %v1078_v30  ;;  %v1301_v30 = vld [vmem:[#allocation19 + $0x60] sm:$0xff]  ;;  %v7675_v48 = vcombine.low %v1401_v42, %v1405_v43 }
 0x3ca   :  { %v1417_v4 = vld [vmem:[#allocation19 + $0x400] sm:$0xff] }
 0x3cb   :  { %v9166_v31 = vpop.eup %9165  ;;  %v1421_v6 = vld [vmem:[#allocation19 + $0x420] sm:$0xff] }
 0x3cc   :  { %v1200_v32 = vsel %vm821_vm3, %v9166_v31, 0.0 }
 0x3cd   :  { %838 = vadd.xlane.f32.xlu0 %v837_v54  ;;  %1201 = vadd.xlane.f32.xlu1 %v1200_v32  ;;  %v7579_v54 = vcombine.low %v1305_v13, %v1309_v17  ;;  %v7716_v32 = vcombine.high %v1441_v28, %v1445_v29  ;;  %v1541_v13 = vld [vmem:[#allocation19 + $0x7e0] sm:$0xff] }
 0x3cf   :  { %v9168_v33 = vpop.eup %9167 }
 0x3d0   :  { %v1086_v35 = vpack.c.bf16 %v9168_v33, %v9164_v19  ;;  %v1081_v36 = vsel %vm821_vm3, %v9168_v33, 0.0  ;;  %v1297_v19 = vld [vmem:[#allocation19 + $0x40] sm:$0xff] }
 0x3d1   :  { %960 = vadd.xlane.f32.xlu0 %v959_v34  ;;  %v7572_v33 = vcombine.high %v1297_v19, %v1301_v30  ;;  %v1289_v34 = vld [vmem:[#allocation19] sm:$0xff] }
 0x3d2   :  { %8475 = vmatmul.mubr.msk.bf16.vlgmr.msra.gmra.mxu0 %vm821_vm3, %v1086_v35  ;;  %v1293_v35 = vld [vmem:[#allocation19 + $0x20] sm:$0xff] }
 0x3d3   :  { %v9170_v56 = vpop.eup %9169  ;;  %2846 = vmatpush1.bf16.msra.mxu0 %v7619_v40  ;;  %v7563_v39 = vcombine.low %v1289_v34, %v1293_v35 }
 0x3d4   :  { %v1208_v37 = vpack.c.bf16 %v9170_v56, %v9166_v31  ;;  %v1203_v38 = vsel %vm821_vm3, %v9170_v56, 0.0  ;;  %2847 = vmatprep.subr.bf16.mxu0 %v7612_v46  ;;  %v7723_v31 = vcombine.low %v1449_v15, %v1453_v16  ;;  %v7715_v56 = vcombine.low %v1441_v28, %v1445_v29  ;;  %v1537_v15 = vld [vmem:[#allocation19 + $0x7c0] sm:$0xff] }
 0x3d5   :  { %1082 = vadd.xlane.f32.xlu0 %v1081_v36  ;;  %v7571_v36 = vcombine.low %v1297_v19, %v1301_v30  ;;  %v7676_v46 = vcombine.high %v1401_v42, %v1405_v43  ;;  %v1529_v28 = vld [vmem:[#allocation19 + $0x780] sm:$0xff] }
 0x3d6   :  { %8481 = vmatmul.mubr.msk.bf16.vlgmr.msra.gmra.mxu1 %vm821_vm3, %v1208_v37  ;;  %v7564_v37 = vcombine.high %v1289_v34, %v1293_v35  ;;  %v1533_v19 = vld [vmem:[#allocation19 + $0x7a0] sm:$0xff] }
 0x3d7   :  { %2848 = vmatpush1.bf16.msra.mxu0 %v7611_v45  ;;  %2889 = vmatpush1.bf16.msra.mxu1 %v7747_v60  ;;  %v1433_v45 = vld [vmem:[#allocation19 + $0x480] sm:$0xff] }
 0x3d8   :  { %2849 = vmatprep.subr.bf16.mxu0 %v7604_v49  ;;  %2890 = vmatprep.subr.bf16.mxu1 %v7740_v3  ;;  %v7707_v49 = vcombine.low %v1433_v45, %v1437_v47  ;;  %v7708_v50 = vcombine.high %v1433_v45, %v1437_v47  ;;  %v1429_v60 = vld [vmem:[#allocation19 + $0x460] sm:$0xff] }
 0x3d9   :  { %1204 = vadd.xlane.f32.xlu0 %v1203_v38  ;;  %v1409_v38 = vld [vmem:[#allocation19 + $0x3c0] sm:$0xff]  ;;  %v7699_v62 = vcombine.low %v1425_v53, %v1429_v60  ;;  %v7700_v0 = vcombine.high %v1425_v53, %v1429_v60 }
 0x3da   :  { %v7684_v40 = vcombine.high %v1409_v38, %v1413_v23  ;;  %v7683_v41 = vcombine.low %v1409_v38, %v1413_v23  ;;  %v1389_v3 = vld [vmem:[#allocation19 + $0x320] sm:$0xff] }
 0x3db   :  { %2850 = vmatpush1.bf16.msra.mxu0 %v7603_v59  ;;  %2891 = vmatpush1.bf16.msra.mxu1 %v7739_v8  ;;  %v7668_v59 = vcombine.high %v1393_v51, %v1397_v52  ;;  %v7691_v8 = vcombine.low %v1417_v4, %v1421_v6  ;;  %v1521_v34 = vld [vmem:[#allocation19 + $0x740] sm:$0xff]  ;;  %v9890_v51 = vld [vmem:[#allocation19 + $0x1e8] sm:$0xff] }
 0x3dc   :  { %2851 = vmatprep.subr.bf16.mxu0 %v7596_v1  ;;  %2892 = vmatprep.subr.bf16.mxu1 %v7732_v12  ;;  %v1385_v1 = vld [vmem:[#allocation19 + $0x300] sm:$0xff] }
 0x3dd   :  { %v7660_v5 = vcombine.high %v1385_v1, %v1389_v3  ;;  %v7659_v7 = vcombine.low %v1385_v1, %v1389_v3  ;;  %v1377_v12 = vld [vmem:[#allocation19 + $0x2c0] sm:$0xff] }
 0x3de   :  { %v1353_v23 = vld [vmem:[#allocation19 + $0x200] sm:$0xff] }
 0x3df   :  { %2852 = vmatpush1.bf16.msra.mxu0 %v7595_v11  ;;  %2893 = vmatpush1.bf16.msra.mxu1 %v7731_v18  ;;  %v7692_v11 = vcombine.high %v1417_v4, %v1421_v6  ;;  %v7811_v18 = vcombine.low %v1537_v15, %v1541_v13  ;;  %v1517_v42 = vld [vmem:[#allocation19 + $0x720] sm:$0xff] }
 0x3e0   :  { %2853 = vmatprep.subr.bf16.mxu0 %v7588_v14  ;;  %2894 = vmatprep.subr.bf16.mxu1 %v7724_v25  ;;  %v1381_v14 = vld [vmem:[#allocation19 + $0x2e0] sm:$0xff] }
 0x3e1   :  { %v7652_v16 = vcombine.high %v1377_v12, %v1381_v14  ;;  %v7651_v17 = vcombine.low %v1377_v12, %v1381_v14  ;;  %v1369_v25 = vld [vmem:[#allocation19 + $0x280] sm:$0xff]  ;;  %v9896_v12 = vld [vmem:[#allocation19 + $0x5c8] sm:$0xff] }
 0x3e2   :  { %v1505_v47 = vld [vmem:[#allocation19 + $0x6c0] sm:$0xff]  ;;  %v9898_v14 = vld [vmem:[#allocation19 + $0x5e8] sm:$0xff] }
 0x3e3   :  { %2854 = vmatpush1.bf16.msra.mxu0 %v7587_v24  ;;  %2895 = vmatpush1.bf16.msra.mxu1 %v7723_v31  ;;  %v7812_v24 = vcombine.high %v1537_v15, %v1541_v13  ;;  %v7803_v31 = vcombine.low %v1529_v28, %v1533_v19  ;;  %v1497_v60 = vld [vmem:[#allocation19 + $0x680] sm:$0xff]  ;;  %v7749_v15 = vcombine.low %v9896_v12, %v9898_v14 }
 0x3e4   :  { %2855 = vmatprep.subr.bf16.mxu0 %v7580_v26  ;;  %2896 = vmatprep.subr.bf16.mxu1 %v7716_v32  ;;  %v1373_v26 = vld [vmem:[#allocation19 + $0x2a0] sm:$0xff] }
 0x3e5   :  { %v7644_v29 = vcombine.high %v1369_v25, %v1373_v26  ;;  %v7643_v30 = vcombine.low %v1369_v25, %v1373_v26  ;;  %v1361_v32 = vld [vmem:[#allocation19 + $0x240] sm:$0xff] }
 0x3e6   :  { %v1489_v1 = vld [vmem:[#allocation19 + $0x640] sm:$0xff] }
 0x3e7   :  { %2856 = vmatpush1.bf16.msra.mxu0 %v7579_v54  ;;  %2897 = vmatpush1.bf16.msra.mxu1 %v7715_v56  ;;  %v7804_v54 = vcombine.high %v1529_v28, %v1533_v19  ;;  %v1525_v56 = vld [vmem:[#allocation19 + $0x760] sm:$0xff] }
 0x3e8   :  { %2857 = vmatprep.subr.bf16.mxu0 %v7572_v33  ;;  %2898 = vmatprep.subr.bf16.mxu1 %v7708_v50  ;;  %v1365_v33 = vld [vmem:[#allocation19 + $0x260] sm:$0xff]  ;;  %v7796_v38 = vcombine.high %v1521_v34, %v1525_v56 }
 0x3e9   :  { %v7636_v35 = vcombine.high %v1361_v32, %v1365_v33  ;;  %v1493_v3 = vld [vmem:[#allocation19 + $0x660] sm:$0xff] }
 0x3ea   :  { %v7764_v4 = vcombine.high %v1489_v1, %v1493_v3  ;;  %v1481_v6 = vld [vmem:[#allocation19 + $0x600] sm:$0xff] }
 0x3eb   :  { %2858 = vmatpush1.bf16.msra.mxu0 %v7571_v36  ;;  %2899 = vmatpush1.bf16.msra.mxu1 %v7707_v49  ;;  %v7635_v36 = vcombine.low %v1361_v32, %v1365_v33  ;;  %v9888_v49 = vld [vmem:[#allocation19 + $0x1c8] sm:$0xff] }
 0x3ec   :  { %2859 = vmatprep.subr.bf16.mxu0 %v7564_v37  ;;  %2900 = vmatprep.subr.bf16.mxu1 %v7700_v0  ;;  %v7795_v37 = vcombine.low %v1521_v34, %v1525_v56  ;;  %v7621_v53 = vcombine.low %v9888_v49, %v9890_v51 }
 0x3ef   :  { %2860 = vmatpush1.bf16.msra.mxu0 %v7563_v39  ;;  %2901 = vmatpush1.bf16.msra.mxu1 %v7699_v62  ;;  %v1357_v39 = vld [vmem:[#allocation19 + $0x220] sm:$0xff] }
 0x3f0   :  { %2861 = vmatprep.subr.bf16.mxu0 %v7684_v40  ;;  %2902 = vmatprep.subr.bf16.mxu1 %v7692_v11  ;;  %v1513_v40 = vld [vmem:[#allocation19 + $0x700] sm:$0xff]  ;;  %v7627_v43 = vcombine.low %v1353_v23, %v1357_v39 }
 0x3f1   :  { %v7787_v45 = vcombine.low %v1513_v40, %v1517_v42 }
 0x3f3   :  { %2862 = vmatpush2.bf16.msra.mxu0 %v7683_v41  ;;  %2903 = vmatpush1.bf16.msra.mxu1 %v7691_v8  ;;  %v7628_v41 = vcombine.high %v1353_v23, %v1357_v39 }
 0x3f4   :  { %2863 = vmatprep.subr.bf16.mxu0 %v7676_v46  ;;  %2904 = vmatprep.subr.bf16.mxu1 %v7812_v24  ;;  %v7788_v46 = vcombine.high %v1513_v40, %v1517_v42  ;;  %v7541_v40 = vld [vmem:[#allocation17] ss:$0 sm:$0xff] }
 0x3f7   :  { %2864 = vmatpush2.bf16.msra.mxu0 %v7675_v48  ;;  %2905 = vmatpush2.bf16.msra.mxu1 %v7811_v18  ;;  %v1509_v48 = vld [vmem:[#allocation19 + $0x6e0] sm:$0xff] }
 0x3f8   :  { %2865 = vmatprep.subr.bf16.mxu0 %v7668_v59  ;;  %2906 = vmatprep.subr.bf16.mxu1 %v7804_v54  ;;  %v7780_v50 = vcombine.high %v1505_v47, %v1509_v48  ;;  %v7779_v52 = vcombine.low %v1505_v47, %v1509_v48  ;;  %v7622_v59 = vcombine.high %v9888_v49, %v9890_v51 }
 0x3fb   :  { %2866 = vmatpush2.bf16.msra.mxu0 %v7667_v61  ;;  %2907 = vmatpush2.bf16.msra.mxu1 %v7803_v31  ;;  %v1501_v61 = vld [vmem:[#allocation19 + $0x6a0] sm:$0xff]  ;;  %v7546_v31 = vld [vmem:[#allocation17 + $0x1] ss:$0 sm:$0xff] }
 0x3fc   :  { %2867 = vmatprep.subr.bf16.mxu0 %v7660_v5  ;;  %2908 = vmatprep.subr.bf16.mxu1 %v7796_v38  ;;  %v7772_v62 = vcombine.high %v1497_v60, %v1501_v61  ;;  %v7771_v0 = vcombine.low %v1497_v60, %v1501_v61  ;;  %v7763_v5 = vcombine.low %v1489_v1, %v1493_v3 }
 0x3ff   :  { %2868 = vmatpush2.bf16.msra.mxu0 %v7659_v7  ;;  %2909 = vmatpush2.bf16.msra.mxu1 %v7795_v37  ;;  %v1485_v7 = vld [vmem:[#allocation19 + $0x620] sm:$0xff] }
 0x400   :  { %2869 = vmatprep.subr.bf16.mxu0 %v7652_v16  ;;  %2910 = vmatprep.subr.bf16.mxu1 %v7788_v46  ;;  %v7756_v8 = vcombine.high %v1481_v6, %v1485_v7  ;;  %v7755_v11 = vcombine.low %v1481_v6, %v1485_v7  ;;  %v7750_v16 = vcombine.high %v9896_v12, %v9898_v14 }
 0x403   :  { %2870 = vmatpush2.bf16.msra.mxu0 %v7651_v17  ;;  %2911 = vmatpush2.bf16.msra.mxu1 %v7787_v45 }
 0x404   :  { %2871 = vmatprep.subr.bf16.mxu0 %v7644_v29  ;;  %2912 = vmatprep.subr.bf16.mxu1 %v7780_v50  ;;  %v7545_v29 = vld [vmem:[#allocation16 + $0x1] ss:$0 sm:$0xff] }
 0x407   :  { %2872 = vmatpush2.bf16.msra.mxu0 %v7643_v30  ;;  %2913 = vmatpush2.bf16.msra.mxu1 %v7779_v52 }
 0x408   :  { %2873 = vmatprep.subr.bf16.mxu0 %v7636_v35  ;;  %2914 = vmatprep.subr.bf16.mxu1 %v7772_v62 }
 0x40b   :  { %2874 = vmatpush2.bf16.msra.mxu0 %v7635_v36  ;;  %2915 = vmatpush2.bf16.msra.mxu1 %v7771_v0  ;;  %v7540_v36 = vld [vmem:[#allocation16] ss:$0 sm:$0xff] }
 0x40c   :  { %2875 = vmatprep.subr.bf16.mxu0 %v7628_v41  ;;  %2916 = vmatprep.subr.bf16.mxu1 %v7764_v4 }
 0x40f   :  { %2876 = vmatpush2.bf16.msra.mxu0 %v7627_v43  ;;  %2917 = vmatpush2.bf16.msra.mxu1 %v7763_v5 }
 0x410   :  { %2931 = vmatprep.subr.bf16.mxu0 %v7622_v59  ;;  %2918 = vmatprep.subr.bf16.mxu1 %v7756_v8 }
 0x413   :  { %2919 = vmatpush2.bf16.msra.mxu1 %v7755_v11 }
 0x414   :  { %2974 = vmatprep.subr.bf16.mxu1 %v7750_v16  ;;  %v7550_v16 = vld [vmem:[#allocation16 + $0x2] ss:$0 sm:$0xff] }
 0x446   :  { %v836_v13 = vpop.xlane.xlu0 %835 }
 0x44a   :  { %v958_v17 = vpop.xlane.xlu0 %957 }
 0x44b   :  { %9171 = vrcp.f32 %v958_v17 }
 0x44c   :  { %9173 = vrcp.f32 %v836_v13 }
 0x452   :  { %v1080_v18 = vpop.xlane.xlu0 %1079 }
 0x456   :  { %v839_v24 = vpop.xlane.xlu0 %838  ;;  %v1202_v33 = vpop.xlane.xlu1 %1201 }
 0x458   :  { %v9172_v26 = vpop.eup %9171 }
 0x459   :  { %v9174_v32 = vpop.eup %9173 }
 0x45a   :  { %v961_v25 = vpop.xlane.xlu0 %960 }
 0x45b   :  { %9175 = vrcp.f32 %v961_v25 }
 0x45c   :  { %9177 = vrcp.f32 %v839_v24 }
 0x45d   :  { %9179 = vrcp.f32 %v1080_v18  ;;  %v7551_v18 = vld [vmem:[#allocation17 + $0x2] ss:$0 sm:$0xff] }
 0x45e   :  { %v1083_v30 = vpop.xlane.xlu0 %1082  ;;  %9181 = vrcp.f32 %v1202_v33  ;;  %v7556_v33 = vld [vmem:[#allocation17 + $0x3] ss:$0 sm:$0xff] }
 0x45f   :  { %9183 = vrcp.f32 %v1083_v30  ;;  %v7555_v30 = vld [vmem:[#allocation16 + $0x3] ss:$0 sm:$0xff] }
 0x462   :  { %v1205_v48 = vpop.xlane.xlu0 %1204 }
 0x463   :  { %9185 = vrcp.f32 %v1205_v48 }
 0x468   :  { %v9176_v35 = vpop.eup %9175 }
 0x469   :  { %v9178_v47 = vpop.eup %9177 }
 0x46a   :  { %v9180_v8 = vpop.eup %9179 }
 0x46b   :  { %v9182_v25 = vpop.eup %9181 }
 0x482   :  { %v1002_v28 = vpop.f32.mrf.mxu1 }
 0x483   :  { %v1009_v19 = vmul.f32 %v9172_v26, %v1002_v28  ;;  %v9184_v28 = vpop.eup %9183 }
 0x484   :  { %v8470_v54 = vpop.f32.mrf.mxu1 }
 0x485   :  { %v1018_v34 = vmul.f32 %v7545_v29, %v1009_v19 }
 0x486   :  { %v880_v56 = vpop.f32.mrf.mxu0  ;;  %v1005_v37 = vpop.f32.mrf.mxu1 }
 0x487   :  { %v1027_v38 = vadd.f32 %v7546_v31, %v1018_v34  ;;  %v887_v23 = vmul.f32 %v9174_v32, %v880_v56  ;;  %v1010_v39 = vmul.f32 %v9176_v35, %v1005_v37 }
 0x488   :  { %v8464_v41 = vpop.f32.mrf.mxu0  ;;  %v8471_v42 = vpop.f32.mrf.mxu1 }
 0x489   :  { %v1029_v43 = vmax.f32 %v1027_v38, 0.0  ;;  %v896_v45 = vmul.f32 %v7540_v36, %v887_v23  ;;  %v1019_v46 = vmul.f32 %v7545_v29, %v1010_v39  ;;  %v9186_v38 = vpop.eup %9185  ;;  %v1338_v39 = vld [vmem:[#allocation19 + $0x188] sm:$0xff] }
 0x48a   :  { %v883_v50 = vpop.f32.mrf.mxu0 }
 0x48b   :  { %v8226_v52 = vpack.c.bf16 %v1029_v43, %v1029_v43  ;;  %v905_v59 = vadd.f32 %v7541_v40, %v896_v45  ;;  %v1028_v60 = vadd.f32 %v7546_v31, %v1019_v46  ;;  %v888_v61 = vmul.f32 %v9178_v47, %v883_v50 }
 0x48c   :  { %v8465_v62 = vpop.f32.mrf.mxu0 }
 0x48d   :  { %1039 = vst [vmem:[#allocation2 + $0x4] sm:$0xf] %v8226_v52  ;;  %v907_v0 = vmax.f32 %v905_v59, 0.0  ;;  %v1030_v1 = vmax.f32 %v1028_v60, 0.0  ;;  %v897_v3 = vmul.f32 %v7540_v36, %v888_v61  ;;  %v1330_v61 = vld [vmem:[#allocation19 + $0x148] sm:$0xff] }
 0x48e   :  { %v1334_v62 = vld [vmem:[#allocation19 + $0x168] sm:$0xff] }
 0x48f   :  { %v8224_v4 = vpack.c.bf16 %v907_v0, %v907_v0  ;;  %v8227_v5 = vpack.c.bf16 %v1030_v1, %v1030_v1  ;;  %v906_v6 = vadd.f32 %v7541_v40, %v897_v3  ;;  %v1342_v40 = vld [vmem:[#allocation19 + $0x1a8] sm:$0xff] }
 0x490   :  { %v7614_v60 = vcombine.high %v1338_v39, %v1342_v40 }
 0x491   :  { %917 = vst [vmem:[#allocation2] sm:$0xf] %v8224_v4  ;;  %1040 = vst [vmem:[#allocation2 + $0x14] sm:$0xf] %v8227_v5  ;;  %v908_v7 = vmax.f32 %v906_v6, 0.0  ;;  %v7613_v4 = vcombine.low %v1338_v39, %v1342_v40  ;;  %v7606_v6 = vcombine.high %v1330_v61, %v1334_v62  ;;  %v1450_v39 = vld [vmem:[#allocation19 + $0x508] sm:$0xff] }
 0x492   :  { %v1124_v11 = vpop.f32.mrf.mxu0  ;;  %v1454_v40 = vld [vmem:[#allocation19 + $0x528] sm:$0xff] }
 0x493   :  { %v8225_v13 = vpack.c.bf16 %v908_v7, %v908_v7  ;;  %v1131_v17 = vmul.f32 %v9180_v8, %v1124_v11  ;;  %v1322_v7 = vld [vmem:[#allocation19 + $0x108] sm:$0xff]  ;;  %v7726_v14 = vcombine.high %v1450_v39, %v1454_v40 }
 0x494   :  { %v8476_v24 = vpop.f32.mrf.mxu0  ;;  %v1326_v8 = vld [vmem:[#allocation19 + $0x128] sm:$0xff] }
 0x495   :  { %918 = vst [vmem:[#allocation2 + $0x10] sm:$0xf] %v8225_v13  ;;  %v1140_v26 = vmul.f32 %v7550_v16, %v1131_v17  ;;  %v7598_v13 = vcombine.high %v1322_v7, %v1326_v8  ;;  %v1314_v17 = vld [vmem:[#allocation19 + $0xc8] sm:$0xff]  ;;  %v7597_v49 = vcombine.low %v1322_v7, %v1326_v8 }
 0x496   :  { %v1127_v29 = vpop.f32.mrf.mxu0  ;;  %v1246_v19 = vpop.f32.mrf.mxu1  ;;  %v1310_v24 = vld [vmem:[#allocation19 + $0xa8] sm:$0xff] }
 0x497   :  { %v1149_v31 = vadd.f32 %v7551_v18, %v1140_v26  ;;  %v1132_v54 = vmul.f32 %v9184_v28, %v1127_v29  ;;  %v1253_v32 = vmul.f32 %v9182_v25, %v1246_v19  ;;  %v1466_v25 = vld [vmem:[#allocation19 + $0x588] sm:$0xff] }
 0x498   :  { %v8477_v34 = vpop.f32.mrf.mxu0  ;;  %v8482_v35 = vpop.f32.mrf.mxu1  ;;  %v9904_v47 = vld [vmem:[#allocation2 + $0x4] ss:$16 sps:$4 sm:$0xff]  }
 0x499   :  { %v1151_v56 = vmax.f32 %v1149_v31, 0.0  ;;  %v1141_v36 = vmul.f32 %v7550_v16, %v1132_v54  ;;  %v1262_v37 = vmul.f32 %v7555_v30, %v1253_v32  ;;  %2877 = vmatprep.mubr.bf16.mxu0 %v9904_v47  ;;  %v7605_v16 = vcombine.low %v1330_v61, %v1334_v62  ;;  %v1470_v26 = vld [vmem:[#allocation19 + $0x5a8] sm:$0xff] }
 0x49a   :  { %v1249_v23 = vpop.f32.mrf.mxu1  ;;  %v1298_v31 = vld [vmem:[#allocation19 + $0x48] sm:$0xff]  ;;  %v7742_v54 = vcombine.high %v1466_v25, %v1470_v26 }
 0x49b   :  { %v8228_v41 = vpack.c.bf16 %v1151_v56, %v1151_v56  ;;  %v1150_v42 = vadd.f32 %v7551_v18, %v1141_v36  ;;  %v1271_v43 = vadd.f32 %v7556_v33, %v1262_v37  ;;  %v1254_v45 = vmul.f32 %v9186_v38, %v1249_v23  ;;  %v1318_v18 = vld [vmem:[#allocation19 + $0xe8] sm:$0xff] }
 0x49c   :  { %v8483_v46 = vpop.f32.mrf.mxu1  ;;  %v9906_v48 = vld [vmem:[#allocation2] ss:$16 sps:$4 sm:$0xff]   ;;  %v7590_v51 = vcombine.high %v1314_v17, %v1318_v18  ;;  %v7589_v29 = vcombine.low %v1314_v17, %v1318_v18  ;;  %v7741_v56 = vcombine.low %v1466_v25, %v1470_v26 }
 0x49d   :  { %1161 = vst [vmem:[#allocation2 + $0x8] sm:$0xf] %v8228_v41  ;;  %v1152_v50 = vmax.f32 %v1150_v42, 0.0  ;;  %v1273_v52 = vmax.f32 %v1271_v43, 0.0  ;;  %v1263_v59 = vmul.f32 %v7555_v30, %v1254_v45  ;;  %2878 = vmatmul.mubr.bf16.vlgmr.msra.gmra.mxu0 %v9906_v48  ;;  %v1302_v32 = vld [vmem:[#allocation19 + $0x68] sm:$0xff] }
 0x49e   :  { %2932 = vmatpush1.bf16.msra.mxu0 %v7621_v53  ;;  %2963 = vmatprep.mubr.bf16.mxu0 %v9904_v47  ;;  %v1306_v53 = vld [vmem:[#allocation19 + $0x88] sm:$0xff]  ;;  %v7574_v36 = vcombine.high %v1298_v31, %v1302_v32  ;;  %v7573_v41 = vcombine.low %v1298_v31, %v1302_v32 }
 0x49f   :  { %v8229_v0 = vpack.c.bf16 %v1152_v50, %v1152_v50  ;;  %v8230_v1 = vpack.c.bf16 %v1273_v52, %v1273_v52  ;;  %v1272_v3 = vadd.f32 %v7556_v33, %v1263_v59  ;;  %2933 = vmatprep.subr.bf16.mxu0 %v7614_v60  ;;  %v7582_v30 = vcombine.high %v1306_v53, %v1310_v24  ;;  %v1458_v33 = vld [vmem:[#allocation19 + $0x548] sm:$0xff] }
 0x4a0   :  { %v1462_v34 = vld [vmem:[#allocation19 + $0x568] sm:$0xff]  ;;  %v7581_v35 = vcombine.low %v1306_v53, %v1310_v24  ;;  %v7725_v52 = vcombine.low %v1450_v39, %v1454_v40 }
 0x4a1   :  { %1162 = vst [vmem:[#allocation2 + $0x18] sm:$0xf] %v8229_v0  ;;  %1283 = vst [vmem:[#allocation2 + $0xc] sm:$0xf] %v8230_v1  ;;  %v1274_v5 = vmax.f32 %v1272_v3, 0.0  ;;  %v7734_v37 = vcombine.high %v1458_v33, %v1462_v34  ;;  %v1290_v38 = vld [vmem:[#allocation19 + $0x8] sm:$0xff]  ;;  %v7733_v42 = vcombine.low %v1458_v33, %v1462_v34 }
 0x4a2   :  { %2934 = vmatpush1.bf16.msra.mxu0 %v7613_v4  ;;  %v1294_v23 = vld [vmem:[#allocation19 + $0x28] sm:$0xff] }
 0x4a3   :  { %v8231_v11 = vpack.c.bf16 %v1274_v5, %v1274_v5  ;;  %2935 = vmatprep.subr.bf16.mxu0 %v7606_v6  ;;  %v7566_v12 = vcombine.high %v1290_v38, %v1294_v23  ;;  %v1414_v43 = vld [vmem:[#allocation19 + $0x3e8] sm:$0xff]  ;;  %v7565_v50 = vcombine.low %v1290_v38, %v1294_v23 }
 0x4a4   :  { %v1442_v45 = vld [vmem:[#allocation19 + $0x4c8] sm:$0xff] }
 0x4a5   :  { %1284 = vst [vmem:[#allocation2 + $0x1c] sm:$0xf] %v8231_v11  ;;  %v1446_v46 = vld [vmem:[#allocation19 + $0x4e8] sm:$0xff] }
 0x4a6   :  { %2936 = vmatpush1.bf16.msra.mxu0 %v7605_v16  ;;  %v7718_v60 = vcombine.high %v1442_v45, %v1446_v46  ;;  %v1402_v61 = vld [vmem:[#allocation19 + $0x388] sm:$0xff]  ;;  %v7717_v4 = vcombine.low %v1442_v45, %v1446_v46 }
 0x4a7   :  { %2937 = vmatprep.subr.bf16.mxu0 %v7598_v13  ;;  %v1406_v62 = vld [vmem:[#allocation19 + $0x3a8] sm:$0xff] }
 0x4a8   :  { %v9916_v19 = vld [vmem:[#allocation2 + $0x8] ss:$16 sps:$4 sm:$0xff]   ;;  %v7678_v5 = vcombine.high %v1402_v61, %v1406_v62  ;;  %v7677_v13 = vcombine.low %v1402_v61, %v1406_v62 }
 0x4a9   :  { %v1434_v0 = vld [vmem:[#allocation19 + $0x488] sm:$0xff] }
 0x4aa   :  { %2938 = vmatpush1.bf16.msra.mxu0 %v7597_v49  ;;  %v1438_v1 = vld [vmem:[#allocation19 + $0x4a8] sm:$0xff] }
 0x4ab   :  { %2939 = vmatprep.subr.bf16.mxu0 %v7590_v51  ;;  %v7710_v6 = vcombine.high %v1434_v0, %v1438_v1  ;;  %v1394_v7 = vld [vmem:[#allocation19 + $0x348] sm:$0xff]  ;;  %v7709_v17 = vcombine.low %v1434_v0, %v1438_v1 }
 0x4ac   :  { %v9914_v28 = vld [vmem:[#allocation2 + $0xc] ss:$16 sps:$4 sm:$0xff]   ;;  %v1398_v8 = vld [vmem:[#allocation19 + $0x368] sm:$0xff] }
 0x4ad   :  { %2920 = vmatprep.mubr.bf16.mxu1 %v9914_v28  ;;  %v1426_v11 = vld [vmem:[#allocation19 + $0x448] sm:$0xff]  ;;  %v7670_v18 = vcombine.high %v1394_v7, %v1398_v8  ;;  %v7669_v26 = vcombine.low %v1394_v7, %v1398_v8 }
 0x4ae   :  { %2921 = vmatmul.mubr.bf16.vlgmr.msra.gmra.mxu1 %v9916_v19  ;;  %2940 = vmatpush1.bf16.msra.mxu0 %v7589_v29  ;;  %v1430_v16 = vld [vmem:[#allocation19 + $0x468] sm:$0xff] }
 0x4af   :  { %2975 = vmatpush1.bf16.msra.mxu1 %v7749_v15  ;;  %3006 = vmatprep.mubr.bf16.mxu1 %v9914_v28  ;;  %v1410_v15 = vld [vmem:[#allocation19 + $0x3c8] sm:$0xff]  ;;  %v7702_v49 = vcombine.high %v1426_v11, %v1430_v16  ;;  %v7701_v29 = vcombine.low %v1426_v11, %v1430_v16  ;;  %v1347_v11 = vld [vmem:[#allocation19 + $0x1d0] sm:$0xff] }
 0x4b0   :  { %2941 = vmatprep.subr.bf16.mxu0 %v7582_v30  ;;  %2976 = vmatprep.subr.bf16.mxu1 %v7742_v54  ;;  %v7686_v59 = vcombine.high %v1410_v15, %v1414_v43  ;;  %v7685_v3 = vcombine.low %v1410_v15, %v1414_v43  ;;  %v1386_v51 = vld [vmem:[#allocation19 + $0x308] sm:$0xff]  ;;  %v1351_v16 = vld [vmem:[#allocation19 + $0x1f0] sm:$0xff] }
 0x4b1   :  { %v1390_v53 = vld [vmem:[#allocation19 + $0x328] sm:$0xff] }
 0x4b2   :  { %2942 = vmatpush1.bf16.msra.mxu0 %v7581_v35  ;;  %v1418_v24 = vld [vmem:[#allocation19 + $0x408] sm:$0xff]  ;;  %v7662_v30 = vcombine.high %v1386_v51, %v1390_v53  ;;  %v7661_v35 = vcombine.low %v1386_v51, %v1390_v53 }
 0x4b3   :  { %2977 = vmatpush1.bf16.msra.mxu1 %v7741_v56  ;;  %2943 = vmatprep.subr.bf16.mxu0 %v7574_v36  ;;  %v1422_v25 = vld [vmem:[#allocation19 + $0x428] sm:$0xff] }
 0x4b4   :  { %2978 = vmatprep.subr.bf16.mxu1 %v7734_v37  ;;  %v7694_v31 = vcombine.high %v1418_v24, %v1422_v25  ;;  %v1378_v54 = vld [vmem:[#allocation19 + $0x2c8] sm:$0xff]  ;;  %v7693_v56 = vcombine.low %v1418_v24, %v1422_v25  ;;  %v1339_v24 = vld [vmem:[#allocation19 + $0x190] sm:$0xff] }
 0x4b5   :  { %v1382_v32 = vld [vmem:[#allocation19 + $0x2e8] sm:$0xff]  ;;  %v1343_v25 = vld [vmem:[#allocation19 + $0x1b0] sm:$0xff] }
 0x4b6   :  { %2944 = vmatpush1.bf16.msra.mxu0 %v7573_v41  ;;  %v1538_v33 = vld [vmem:[#allocation19 + $0x7c8] sm:$0xff]  ;;  %v7654_v36 = vcombine.high %v1378_v54, %v1382_v32  ;;  %v7653_v41 = vcombine.low %v1378_v54, %v1382_v32  ;;  %v7616_v54 = vcombine.high %v1339_v24, %v1343_v25 }
 0x4b7   :  { %2979 = vmatpush1.bf16.msra.mxu1 %v7733_v42  ;;  %2945 = vmatprep.subr.bf16.mxu0 %v7566_v12  ;;  %v1542_v34 = vld [vmem:[#allocation19 + $0x7e8] sm:$0xff] }
 0x4b8   :  { %2980 = vmatprep.subr.bf16.mxu1 %v7726_v14  ;;  %v7814_v37 = vcombine.high %v1538_v33, %v1542_v34  ;;  %v1370_v38 = vld [vmem:[#allocation19 + $0x288] sm:$0xff]  ;;  %v7813_v42 = vcombine.low %v1538_v33, %v1542_v34  ;;  %v1331_v33 = vld [vmem:[#allocation19 + $0x150] sm:$0xff] }
 0x4b9   :  { %v1374_v23 = vld [vmem:[#allocation19 + $0x2a8] sm:$0xff]  ;;  %v1335_v34 = vld [vmem:[#allocation19 + $0x170] sm:$0xff] }
 0x4ba   :  { %2946 = vmatpush1.bf16.msra.mxu0 %v7565_v50  ;;  %v1530_v39 = vld [vmem:[#allocation19 + $0x788] sm:$0xff]  ;;  %v7646_v12 = vcombine.high %v1370_v38, %v1374_v23  ;;  %v7645_v50 = vcombine.low %v1370_v38, %v1374_v23 }
 0x4bb   :  { %2981 = vmatpush1.bf16.msra.mxu1 %v7725_v52  ;;  %2947 = vmatprep.subr.bf16.mxu0 %v7686_v59  ;;  %v1534_v40 = vld [vmem:[#allocation19 + $0x7a8] sm:$0xff] }
 0x4bc   :  { %2982 = vmatprep.subr.bf16.mxu1 %v7718_v60  ;;  %v7806_v14 = vcombine.high %v1530_v39, %v1534_v40  ;;  %v1362_v15 = vld [vmem:[#allocation19 + $0x248] sm:$0xff]  ;;  %v7805_v52 = vcombine.low %v1530_v39, %v1534_v40  ;;  %v1323_v39 = vld [vmem:[#allocation19 + $0x110] sm:$0xff] }
 0x4bd   :  { %v1366_v43 = vld [vmem:[#allocation19 + $0x268] sm:$0xff]  ;;  %v1327_v40 = vld [vmem:[#allocation19 + $0x130] sm:$0xff] }
 0x4be   :  { %2948 = vmatpush2.bf16.msra.mxu0 %v7685_v3  ;;  %v1522_v45 = vld [vmem:[#allocation19 + $0x748] sm:$0xff]  ;;  %v7638_v59 = vcombine.high %v1362_v15, %v1366_v43  ;;  %v7637_v3 = vcombine.low %v1362_v15, %v1366_v43  ;;  %v1315_v15 = vld [vmem:[#allocation19 + $0xd0] sm:$0xff] }
 0x4bf   :  { %2983 = vmatpush1.bf16.msra.mxu1 %v7717_v4  ;;  %2949 = vmatprep.subr.bf16.mxu0 %v7678_v5  ;;  %v1526_v46 = vld [vmem:[#allocation19 + $0x768] sm:$0xff]  ;;  %v1319_v43 = vld [vmem:[#allocation19 + $0xf0] sm:$0xff] }
 0x4c0   :  { %2984 = vmatprep.subr.bf16.mxu1 %v7710_v6  ;;  %v7798_v60 = vcombine.high %v1522_v45, %v1526_v46  ;;  %v1354_v61 = vld [vmem:[#allocation19 + $0x208] sm:$0xff]  ;;  %v7797_v4 = vcombine.low %v1522_v45, %v1526_v46  ;;  %v1475_v45 = vld [vmem:[#allocation19 + $0x5d0] sm:$0xff] }
 0x4c1   :  { %v1358_v62 = vld [vmem:[#allocation19 + $0x228] sm:$0xff]  ;;  %v1479_v46 = vld [vmem:[#allocation19 + $0x5f0] sm:$0xff] }
 0x4c2   :  { %2950 = vmatpush2.bf16.msra.mxu0 %v7677_v13  ;;  %v1514_v0 = vld [vmem:[#allocation19 + $0x708] sm:$0xff]  ;;  %v7630_v5 = vcombine.high %v1354_v61, %v1358_v62  ;;  %v7629_v13 = vcombine.low %v1354_v61, %v1358_v62  ;;  %v1307_v61 = vld [vmem:[#allocation19 + $0x90] sm:$0xff] }
 0x4c3   :  { %2985 = vmatpush1.bf16.msra.mxu1 %v7709_v17  ;;  %2951 = vmatprep.subr.bf16.mxu0 %v7670_v18  ;;  %v1518_v1 = vld [vmem:[#allocation19 + $0x728] sm:$0xff]  ;;  %v1311_v62 = vld [vmem:[#allocation19 + $0xb0] sm:$0xff] }
 0x4c4   :  { %2986 = vmatprep.subr.bf16.mxu1 %v7702_v49  ;;  %v7790_v6 = vcombine.high %v1514_v0, %v1518_v1  ;;  %v1506_v7 = vld [vmem:[#allocation19 + $0x6c8] sm:$0xff]  ;;  %v7789_v17 = vcombine.low %v1514_v0, %v1518_v1  ;;  %v7624_v49 = vcombine.high %v1347_v11, %v1351_v16  ;;  %v1467_v0 = vld [vmem:[#allocation19 + $0x590] sm:$0xff] }
 0x4c5   :  { %v1510_v8 = vld [vmem:[#allocation19 + $0x6e8] sm:$0xff]  ;;  %v1471_v1 = vld [vmem:[#allocation19 + $0x5b0] sm:$0xff] }
 0x4c6   :  { %2952 = vmatpush2.bf16.msra.mxu0 %v7669_v26  ;;  %v7782_v18 = vcombine.high %v1506_v7, %v1510_v8  ;;  %v1498_v51 = vld [vmem:[#allocation19 + $0x688] sm:$0xff]  ;;  %v7781_v26 = vcombine.low %v1506_v7, %v1510_v8  ;;  %v7744_v7 = vcombine.high %v1467_v0, %v1471_v1  ;;  %v1303_v8 = vld [vmem:[#allocation19 + $0x70] sm:$0xff] }
 0x4c7   :  { %2987 = vmatpush1.bf16.msra.mxu1 %v7701_v29  ;;  %2953 = vmatprep.subr.bf16.mxu0 %v7662_v30  ;;  %v1502_v53 = vld [vmem:[#allocation19 + $0x6a8] sm:$0xff]  ;;  %v7623_v29 = vcombine.low %v1347_v11, %v1351_v16  ;;  %v1459_v11 = vld [vmem:[#allocation19 + $0x550] sm:$0xff] }
 0x4c8   :  { %2988 = vmatprep.subr.bf16.mxu1 %v7694_v31  ;;  %v7774_v30 = vcombine.high %v1498_v51, %v1502_v53  ;;  %v1490_v31 = vld [vmem:[#allocation19 + $0x648] sm:$0xff]  ;;  %v1463_v16 = vld [vmem:[#allocation19 + $0x570] sm:$0xff] }
 0x4c9   :  { %v1494_v32 = vld [vmem:[#allocation19 + $0x668] sm:$0xff] }
 0x4ca   :  { %2954 = vmatpush2.bf16.msra.mxu0 %v7661_v35  ;;  %v7773_v35 = vcombine.low %v1498_v51, %v1502_v53  ;;  %v1482_v38 = vld [vmem:[#allocation19 + $0x608] sm:$0xff]  ;;  %v1291_v51 = vld [vmem:[#allocation19 + $0x10] sm:$0xff] }
 0x4cb   :  { %2989 = vmatpush1.bf16.msra.mxu1 %v7693_v56  ;;  %2955 = vmatprep.subr.bf16.mxu0 %v7654_v36  ;;  %v7615_v56 = vcombine.low %v1339_v24, %v1343_v25  ;;  %v7766_v36 = vcombine.high %v1490_v31, %v1494_v32  ;;  %v1486_v23 = vld [vmem:[#allocation19 + $0x628] sm:$0xff]  ;;  %v1295_v53 = vld [vmem:[#allocation19 + $0x30] sm:$0xff] }
 0x4cc   :  { %2990 = vmatprep.subr.bf16.mxu1 %v7814_v37  ;;  %v7608_v37 = vcombine.high %v1331_v33, %v1335_v34  ;;  %v1451_v24 = vld [vmem:[#allocation19 + $0x510] sm:$0xff] }
 0x4cd   :  { %v1455_v25 = vld [vmem:[#allocation19 + $0x530] sm:$0xff] }
 0x4ce   :  { %2956 = vmatpush2.bf16.msra.mxu0 %v7653_v41  ;;  %v7765_v41 = vcombine.low %v1490_v31, %v1494_v32  ;;  %v7728_v31 = vcombine.high %v1451_v24, %v1455_v25  ;;  %v1415_v32 = vld [vmem:[#allocation19 + $0x3f0] sm:$0xff] }
 0x4cf   :  { %2991 = vmatpush2.bf16.msra.mxu1 %v7813_v42  ;;  %2957 = vmatprep.subr.bf16.mxu0 %v7646_v12  ;;  %v7607_v42 = vcombine.low %v1331_v33, %v1335_v34  ;;  %v7758_v12 = vcombine.high %v1482_v38, %v1486_v23  ;;  %v1443_v33 = vld [vmem:[#allocation19 + $0x4d0] sm:$0xff] }
 0x4d0   :  { %2992 = vmatprep.subr.bf16.mxu1 %v7806_v14  ;;  %v7600_v14 = vcombine.high %v1323_v39, %v1327_v40  ;;  %v1447_v34 = vld [vmem:[#allocation19 + $0x4f0] sm:$0xff] }
 0x4d2   :  { %2958 = vmatpush2.bf16.msra.mxu0 %v7645_v50  ;;  %v7757_v50 = vcombine.low %v1482_v38, %v1486_v23  ;;  %v1403_v38 = vld [vmem:[#allocation19 + $0x390] sm:$0xff] }
 0x4d3   :  { %2993 = vmatpush2.bf16.msra.mxu1 %v7805_v52  ;;  %2959 = vmatprep.subr.bf16.mxu0 %v7638_v59  ;;  %v7599_v52 = vcombine.low %v1323_v39, %v1327_v40  ;;  %v7592_v59 = vcombine.high %v1315_v15, %v1319_v43  ;;  %v1407_v23 = vld [vmem:[#allocation19 + $0x3b0] sm:$0xff] }
 0x4d4   :  { %2994 = vmatprep.subr.bf16.mxu1 %v7798_v60  ;;  %v7752_v60 = vcombine.high %v1475_v45, %v1479_v46  ;;  %v1435_v39 = vld [vmem:[#allocation19 + $0x490] sm:$0xff] }
 0x4d5   :  { %v1439_v40 = vld [vmem:[#allocation19 + $0x4b0] sm:$0xff] }
 0x4d6   :  { %2960 = vmatpush2.bf16.msra.mxu0 %v7637_v3  ;;  %v7591_v3 = vcombine.low %v1315_v15, %v1319_v43  ;;  %v1395_v15 = vld [vmem:[#allocation19 + $0x350] sm:$0xff] }
 0x4d7   :  { %2995 = vmatpush2.bf16.msra.mxu1 %v7797_v4  ;;  %2961 = vmatprep.subr.bf16.mxu0 %v7630_v5  ;;  %v7751_v4 = vcombine.low %v1475_v45, %v1479_v46  ;;  %v7584_v5 = vcombine.high %v1307_v61, %v1311_v62  ;;  %v1399_v43 = vld [vmem:[#allocation19 + $0x370] sm:$0xff] }
 0x4d8   :  { %2996 = vmatprep.subr.bf16.mxu1 %v7790_v6  ;;  %v1299_v6 = vld [vmem:[#allocation19 + $0x50] sm:$0xff] }
 0x4d9   :  { %v1427_v45 = vld [vmem:[#allocation19 + $0x450] sm:$0xff] }
 0x4da   :  { %2962 = vmatpush2.bf16.msra.mxu0 %v7629_v13  ;;  %v7583_v13 = vcombine.low %v1307_v61, %v1311_v62  ;;  %v1431_v46 = vld [vmem:[#allocation19 + $0x470] sm:$0xff] }
 0x4db   :  { %2997 = vmatpush2.bf16.msra.mxu1 %v7789_v17  ;;  %3017 = vmatprep.subr.bf16.mxu0 %v7624_v49  ;;  %v7743_v17 = vcombine.low %v1467_v0, %v1471_v1  ;;  %v7736_v49 = vcombine.high %v1459_v11, %v1463_v16  ;;  %v1387_v61 = vld [vmem:[#allocation19 + $0x310] sm:$0xff] }
 0x4dc   :  { %2998 = vmatprep.subr.bf16.mxu1 %v7782_v18  ;;  %v7576_v18 = vcombine.high %v1299_v6, %v1303_v8  ;;  %v1391_v62 = vld [vmem:[#allocation19 + $0x330] sm:$0xff] }
 0x4dd   :  { %2964 = vmatmul.mubr.bf16.vlgmr.msra.gmra.mxu0 %v9906_v48  ;;  %v1419_v0 = vld [vmem:[#allocation19 + $0x410] sm:$0xff] }
 0x4de   :  { %3018 = vmatpush1.bf16.msra.mxu0 %v7623_v29  ;;  %3049 = vmatprep.mubr.bf16.mxu0 %v9904_v47  ;;  %v7735_v29 = vcombine.low %v1459_v11, %v1463_v16  ;;  %v1423_v1 = vld [vmem:[#allocation19 + $0x430] sm:$0xff] }
 0x4df   :  { %2999 = vmatpush2.bf16.msra.mxu1 %v7781_v26  ;;  %3019 = vmatprep.subr.bf16.mxu0 %v7616_v54  ;;  %v7575_v26 = vcombine.low %v1299_v6, %v1303_v8  ;;  %v1411_v54 = vld [vmem:[#allocation19 + $0x3d0] sm:$0xff]  ;;  %v7696_v6 = vcombine.high %v1419_v0, %v1423_v1 }
 0x4e0   :  { %3000 = vmatprep.subr.bf16.mxu1 %v7774_v30  ;;  %v7568_v30 = vcombine.high %v1291_v51, %v1295_v53  ;;  %v1383_v8 = vld [vmem:[#allocation19 + $0x2f0] sm:$0xff] }
 0x4e1   :  { %v1539_v11 = vld [vmem:[#allocation19 + $0x7d0] sm:$0xff] }
 0x4e2   :  { %3020 = vmatpush1.bf16.msra.mxu0 %v7615_v56  ;;  %v7727_v56 = vcombine.low %v1451_v24, %v1455_v25  ;;  %v1543_v16 = vld [vmem:[#allocation19 + $0x7f0] sm:$0xff] }
 0x4e3   :  { %3001 = vmatpush2.bf16.msra.mxu1 %v7773_v35  ;;  %3021 = vmatprep.subr.bf16.mxu0 %v7608_v37  ;;  %v7567_v35 = vcombine.low %v1291_v51, %v1295_v53  ;;  %v7720_v37 = vcombine.high %v1443_v33, %v1447_v34  ;;  %v1371_v51 = vld [vmem:[#allocation19 + $0x290] sm:$0xff] }
 0x4e4   :  { %3002 = vmatprep.subr.bf16.mxu1 %v7766_v36  ;;  %v7688_v36 = vcombine.high %v1411_v54, %v1415_v32  ;;  %v1375_v53 = vld [vmem:[#allocation19 + $0x2b0] sm:$0xff] }
 0x4e5   :  { %v1531_v24 = vld [vmem:[#allocation19 + $0x790] sm:$0xff] }
 0x4e6   :  { %3022 = vmatpush1.bf16.msra.mxu0 %v7607_v42  ;;  %v7719_v42 = vcombine.low %v1443_v33, %v1447_v34  ;;  %v1535_v25 = vld [vmem:[#allocation19 + $0x7b0] sm:$0xff] }
 0x4e7   :  { %3003 = vmatpush2.bf16.msra.mxu1 %v7765_v41  ;;  %3023 = vmatprep.subr.bf16.mxu0 %v7600_v14  ;;  %v7687_v41 = vcombine.low %v1411_v54, %v1415_v32  ;;  %v7712_v14 = vcombine.high %v1435_v39, %v1439_v40  ;;  %v1363_v54 = vld [vmem:[#allocation19 + $0x250] sm:$0xff] }
 0x4e8   :  { %3004 = vmatprep.subr.bf16.mxu1 %v7758_v12  ;;  %v7680_v12 = vcombine.high %v1403_v38, %v1407_v23  ;;  %v1367_v32 = vld [vmem:[#allocation19 + $0x270] sm:$0xff] }
 0x4e9   :  { %v1523_v33 = vld [vmem:[#allocation19 + $0x750] sm:$0xff] }
 0x4ea   :  { %3024 = vmatpush1.bf16.msra.mxu0 %v7599_v52  ;;  %v7711_v52 = vcombine.low %v1435_v39, %v1439_v40  ;;  %v1527_v34 = vld [vmem:[#allocation19 + $0x770] sm:$0xff] }
 0x4eb   :  { %3005 = vmatpush2.bf16.msra.mxu1 %v7757_v50  ;;  %3025 = vmatprep.subr.bf16.mxu0 %v7592_v59  ;;  %v7679_v50 = vcombine.low %v1403_v38, %v1407_v23  ;;  %v7672_v59 = vcombine.high %v1395_v15, %v1399_v43  ;;  %v1355_v38 = vld [vmem:[#allocation19 + $0x210] sm:$0xff] }
 0x4ec   :  { %3060 = vmatprep.subr.bf16.mxu1 %v7752_v60  ;;  %v7704_v60 = vcombine.high %v1427_v45, %v1431_v46  ;;  %v1359_v23 = vld [vmem:[#allocation19 + $0x230] sm:$0xff] }
 0x4ed   :  { %v1515_v39 = vld [vmem:[#allocation19 + $0x710] sm:$0xff] }
 0x4ee   :  { %3007 = vmatmul.mubr.bf16.vlgmr.msra.gmra.mxu1 %v9916_v19  ;;  %3026 = vmatpush1.bf16.msra.mxu0 %v7591_v3  ;;  %v7671_v3 = vcombine.low %v1395_v15, %v1399_v43  ;;  %v1519_v40 = vld [vmem:[#allocation19 + $0x730] sm:$0xff] }
 0x4ef   :  { %3061 = vmatpush1.bf16.msra.mxu1 %v7751_v4  ;;  %3092 = vmatprep.mubr.bf16.mxu1 %v9914_v28  ;;  %v7703_v4 = vcombine.low %v1427_v45, %v1431_v46  ;;  %v1507_v15 = vld [vmem:[#allocation19 + $0x6d0] sm:$0xff]  ;;  %v1348_v45 = vld [vmem:[#allocation19 + $0x1d8] sm:$0xff] }
 0x4f0   :  { %3027 = vmatprep.subr.bf16.mxu0 %v7584_v5  ;;  %3062 = vmatprep.subr.bf16.mxu1 %v7744_v7  ;;  %v7664_v5 = vcombine.high %v1387_v61, %v1391_v62  ;;  %v1379_v7 = vld [vmem:[#allocation19 + $0x2d0] sm:$0xff]  ;;  %v1352_v46 = vld [vmem:[#allocation19 + $0x1f8] sm:$0xff] }
 0x4f1   :  { %v1511_v43 = vld [vmem:[#allocation19 + $0x6f0] sm:$0xff] }
 0x4f2   :  { %3028 = vmatpush1.bf16.msra.mxu0 %v7583_v13  ;;  %v7663_v13 = vcombine.low %v1387_v61, %v1391_v62  ;;  %v1499_v61 = vld [vmem:[#allocation19 + $0x690] sm:$0xff] }
 0x4f3   :  { %3063 = vmatpush1.bf16.msra.mxu1 %v7743_v17  ;;  %3029 = vmatprep.subr.bf16.mxu0 %v7576_v18  ;;  %v7695_v17 = vcombine.low %v1419_v0, %v1423_v1  ;;  %v7656_v18 = vcombine.high %v1379_v7, %v1383_v8  ;;  %v1503_v62 = vld [vmem:[#allocation19 + $0x6b0] sm:$0xff]  ;;  %v1340_v0 = vld [vmem:[#allocation19 + $0x198] sm:$0xff] }
 0x4f4   :  { %3064 = vmatprep.subr.bf16.mxu1 %v7736_v49  ;;  %v7816_v49 = vcombine.high %v1539_v11, %v1543_v16  ;;  %v1344_v1 = vld [vmem:[#allocation19 + $0x1b8] sm:$0xff] }
 0x4f6   :  { %3030 = vmatpush1.bf16.msra.mxu0 %v7575_v26  ;;  %v7655_v26 = vcombine.low %v1379_v7, %v1383_v8  ;;  %v7618_v7 = vcombine.high %v1340_v0, %v1344_v1  ;;  %v1495_v8 = vld [vmem:[#allocation19 + $0x670] sm:$0xff] }
 0x4f7   :  { %3065 = vmatpush1.bf16.msra.mxu1 %v7735_v29  ;;  %3031 = vmatprep.subr.bf16.mxu0 %v7568_v30  ;;  %v7815_v29 = vcombine.low %v1539_v11, %v1543_v16  ;;  %v7648_v30 = vcombine.high %v1371_v51, %v1375_v53  ;;  %v1332_v11 = vld [vmem:[#allocation19 + $0x158] sm:$0xff] }
 0x4f8   :  { %3066 = vmatprep.subr.bf16.mxu1 %v7728_v31  ;;  %v7808_v31 = vcombine.high %v1531_v24, %v1535_v25  ;;  %v1336_v16 = vld [vmem:[#allocation19 + $0x178] sm:$0xff] }
 0x4fa   :  { %3032 = vmatpush1.bf16.msra.mxu0 %v7567_v35  ;;  %v7647_v35 = vcombine.low %v1371_v51, %v1375_v53  ;;  %v1483_v51 = vld [vmem:[#allocation19 + $0x610] sm:$0xff] }
 0x4fb   :  { %3067 = vmatpush1.bf16.msra.mxu1 %v7727_v56  ;;  %3033 = vmatprep.subr.bf16.mxu0 %v7688_v36  ;;  %v7807_v56 = vcombine.low %v1531_v24, %v1535_v25  ;;  %v7640_v36 = vcombine.high %v1363_v54, %v1367_v32  ;;  %v1487_v53 = vld [vmem:[#allocation19 + $0x630] sm:$0xff]  ;;  %v1324_v24 = vld [vmem:[#allocation19 + $0x118] sm:$0xff] }
 0x4fc   :  { %3068 = vmatprep.subr.bf16.mxu1 %v7720_v37  ;;  %v7800_v37 = vcombine.high %v1523_v33, %v1527_v34  ;;  %v1328_v25 = vld [vmem:[#allocation19 + $0x138] sm:$0xff] }
 0x4fe   :  { %3034 = vmatpush2.bf16.msra.mxu0 %v7687_v41  ;;  %v7639_v41 = vcombine.low %v1363_v54, %v1367_v32  ;;  %v1320_v54 = vld [vmem:[#allocation19 + $0xf8] sm:$0xff] }
 0x4ff   :  { %3069 = vmatpush1.bf16.msra.mxu1 %v7719_v42  ;;  %3035 = vmatprep.subr.bf16.mxu0 %v7680_v12  ;;  %v7799_v42 = vcombine.low %v1523_v33, %v1527_v34  ;;  %v7632_v12 = vcombine.high %v1355_v38, %v1359_v23  ;;  %v1476_v32 = vld [vmem:[#allocation19 + $0x5d8] sm:$0xff]  ;;  %v7759_v33 = vcombine.low %v1483_v51, %v1487_v53 }
 0x500   :  { %3070 = vmatprep.subr.bf16.mxu1 %v7712_v14  ;;  %v7792_v14 = vcombine.high %v1515_v39, %v1519_v40  ;;  %v7601_v34 = vcombine.low %v1324_v24, %v1328_v25 }
 0x502   :  { %3036 = vmatpush2.bf16.msra.mxu0 %v7679_v50  ;;  %v7631_v50 = vcombine.low %v1355_v38, %v1359_v23  ;;  %v1468_v38 = vld [vmem:[#allocation19 + $0x598] sm:$0xff] }
 0x503   :  { %3071 = vmatpush1.bf16.msra.mxu1 %v7711_v52  ;;  %3037 = vmatprep.subr.bf16.mxu0 %v7672_v59  ;;  %v7791_v52 = vcombine.low %v1515_v39, %v1519_v40  ;;  %v7784_v59 = vcombine.high %v1507_v15, %v1511_v43  ;;  %v1472_v23 = vld [vmem:[#allocation19 + $0x5b8] sm:$0xff] }
 0x504   :  { %3072 = vmatprep.subr.bf16.mxu1 %v7704_v60  ;;  %v7626_v60 = vcombine.high %v1348_v45, %v1352_v46 }
 0x506   :  { %3038 = vmatpush2.bf16.msra.mxu0 %v7671_v3  ;;  %v7783_v3 = vcombine.low %v1507_v15, %v1511_v43  ;;  %v1460_v15 = vld [vmem:[#allocation19 + $0x558] sm:$0xff] }
 0x507   :  { %3073 = vmatpush1.bf16.msra.mxu1 %v7703_v4  ;;  %3039 = vmatprep.subr.bf16.mxu0 %v7664_v5  ;;  %v7625_v4 = vcombine.low %v1348_v45, %v1352_v46  ;;  %v7776_v5 = vcombine.high %v1499_v61, %v1503_v62  ;;  %v1464_v43 = vld [vmem:[#allocation19 + $0x578] sm:$0xff]  ;;  %v7745_v46 = vcombine.low %v1468_v38, %v1472_v23 }
 0x508   :  { %3074 = vmatprep.subr.bf16.mxu1 %v7696_v6  ;;  %v1491_v6 = vld [vmem:[#allocation19 + $0x650] sm:$0xff] }
 0x50a   :  { %3040 = vmatpush2.bf16.msra.mxu0 %v7663_v13  ;;  %v7775_v13 = vcombine.low %v1499_v61, %v1503_v62  ;;  %v1452_v61 = vld [vmem:[#allocation19 + $0x518] sm:$0xff] }
 0x50b   :  { %3075 = vmatpush1.bf16.msra.mxu1 %v7695_v17  ;;  %3041 = vmatprep.subr.bf16.mxu0 %v7656_v18  ;;  %v7617_v17 = vcombine.low %v1340_v0, %v1344_v1  ;;  %v7768_v18 = vcombine.high %v1491_v6, %v1495_v8  ;;  %v1456_v62 = vld [vmem:[#allocation19 + $0x538] sm:$0xff]  ;;  %v7737_v1 = vcombine.low %v1460_v15, %v1464_v43 }
 0x50c   :  { %3076 = vmatprep.subr.bf16.mxu1 %v7816_v49  ;;  %v7610_v49 = vcombine.high %v1332_v11, %v1336_v16 }
 0x50e   :  { %3042 = vmatpush2.bf16.msra.mxu0 %v7655_v26  ;;  %v7767_v26 = vcombine.low %v1491_v6, %v1495_v8  ;;  %v1444_v6 = vld [vmem:[#allocation19 + $0x4d8] sm:$0xff]  ;;  %v7729_v8 = vcombine.low %v1452_v61, %v1456_v62 }
 0x50f   :  { %3077 = vmatpush2.bf16.msra.mxu1 %v7815_v29  ;;  %3043 = vmatprep.subr.bf16.mxu0 %v7648_v30  ;;  %v7609_v29 = vcombine.low %v1332_v11, %v1336_v16  ;;  %v7602_v30 = vcombine.high %v1324_v24, %v1328_v25 }
 0x510   :  { %3078 = vmatprep.subr.bf16.mxu1 %v7808_v31  ;;  %v1316_v31 = vld [vmem:[#allocation19 + $0xd8] sm:$0xff] }
 0x511   :  { %v7593_v39 = vcombine.low %v1316_v31, %v1320_v54 }
 0x512   :  { %3044 = vmatpush2.bf16.msra.mxu0 %v7647_v35  ;;  %v7594_v35 = vcombine.high %v1316_v31, %v1320_v54 }
 0x513   :  { %3079 = vmatpush2.bf16.msra.mxu1 %v7807_v56  ;;  %3045 = vmatprep.subr.bf16.mxu0 %v7640_v36  ;;  %v1308_v36 = vld [vmem:[#allocation19 + $0x98] sm:$0xff] }
 0x514   :  { %3080 = vmatprep.subr.bf16.mxu1 %v7800_v37  ;;  %v1312_v37 = vld [vmem:[#allocation19 + $0xb8] sm:$0xff] }
 0x515   :  { %v7585_v45 = vcombine.low %v1308_v36, %v1312_v37 }
 0x516   :  { %3046 = vmatpush2.bf16.msra.mxu0 %v7639_v41  ;;  %v7586_v41 = vcombine.high %v1308_v36, %v1312_v37 }
 0x517   :  { %3081 = vmatpush2.bf16.msra.mxu1 %v7799_v42  ;;  %3047 = vmatprep.subr.bf16.mxu0 %v7632_v12  ;;  %v1300_v42 = vld [vmem:[#allocation19 + $0x58] sm:$0xff]  ;;  %v7746_v12 = vcombine.high %v1468_v38, %v1472_v23 }
 0x518   :  { %3082 = vmatprep.subr.bf16.mxu1 %v7792_v14  ;;  %v1304_v14 = vld [vmem:[#allocation19 + $0x78] sm:$0xff] }
 0x519   :  { %v7577_v0 = vcombine.low %v1300_v42, %v1304_v14 }
 0x51a   :  { %3048 = vmatpush2.bf16.msra.mxu0 %v7631_v50  ;;  %v7578_v50 = vcombine.high %v1300_v42, %v1304_v14  ;;  %v1544_v42 = vld [vmem:[#allocation19 + $0x7f8] sm:$0xff] }
 0x51b   :  { %3083 = vmatpush2.bf16.msra.mxu1 %v7791_v52  ;;  %3103 = vmatprep.subr.bf16.mxu0 %v7626_v60  ;;  %v7738_v52 = vcombine.high %v1460_v15, %v1464_v43  ;;  %v1296_v60 = vld [vmem:[#allocation19 + $0x38] sm:$0xff] }
 0x51c   :  { %3084 = vmatprep.subr.bf16.mxu1 %v7784_v59  ;;  %v1292_v59 = vld [vmem:[#allocation19 + $0x18] sm:$0xff] }
 0x51d   :  { %3050 = vmatmul.mubr.bf16.vlgmr.msra.gmra.mxu0 %v9906_v48  ;;  %v7760_v48 = vcombine.high %v1483_v51, %v1487_v53 }
 0x51e   :  { %3104 = vmatpush1.bf16.msra.mxu0 %v7625_v4  ;;  %3135 = vmatprep.mubr.bf16.mxu0 %v9904_v47  ;;  %v1480_v47 = vld [vmem:[#allocation19 + $0x5f8] sm:$0xff] }
 0x51f   :  { %3085 = vmatpush2.bf16.msra.mxu1 %v7783_v3  ;;  %3105 = vmatprep.subr.bf16.mxu0 %v7618_v7  ;;  %v7754_v56 = vcombine.high %v1476_v32, %v1480_v47  ;;  %v7753_v40 = vcombine.low %v1476_v32, %v1480_v47  ;;  %v7730_v3 = vcombine.high %v1452_v61, %v1456_v62  ;;  %v1412_v4 = vld [vmem:[#allocation19 + $0x3d8] sm:$0xff] }
 0x520   :  { %3086 = vmatprep.subr.bf16.mxu1 %v7776_v5  ;;  %v1416_v5 = vld [vmem:[#allocation19 + $0x3f8] sm:$0xff]  ;;  %v7569_v7 = vcombine.low %v1292_v59, %v1296_v60 }
 0x521   :  { %v7690_v11 = vcombine.high %v1412_v4, %v1416_v5  ;;  %v7689_v51 = vcombine.low %v1412_v4, %v1416_v5 }
 0x522   :  { %3106 = vmatpush1.bf16.msra.mxu0 %v7617_v17  ;;  %v1408_v17 = vld [vmem:[#allocation19 + $0x3b8] sm:$0xff] }
 0x523   :  { %3087 = vmatpush2.bf16.msra.mxu1 %v7775_v13  ;;  %3107 = vmatprep.subr.bf16.mxu0 %v7610_v49  ;;  %v1404_v13 = vld [vmem:[#allocation19 + $0x398] sm:$0xff] }
 0x524   :  { %3088 = vmatprep.subr.bf16.mxu1 %v7768_v18  ;;  %v1436_v18 = vld [vmem:[#allocation19 + $0x498] sm:$0xff]  ;;  %v7682_v24 = vcombine.high %v1404_v13, %v1408_v17  ;;  %v7681_v31 = vcombine.low %v1404_v13, %v1408_v17 }
 0x525   :  { %v1440_v49 = vld [vmem:[#allocation19 + $0x4b8] sm:$0xff] }
 0x526   :  { %3108 = vmatpush1.bf16.msra.mxu0 %v7609_v29  ;;  %v7714_v25 = vcombine.high %v1436_v18, %v1440_v49  ;;  %v1400_v29 = vld [vmem:[#allocation19 + $0x378] sm:$0xff]  ;;  %v7713_v54 = vcombine.low %v1436_v18, %v1440_v49 }
 0x527   :  { %3089 = vmatpush2.bf16.msra.mxu1 %v7767_v26  ;;  %3109 = vmatprep.subr.bf16.mxu0 %v7602_v30  ;;  %v1396_v26 = vld [vmem:[#allocation19 + $0x358] sm:$0xff] }
 0x528   :  { %3090 = vmatprep.subr.bf16.mxu1 %v7760_v48  ;;  %v1428_v48 = vld [vmem:[#allocation19 + $0x458] sm:$0xff]  ;;  %v7674_v32 = vcombine.high %v1396_v26, %v1400_v29  ;;  %v7673_v36 = vcombine.low %v1396_v26, %v1400_v29 }
 0x529   :  { %v1432_v30 = vld [vmem:[#allocation19 + $0x478] sm:$0xff] }
 0x52a   :  { %3110 = vmatpush1.bf16.msra.mxu0 %v7601_v34  ;;  %v7706_v47 = vcombine.high %v1428_v48, %v1432_v30  ;;  %v1392_v34 = vld [vmem:[#allocation19 + $0x338] sm:$0xff]  ;;  %v7705_v37 = vcombine.low %v1428_v48, %v1432_v30 }
 0x52b   :  { %3091 = vmatpush2.bf16.msra.mxu1 %v7759_v33  ;;  %3111 = vmatprep.subr.bf16.mxu0 %v7594_v35  ;;  %v1388_v33 = vld [vmem:[#allocation19 + $0x318] sm:$0xff] }
 0x52c   :  { %3146 = vmatprep.subr.bf16.mxu1 %v7754_v56  ;;  %v1420_v35 = vld [vmem:[#allocation19 + $0x418] sm:$0xff]  ;;  %v7666_v38 = vcombine.high %v1388_v33, %v1392_v34 }
 0x52d   :  { %v1424_v56 = vld [vmem:[#allocation19 + $0x438] sm:$0xff] }
 0x52e   :  { %3093 = vmatmul.mubr.bf16.vlgmr.msra.gmra.mxu1 %v9916_v19  ;;  %3112 = vmatpush1.bf16.msra.mxu0 %v7593_v39  ;;  %v7570_v19 = vcombine.high %v1292_v59, %v1296_v60  ;;  %v7698_v23 = vcombine.high %v1420_v35, %v1424_v56  ;;  %v1380_v39 = vld [vmem:[#allocation19 + $0x2d8] sm:$0xff]  ;;  %v7697_v14 = vcombine.low %v1420_v35, %v1424_v56 }
 0x52f   :  { %3147 = vmatpush1.bf16.msra.mxu1 %v7753_v40  ;;  %3178 = vmatprep.mubr.bf16.mxu1 %v9914_v28  ;;  %v1448_v28 = vld [vmem:[#allocation19 + $0x4f8] sm:$0xff] }
 0x530   :  { %3113 = vmatprep.subr.bf16.mxu0 %v7586_v41  ;;  %3148 = vmatprep.subr.bf16.mxu1 %v7746_v12  ;;  %v7722_v16 = vcombine.high %v1444_v6, %v1448_v28  ;;  %v7721_v53 = vcombine.low %v1444_v6, %v1448_v28  ;;  %v1384_v40 = vld [vmem:[#allocation19 + $0x2f8] sm:$0xff]  ;;  %v7665_v12 = vcombine.low %v1388_v33, %v1392_v34 }
 0x531   :  { %v1540_v41 = vld [vmem:[#allocation19 + $0x7d8] sm:$0xff]  ;;  %v7658_v15 = vcombine.high %v1380_v39, %v1384_v40  ;;  %v7657_v59 = vcombine.low %v1380_v39, %v1384_v40 }
 0x532   :  { %3114 = vmatpush1.bf16.msra.mxu0 %v7585_v45  ;;  %v7818_v43 = vcombine.high %v1540_v41, %v1544_v42  ;;  %v1372_v45 = vld [vmem:[#allocation19 + $0x298] sm:$0xff]  ;;  %v7817_v60 = vcombine.low %v1540_v41, %v1544_v42  ;;  %v8664_v41 = vld [vmem:[#allocation20 + $0x28] sm:$0xff]  }
 0x533   :  { %3149 = vmatpush1.bf16.msra.mxu1 %v7745_v46  ;;  %3115 = vmatprep.subr.bf16.mxu0 %v7578_v50  ;;  %v1376_v46 = vld [vmem:[#allocation19 + $0x2b8] sm:$0xff] }
 0x534   :  { %3150 = vmatprep.subr.bf16.mxu1 %v7738_v52  ;;  %v1532_v50 = vld [vmem:[#allocation19 + $0x798] sm:$0xff]  ;;  %v7650_v61 = vcombine.high %v1372_v45, %v1376_v46  ;;  %v7649_v4 = vcombine.low %v1372_v45, %v1376_v46 }
 0x535   :  { %v1536_v52 = vld [vmem:[#allocation19 + $0x7b8] sm:$0xff] }
 0x536   :  { %3116 = vmatpush1.bf16.msra.mxu0 %v7577_v0  ;;  %v7810_v62 = vcombine.high %v1532_v50, %v1536_v52  ;;  %v1364_v0 = vld [vmem:[#allocation19 + $0x258] sm:$0xff]  ;;  %v7809_v5 = vcombine.low %v1532_v50, %v1536_v52 }
 0x537   :  { %3151 = vmatpush1.bf16.msra.mxu1 %v7737_v1  ;;  %3117 = vmatprep.subr.bf16.mxu0 %v7570_v19  ;;  %v1368_v1 = vld [vmem:[#allocation19 + $0x278] sm:$0xff] }
 0x538   :  { %3152 = vmatprep.subr.bf16.mxu1 %v7730_v3  ;;  %v1524_v19 = vld [vmem:[#allocation19 + $0x758] sm:$0xff]  ;;  %v7642_v6 = vcombine.high %v1364_v0, %v1368_v1  ;;  %v7641_v13 = vcombine.low %v1364_v0, %v1368_v1  ;;  %v8670_v1 = vld [vmem:[#allocation20 + $0x10] sm:$0xff]  }
 0x539   :  { %v1528_v3 = vld [vmem:[#allocation19 + $0x778] sm:$0xff] }
 0x53a   :  { %3118 = vmatpush1.bf16.msra.mxu0 %v7569_v7  ;;  %v7802_v28 = vcombine.high %v1524_v19, %v1528_v3  ;;  %v1356_v7 = vld [vmem:[#allocation19 + $0x218] sm:$0xff]  ;;  %v7801_v17 = vcombine.low %v1524_v19, %v1528_v3  ;;  %v8694_v19 = vld [vmem:[#allocation20 + $0xb0] sm:$0xff]  }
 0x53b   :  { %3153 = vmatpush1.bf16.msra.mxu1 %v7729_v8  ;;  %3119 = vmatprep.subr.bf16.mxu0 %v7690_v11  ;;  %v1360_v8 = vld [vmem:[#allocation19 + $0x238] sm:$0xff] }
 0x53c   :  { %3154 = vmatprep.subr.bf16.mxu1 %v7722_v16  ;;  %v1516_v11 = vld [vmem:[#allocation19 + $0x718] sm:$0xff]  ;;  %v7634_v18 = vcombine.high %v1356_v7, %v1360_v8 }
 0x53d   :  { %v1520_v16 = vld [vmem:[#allocation19 + $0x738] sm:$0xff] }
 0x53e   :  { %3120 = vmatpush2.bf16.msra.mxu0 %v7689_v51  ;;  %v7794_v49 = vcombine.high %v1516_v11, %v1520_v16  ;;  %v1508_v51 = vld [vmem:[#allocation19 + $0x6d8] sm:$0xff] }
 0x53f   :  { %3155 = vmatpush1.bf16.msra.mxu1 %v7721_v53  ;;  %3121 = vmatprep.subr.bf16.mxu0 %v7682_v24  ;;  %v1512_v53 = vld [vmem:[#allocation19 + $0x6f8] sm:$0xff]  ;;  %v7633_v24 = vcombine.low %v1356_v7, %v1360_v8  ;;  %v8672_v7 = vld [vmem:[#allocation20 + $0x8] sm:$0xff]  }
 0x540   :  { %3156 = vmatprep.subr.bf16.mxu1 %v7714_v25  ;;  %v7793_v25 = vcombine.low %v1516_v11, %v1520_v16  ;;  %v7786_v26 = vcombine.high %v1508_v51, %v1512_v53  ;;  %v8659_v29 = vld [vmem:[#allocation20 + $0x78] sm:$0xff]   ;;  %v8696_v8 = vld [vmem:[#allocation20 + $0xa8] sm:$0xff]  }
 0x541   :  { %v1500_v48 = vld [vmem:[#allocation19 + $0x698] sm:$0xff] }
 0x542   :  { %3122 = vmatpush2.bf16.msra.mxu0 %v7681_v31  ;;  %v1504_v30 = vld [vmem:[#allocation19 + $0x6b8] sm:$0xff]  ;;  %v7785_v31 = vcombine.low %v1508_v51, %v1512_v53  ;;  %v8674_v53 = vld [vmem:[#allocation20] sm:$0xff]  }
 0x543   :  { %3157 = vmatpush1.bf16.msra.mxu1 %v7713_v54  ;;  %3123 = vmatprep.subr.bf16.mxu0 %v7674_v32  ;;  %v8660_v54 = vld [vmem:[#allocation20 + $0x38] sm:$0xff]   ;;  %v7778_v32 = vcombine.high %v1500_v48, %v1504_v30  ;;  %v7777_v56 = vcombine.low %v1500_v48, %v1504_v30 }
 0x544   :  { %3158 = vmatprep.subr.bf16.mxu1 %v7706_v47  ;;  %v8661_v47 = vld [vmem:[#allocation20 + $0x70] sm:$0xff]   ;;  %v1492_v33 = vld [vmem:[#allocation19 + $0x658] sm:$0xff] }
 0x545   :  { %v1496_v34 = vld [vmem:[#allocation19 + $0x678] sm:$0xff] }
 0x546   :  { %3124 = vmatpush2.bf16.msra.mxu0 %v7673_v36  ;;  %v9251_v35 = vld [vmem:[#allocation2] ss:$16 sps:$4 sm:$0xff]   ;;  %v7769_v40 = vcombine.low %v1492_v33, %v1496_v34 }
 0x547   :  { %3159 = vmatpush1.bf16.msra.mxu1 %v7705_v37  ;;  %3125 = vmatprep.subr.bf16.mxu0 %v7666_v38  ;;  %v8662_v36 = vld [vmem:[#allocation20 + $0x30] sm:$0xff]   ;;  %v7770_v37 = vcombine.high %v1492_v33, %v1496_v34  ;;  %v8663_v38 = vld [vmem:[#allocation20 + $0x68] sm:$0xff]   ;;  %v1488_v39 = vld [vmem:[#allocation19 + $0x638] sm:$0xff] }
 0x548   :  { %3160 = vmatprep.subr.bf16.mxu1 %v7698_v23  ;;  %v1484_v23 = vld [vmem:[#allocation19 + $0x618] sm:$0xff]  ;;  %v8678_v33 = vld [vmem:[#allocation20 + $0x130] sm:$0xff]  }
 0x549   :  { %v7762_v42 = vcombine.high %v1484_v23, %v1488_v39  ;;  %v8667_v45 = vld [vmem:[#allocation20 + $0x58] sm:$0xff]   ;;  %v8702_v34 = vld [vmem:[#allocation20 + $0x90] sm:$0xff]  }
 0x54a   :  { %3126 = vmatpush2.bf16.msra.mxu0 %v7665_v12  ;;  %v8665_v12 = vld [vmem:[#allocation20 + $0x60] sm:$0xff]   ;;  %v8689_v46 = vld [vmem:[#allocation20 + $0xf8] sm:$0xff]  }
 0x54b   :  { %3161 = vmatpush1.bf16.msra.mxu1 %v7697_v14  ;;  %3127 = vmatprep.subr.bf16.mxu0 %v7658_v15  ;;  %v7761_v14 = vcombine.low %v1484_v23, %v1488_v39  ;;  %v8666_v15 = vld [vmem:[#allocation20 + $0x20] sm:$0xff]   ;;  %v8668_v50 = vld [vmem:[#allocation20 + $0x18] sm:$0xff]  }
 0x54c   :  { %3162 = vmatprep.subr.bf16.mxu1 %v7818_v43  ;;  %v8690_v52 = vld [vmem:[#allocation20 + $0xb8] sm:$0xff]   ;;  %v8705_v23 = vld [vmem:[#allocation20 + $0xc0] sm:$0xff]  }
 0x54d   :  { %v8676_v30 = vld [vmem:[#allocation20 + $0x138] sm:$0xff]   ;;  %v8682_v39 = vld [vmem:[#allocation20 + $0x120] sm:$0xff]  }
 0x54e   :  { %3128 = vmatpush2.bf16.msra.mxu0 %v7657_v59 }
 0x54f   :  { %3163 = vmatpush2.bf16.msra.mxu1 %v7817_v60  ;;  %3129 = vmatprep.subr.bf16.mxu0 %v7650_v61  ;;  %v8669_v60 = vld [vmem:[#allocation20 + $0x50] sm:$0xff]  }
 0x550   :  { %3164 = vmatprep.subr.bf16.mxu1 %v7810_v62  ;;  %v8693_v61 = vld [vmem:[#allocation20 + $0xf0] sm:$0xff]  }
 0x551   :  { %v9252_v62 = vld [vmem:[#allocation2 + $0x8] ss:$16 sps:$4 sm:$0xff]  }
 0x552   :  { %3130 = vmatpush2.bf16.msra.mxu0 %v7649_v4 }
 0x553   :  { %3165 = vmatpush2.bf16.msra.mxu1 %v7809_v5  ;;  %3131 = vmatprep.subr.bf16.mxu0 %v7642_v6  ;;  %v8671_v5 = vld [vmem:[#allocation20 + $0x48] sm:$0xff]  }
 0x554   :  { %3166 = vmatprep.subr.bf16.mxu1 %v7802_v28  ;;  %v8695_v6 = vld [vmem:[#allocation20 + $0xe8] sm:$0xff]  }
 0x556   :  { %3132 = vmatpush2.bf16.msra.mxu0 %v7641_v13  ;;  %v8673_v13 = vld [vmem:[#allocation20 + $0x40] sm:$0xff]  }
 0x557   :  { %3167 = vmatpush2.bf16.msra.mxu1 %v7801_v17  ;;  %3133 = vmatprep.subr.bf16.mxu0 %v7634_v18  ;;  %v8697_v17 = vld [vmem:[#allocation20 + $0xe0] sm:$0xff]  }
 0x558   :  { %3168 = vmatprep.subr.bf16.mxu1 %v7794_v49 }
 0x55a   :  { %3134 = vmatpush2.bf16.msra.mxu0 %v7633_v24  ;;  %v8698_v24 = vld [vmem:[#allocation20 + $0xa0] sm:$0xff]  }
 0x55b   :  { %3169 = vmatpush2.bf16.msra.mxu1 %v7793_v25  ;;  %8300 = vmatprep.subr.bf16.mxu0 %v8659_v29  ;;  %v8699_v29 = vld [vmem:[#allocation20 + $0xd8] sm:$0xff]  }
 0x55c   :  { %3170 = vmatprep.subr.bf16.mxu1 %v7786_v26  ;;  %v8675_v26 = vld [vmem:[#allocation20 + $0x178] sm:$0xff]  }
 0x55d   :  { %3136 = vmatmul.mubr.bf16.vlgmr.msra.gmra.mxu0 %v9251_v35  ;;  %v2879_v43 = vpop.f32.mrf.mxu0  ;;  %v8679_v35 = vld [vmem:[#allocation20 + $0x168] sm:$0xff]  }
 0x55e   :  { %8301 = vmatpush3.bf16.msra.mxu0 %v8660_v54 }
 0x55f   :  { %3171 = vmatpush2.bf16.msra.mxu1 %v7785_v31  ;;  %8302 = vmatprep.subr.bf16.mxu0 %v8661_v47  ;;  %v2881_v59 = vpop.f32.mrf.mxu0  ;;  %v8700_v31 = vld [vmem:[#allocation20 + $0x98] sm:$0xff]   ;;  %v8701_v47 = vld [vmem:[#allocation20 + $0xd0] sm:$0xff]  }
 0x560   :  { %3172 = vmatprep.subr.bf16.mxu1 %v7778_v32  ;;  %v8677_v32 = vld [vmem:[#allocation20 + $0x170] sm:$0xff]  }
 0x561   :  { %v2883_v3 = vpop.f32.mrf.mxu0 }
 0x562   :  { %8303 = vmatpush3.bf16.msra.mxu0 %v8662_v36  ;;  %v8680_v36 = vld [vmem:[#allocation20 + $0x128] sm:$0xff]  }
 0x563   :  { %3173 = vmatpush2.bf16.msra.mxu1 %v7777_v56  ;;  %8304 = vmatprep.subr.bf16.mxu0 %v8663_v38  ;;  %v2885_v11 = vpop.f32.mrf.mxu0  ;;  %v8703_v56 = vld [vmem:[#allocation20 + $0xc8] sm:$0xff]   ;;  %v8681_v38 = vld [vmem:[#allocation20 + $0x160] sm:$0xff]  }
 0x564   :  { %3174 = vmatprep.subr.bf16.mxu1 %v7770_v37  ;;  %v8704_v37 = vld [vmem:[#allocation20 + $0x88] sm:$0xff]  }
 0x566   :  { %8305 = vmatpush3.bf16.msra.mxu0 %v8664_v41  ;;  %v8683_v41 = vld [vmem:[#allocation20 + $0x158] sm:$0xff]  }
 0x567   :  { %3175 = vmatpush2.bf16.msra.mxu1 %v7769_v40  ;;  %8306 = vmatprep.subr.bf16.mxu0 %v8665_v12  ;;  %v8706_v40 = vld [vmem:[#allocation20 + $0x80] sm:$0xff]   ;;  %v8684_v12 = vld [vmem:[#allocation20 + $0x118] sm:$0xff]  }
 0x568   :  { %3176 = vmatprep.subr.bf16.mxu1 %v7762_v42  ;;  %v8707_v42 = vld [vmem:[#allocation20 + $0x1f8] sm:$0xff]  }
 0x56a   :  { %8307 = vmatpush3.bf16.msra.mxu0 %v8666_v15  ;;  %v8686_v15 = vld [vmem:[#allocation20 + $0x110] sm:$0xff]  }
 0x56b   :  { %3177 = vmatpush2.bf16.msra.mxu1 %v7761_v14  ;;  %8308 = vmatprep.subr.bf16.mxu0 %v8667_v45  ;;  %v8685_v14 = vld [vmem:[#allocation20 + $0x150] sm:$0xff]   ;;  %v8688_v45 = vld [vmem:[#allocation20 + $0x108] sm:$0xff]  }
 0x56c   :  { %8322 = vmatprep.subr.bf16.mxu1 %v8689_v46  ;;  %v8691_v46 = vld [vmem:[#allocation20 + $0x140] sm:$0xff]  }
 0x56e   :  { %3179 = vmatmul.mubr.bf16.vlgmr.msra.gmra.mxu1 %v9252_v62  ;;  %v2922_v0 = vpop.f32.mrf.mxu1  ;;  %8309 = vmatpush3.bf16.msra.mxu0 %v8668_v50  ;;  %v8692_v50 = vld [vmem:[#allocation20 + $0x100] sm:$0xff]  }
 0x56f   :  { %8323 = vmatpush3.bf16.msra.mxu1 %v8690_v52  ;;  %8310 = vmatprep.subr.bf16.mxu0 %v8669_v60  ;;  %v2923_v48 = vadd.f32 %v2922_v0, %v2879_v43  ;;  %v8687_v43 = vld [vmem:[#allocation20 + $0x148] sm:$0xff]  }
 0x570   :  { %v2924_v4 = vpop.f32.mrf.mxu1  ;;  %8324 = vmatprep.subr.bf16.mxu1 %v8693_v61 }
 0x571   :  { %v2925_v18 = vadd.f32 %v2924_v4, %v2881_v59 }
 0x572   :  { %v2926_v28 = vpop.f32.mrf.mxu1  ;;  %8311 = vmatpush3.bf16.msra.mxu0 %v8670_v1 }
 0x573   :  { %8325 = vmatpush3.bf16.msra.mxu1 %v8694_v19  ;;  %8312 = vmatprep.subr.bf16.mxu0 %v8671_v5  ;;  %v2927_v25 = vadd.f32 %v2926_v28, %v2883_v3 }
 0x574   :  { %v2928_v16 = vpop.f32.mrf.mxu1  ;;  %8326 = vmatprep.subr.bf16.mxu1 %v8695_v6 }
 0x575   :  { %v2929_v49 = vadd.f32 %v2928_v16, %v2885_v11  ;;  %v9935_v54 = vpack.c.bf16 %v2927_v25, %v2923_v48  ;;  %v8709_v11 = vld [vmem:[#allocation20 + $0x1f0] sm:$0xff]   ;;  %v8721_v48 = vld [vmem:[#allocation20 + $0x1c0] sm:$0xff]  }
 0x576   :  { %8313 = vmatpush3.bf16.msra.mxu0 %v8672_v7  ;;  %v8708_v7 = vld [vmem:[#allocation20 + $0x1b8] sm:$0xff]   ;;  %v8710_v16 = vld [vmem:[#allocation20 + $0x1b0] sm:$0xff]  }
 0x577   :  { %v9932_v51 = vpack.c.bf16 %v2929_v49, %v2925_v18  ;;  %8327 = vmatpush3.bf16.msra.mxu1 %v8696_v8  ;;  %8314 = vmatprep.subr.bf16.mxu0 %v8673_v13  ;;  %v8711_v13 = vld [vmem:[#allocation20 + $0x1e8] sm:$0xff]   ;;  %v8713_v18 = vld [vmem:[#allocation20 + $0x1e0] sm:$0xff]   ;;  %v8718_v25 = vld [vmem:[#allocation20 + $0x190] sm:$0xff]  }
 0x578   :  { %8328 = vmatprep.subr.bf16.mxu1 %v8697_v17  ;;  %v8712_v17 = vld [vmem:[#allocation20 + $0x1a8] sm:$0xff]   ;;  %v8714_v49 = vld [vmem:[#allocation20 + $0x1a0] sm:$0xff]  }
 0x579   :  { %3741 = vmatprep.mubr.bf16.mxu0 %v9932_v51 }
 0x57a   :  { %8315 = vmatpush3.bf16.msra.mxu0 %v8674_v53  ;;  %v8716_v53 = vld [vmem:[#allocation20 + $0x198] sm:$0xff]  }
 0x57b   :  { %8329 = vmatpush3.bf16.msra.mxu1 %v8698_v24  ;;  %8344 = vmatprep.subr.bf16.mxu0 %v8675_v26  ;;  %v8717_v24 = vld [vmem:[#allocation20 + $0x1d0] sm:$0xff]   ;;  %v8719_v26 = vld [vmem:[#allocation20 + $0x1c8] sm:$0xff]  }
 0x57c   :  { %8330 = vmatprep.subr.bf16.mxu1 %v8699_v29  ;;  %v8720_v29 = vld [vmem:[#allocation20 + $0x188] sm:$0xff]  }
 0x57d   :  { %3742 = vmatmul.mubr.bf16.vlgmr.msra.gmra.mxu0 %v9935_v54 }
 0x57e   :  { %8345 = vmatpush3.bf16.msra.mxu0 %v8676_v30  ;;  %v8722_v30 = vld [vmem:[#allocation20 + $0x180] sm:$0xff]  }
 0x57f   :  { %8331 = vmatpush3.bf16.msra.mxu1 %v8700_v31  ;;  %8346 = vmatprep.subr.bf16.mxu0 %v8677_v32 }
 0x580   :  { %8332 = vmatprep.subr.bf16.mxu1 %v8701_v47 }
 0x582   :  { %8347 = vmatpush3.bf16.msra.mxu0 %v8678_v33 }
 0x583   :  { %8333 = vmatpush3.bf16.msra.mxu1 %v8702_v34  ;;  %8348 = vmatprep.subr.bf16.mxu0 %v8679_v35 }
 0x584   :  { %8334 = vmatprep.subr.bf16.mxu1 %v8703_v56 }
 0x586   :  { %8349 = vmatpush3.bf16.msra.mxu0 %v8680_v36 }
 0x587   :  { %8335 = vmatpush3.bf16.msra.mxu1 %v8704_v37  ;;  %8350 = vmatprep.subr.bf16.mxu0 %v8681_v38 }
 0x588   :  { %8336 = vmatprep.subr.bf16.mxu1 %v8705_v23 }
 0x58a   :  { %8351 = vmatpush3.bf16.msra.mxu0 %v8682_v39 }
 0x58b   :  { %8337 = vmatpush3.bf16.msra.mxu1 %v8706_v40  ;;  %8352 = vmatprep.subr.bf16.mxu0 %v8683_v41 }
 0x58c   :  { %8366 = vmatprep.subr.bf16.mxu1 %v8707_v42 }
 0x58e   :  { %8353 = vmatpush3.bf16.msra.mxu0 %v8684_v12 }
 0x58f   :  { %8354 = vmatprep.subr.bf16.mxu0 %v8685_v14 }
 0x592   :  { %8355 = vmatpush3.bf16.msra.mxu0 %v8686_v15 }
 0x593   :  { %8356 = vmatprep.subr.bf16.mxu0 %v8687_v43 }
 0x596   :  { %8357 = vmatpush3.bf16.msra.mxu0 %v8688_v45 }
 0x597   :  { %8358 = vmatprep.subr.bf16.mxu0 %v8691_v46 }
 0x59a   :  { %8359 = vmatpush3.bf16.msra.mxu0 %v8692_v50 }
 0x59b   :  { %3974 = vmatprep.subr.bf16.mxu0 %v9932_v51  ;;  %v8715_v51 = vld [vmem:[#allocation20 + $0x1d8] sm:$0xff]  }
 0x59d   :  { %v2965_v52 = vpop.f32.mrf.mxu0 }
 0x59f   :  { %v2967_v59 = vpop.f32.mrf.mxu0 }
 0x5a1   :  { %v2969_v61 = vpop.f32.mrf.mxu0 }
 0x5a3   :  { %v2971_v1 = vpop.f32.mrf.mxu0 }
 0x5ae   :  { %v3008_v60 = vpop.f32.mrf.mxu1 }
 0x5af   :  { %v3009_v6 = vadd.f32 %v3008_v60, %v2965_v52 }
 0x5b0   :  { %v3010_v62 = vpop.f32.mrf.mxu1 }
 0x5b1   :  { %v3011_v4 = vadd.f32 %v3010_v62, %v2967_v59 }
 0x5b2   :  { %v3012_v0 = vpop.f32.mrf.mxu1 }
 0x5b3   :  { %v3013_v19 = vadd.f32 %v3012_v0, %v2969_v61 }
 0x5b4   :  { %v3014_v3 = vpop.f32.mrf.mxu1 }
 0x5b5   :  { %v3015_v5 = vadd.f32 %v3014_v3, %v2971_v1  ;;  %v9939_v8 = vpack.c.bf16 %v3013_v19, %v3009_v6 }
 0x5b7   :  { %v3192_v28 = vpack.c.bf16 %v3015_v5, %v3011_v4 }
 0x5b9   :  { %3782 = vmatprep.mubr.bf16.mxu1 %v3192_v28 }
 0x5ba   :  { %3783 = vmatmul.mubr.bf16.vlgmr.msra.gmra.mxu1 %v9939_v8 }
 0x5bb   :  { %8367 = vmatpush3.bf16.msra.mxu1 %v8708_v7 }
 0x5bc   :  { %8368 = vmatprep.subr.bf16.mxu1 %v8709_v11 }
 0x5bf   :  { %8369 = vmatpush3.bf16.msra.mxu1 %v8710_v16 }
 0x5c0   :  { %8370 = vmatprep.subr.bf16.mxu1 %v8711_v13 }
 0x5c3   :  { %8371 = vmatpush3.bf16.msra.mxu1 %v8712_v17 }
 0x5c4   :  { %8372 = vmatprep.subr.bf16.mxu1 %v8713_v18 }
 0x5c7   :  { %8373 = vmatpush3.bf16.msra.mxu1 %v8714_v49 }
 0x5c8   :  { %8374 = vmatprep.subr.bf16.mxu1 %v8715_v51 }
 0x5cb   :  { %8375 = vmatpush3.bf16.msra.mxu1 %v8716_v53 }
 0x5cc   :  { %8376 = vmatprep.subr.bf16.mxu1 %v8717_v24 }
 0x5cf   :  { %8377 = vmatpush3.bf16.msra.mxu1 %v8718_v25 }
 0x5d0   :  { %8378 = vmatprep.subr.bf16.mxu1 %v8719_v26 }
 0x5d3   :  { %8379 = vmatpush3.bf16.msra.mxu1 %v8720_v29 }
 0x5d4   :  { %8380 = vmatprep.subr.bf16.mxu1 %v8721_v48 }
 0x5d7   :  { %8381 = vmatpush3.bf16.msra.mxu1 %v8722_v30 }
 0x5d8   :  { %4120 = vmatprep.subr.bf16.mxu1 %v3192_v28 }
 0x5dd   :  { %v3051_v31 = vpop.f32.mrf.mxu0 }
 0x5df   :  { %v3053_v32 = vpop.f32.mrf.mxu0 }
 0x5e1   :  { %v3055_v33 = vpop.f32.mrf.mxu0 }
 0x5e3   :  { %v3057_v56 = vpop.f32.mrf.mxu0 }
 0x5ee   :  { %v3094_v47 = vpop.f32.mrf.mxu1 }
 0x5ef   :  { %v3095_v39 = vadd.f32 %v3094_v47, %v3051_v31 }
 0x5f0   :  { %v3096_v34 = vpop.f32.mrf.mxu1 }
 0x5f1   :  { %v3097_v38 = vadd.f32 %v3096_v34, %v3053_v32 }
 0x5f2   :  { %v3098_v35 = vpop.f32.mrf.mxu1 }
 0x5f3   :  { %v3099_v36 = vadd.f32 %v3098_v35, %v3055_v33 }
 0x5f4   :  { %v3100_v37 = vpop.f32.mrf.mxu1 }
 0x5f5   :  { %v3101_v23 = vadd.f32 %v3100_v37, %v3057_v56  ;;  %v9942_v41 = vpack.c.bf16 %v3099_v36, %v3095_v39 }
 0x5f7   :  { %v3194_v40 = vpack.c.bf16 %v3101_v23, %v3097_v38 }
 0x5f9   :  { %3823 = vmatprep.mubr.bf16.mxu0 %v3194_v40 }
 0x5fa   :  { %3824 = vmatmul.mubr.bf16.vlgmr.msra.gmra.mxu0 %v9942_v41 }
 0x5fb   :  { %3975 = vmatpush1.bf16.msra.mxu0 %v9935_v54  ;;  %3992 = vmatprep.mubr.bf16.mxu0 %v9612_v2 }
 0x5fc   :  { %4266 = vmatprep.subr.bf16.mxu0 %v3194_v40  ;;  %v4071_v40 = vstv %s7884_s24 }
 0x61d   :  { %v3137_v42 = vpop.f32.mrf.mxu0 }
 0x61f   :  { %v3139_v12 = vpop.f32.mrf.mxu0 }
 0x621   :  { %v3141_v15 = vpop.f32.mrf.mxu0 }
 0x623   :  { %v3143_v46 = vpop.f32.mrf.mxu0 }
 0x62e   :  { %v3180_v14 = vpop.f32.mrf.mxu1 }
 0x62f   :  { %v3181_v61 = vadd.f32 %v3180_v14, %v3137_v42  ;;  %v3925_v42 = vstv %s7883_s26  ;;  %v4363_v14 = vstv %s9958_s29 }
 0x630   :  { %v3182_v43 = vpop.f32.mrf.mxu1 }
 0x631   :  { %v3183_v59 = vadd.f32 %v3182_v43, %v3139_v12  ;;  %v4217_v12 = vstv %s7885_s2 }
 0x632   :  { %v3184_v45 = vpop.f32.mrf.mxu1 }
 0x633   :  { %v3185_v50 = vadd.f32 %v3184_v45, %v3141_v15  ;;  %v9253_v45 = vld [vmem:[#allocation10] sm:$0xff] }
 0x634   :  { %v3186_v52 = vpop.f32.mrf.mxu1 }
 0x635   :  { %v3187_v60 = vadd.f32 %v3186_v52, %v3143_v46  ;;  %v9947_v0 = vpack.c.bf16 %v3185_v50, %v3181_v61  ;;  %v3926_v46 = vmul.f32 %v9253_v45, %v3925_v42  ;;  %v9254_v50 = vld [vmem:[#allocation10 + $0x8] sm:$0xff] }
 0x636   :  { %v3927_v52 = vmul.f32 %v9254_v50, %v3925_v42 }
 0x637   :  { %v3196_v62 = vpack.c.bf16 %v3187_v60, %v3183_v59  ;;  %v4073_v59 = vmul.f32 %v9254_v50, %v4071_v40 }
 0x639   :  { %3864 = vmatprep.mubr.bf16.mxu1 %v3196_v62 }
 0x63a   :  { %3865 = vmatmul.mubr.bf16.vlgmr.msra.gmra.mxu1 %v9947_v0 }
 0x63b   :  { %4121 = vmatpush1.bf16.msra.mxu1 %v9939_v8  ;;  %4138 = vmatprep.mubr.bf16.mxu1 %v9612_v2 }
 0x63c   :  { %4412 = vmatprep.subr.bf16.mxu1 %v3196_v62 }
 0x63d   :  { %v8316_v54 = vpop.f32.mrf.mxu0 }
 0x63f   :  { %v8317_v1 = vpop.f32.mrf.mxu0 }
 0x640   :  { %v8318_v17 = vadd.f32 %v8317_v1, %v8316_v54  ;;  %v4218_v1 = vmul.f32 %v9253_v45, %v4217_v12 }
 0x641   :  { %v8319_v19 = vpop.f32.mrf.mxu0 }
 0x643   :  { %v8320_v3 = vpop.f32.mrf.mxu0 }
 0x644   :  { %v8321_v25 = vadd.f32 %v8320_v3, %v8319_v19  ;;  %v4364_v19 = vmul.f32 %v9253_v45, %v4363_v14 }
 0x67a   :  { %v8338_v4 = vpop.f32.mrf.mxu1 }
 0x67c   :  { %v8339_v6 = vpop.f32.mrf.mxu1 }
 0x67d   :  { %v8340_v16 = vadd.f32 %v8339_v6, %v8338_v4 }
 0x67e   :  { %v8341_v7 = vpop.f32.mrf.mxu1 }
 0x67f   :  { %v3785_v8 = vadd.f32 %v8340_v16, %v8318_v17  ;;  %v4219_v16 = vmul.f32 %v9254_v50, %v4217_v12 }
 0x680   :  { %v8342_v13 = vpop.f32.mrf.mxu1 }
 0x681   :  { %v8343_v53 = vadd.f32 %v8342_v13, %v8341_v7 }
 0x683   :  { %v3788_v31 = vadd.f32 %v8343_v53, %v8321_v25 }
 0x6ba   :  { %v8360_v5 = vpop.f32.mrf.mxu0 }
 0x6bc   :  { %v8361_v28 = vpop.f32.mrf.mxu0 }
 0x6bd   :  { %v8362_v18 = vadd.f32 %v8361_v28, %v8360_v5 }
 0x6be   :  { %v8363_v11 = vpop.f32.mrf.mxu0 }
 0x6bf   :  { %v3826_v26 = vadd.f32 %v8362_v18, %v3785_v8 }
 0x6c0   :  { %v8364_v49 = vpop.f32.mrf.mxu0 }
 0x6c1   :  { %v8365_v29 = vadd.f32 %v8364_v49, %v8363_v11 }
 0x6c3   :  { %v3829_v33 = vadd.f32 %v8365_v29, %v3788_v31 }
 0x6fa   :  { %v8382_v51 = vpop.f32.mrf.mxu1 }
 0x6fc   :  { %v8383_v24 = vpop.f32.mrf.mxu1 }
 0x6fd   :  { %v8384_v48 = vadd.f32 %v8383_v24, %v8382_v51  ;;  %v4365_v24 = vmul.f32 %v9254_v50, %v4363_v14 }
 0x6fe   :  { %v8385_v30 = vpop.f32.mrf.mxu1 }
 0x6ff   :  { %v3867_v32 = vadd.f32 %v8384_v48, %v3826_v26 }
 0x700   :  { %v8386_v47 = vpop.f32.mrf.mxu1 }
 0x701   :  { %v8387_v34 = vadd.f32 %v8386_v47, %v8385_v30  ;;  %3911 = vperm.xlu1 %8594, %v3867_v32  }
 0x703   :  { %v3870_v35 = vadd.f32 %v8387_v34, %v3829_v33 }
 0x705   :  { %3916 = vperm.xlu0 %8596, %v3870_v35   ;;  %8595 = vset.pattern.permute.xlu1 %v9614_v57 }
 0x706   :  { %4058 = vperm.xlu1 %8595, %v3867_v32  }
 0x709   :  { %8597 = vset.pattern.permute.xlu0 %v9616_v9 }
 0x70a   :  { %4350 = vperm.xlu0 %8597, %v3867_v32   ;;  %4062 = vperm.xlu1 %8595, %v3870_v35  }
 0x70e   :  { %8598 = vset.pattern.permute.xlu0 %v9617_v10 }
 0x70f   :  { %4204 = vperm.xlu0 %8598, %v3867_v32  }
 0x713   :  { %4208 = vperm.xlu0 %8598, %v3870_v35  }
 0x717   :  { %8599 = vset.pattern.permute.xlu0 %v9616_v9 }
 0x718   :  { %4354 = vperm.xlu0 %8599, %v3870_v35  }
 0x71c   :  { %8601 = vset.pattern.permute.xlu0 %v9615_v58 }
 0x733   :  { %3873 = vxpose.xlu1.b32.start [1/2] (short) (narrow) %v3867_v32, 8 }
 0x737   :  { %3874 = vxpose.xlu1.b32.end [2/2] (short) (narrow) %v3870_v35, 8 }
 0x755   :  { %8600 = vset.pattern.permute.xlu1 %v9615_v58  ;;  %v4072_v58 = vmul.f32 %v9253_v45, %v4071_v40 }
 0x77c   :  { %v3912_v36 = vpop.permute.xlu1 %3911 }
 0x780   :  { %v3917_v56 = vpop.permute.xlu0 %3916 }
 0x781   :  { %v4059_v38 = vpop.permute.xlu1 %4058 }
 0x785   :  { %v4351_v37 = vpop.permute.xlu0 %4350  ;;  %v4063_v39 = vpop.permute.xlu1 %4062 }
 0x78a   :  { %v4205_v23 = vpop.permute.xlu0 %4204 }
 0x78e   :  { %v4209_v15 = vpop.permute.xlu0 %4208 }
 0x793   :  { %v4355_v51 = vpop.permute.xlu0 %4354 }
 0x7af   :  { %v3889_v43 = vpop.trf.xlu1 }
 0x7b0   :  { %v3922_v60 = vrot.slane %v3889_v43, %v9832_v20  ;;  %v4068_v61 = vrot.slane %v3889_v43, %v9834_v21  ;;  %v4214_v62 = vrot.slane %v3889_v43, %v9836_v22  ;;  %v4360_v54 = vrot.slane %v3889_v43, %v9838_v27 }
 0x7b2   :  { %v3923_v3 = vadd.f32 %v3922_v60, %v3912_v36  ;;  %v3924_v4 = vadd.f32 %v3922_v60, %v3917_v56  ;;  %v4069_v5 = vadd.f32 %v4068_v61, %v4059_v38  ;;  %v4070_v6 = vadd.f32 %v4068_v61, %v4063_v39 }
 0x7b3   :  { %v4215_v28 = vadd.f32 %v4214_v62, %v4205_v23  ;;  %v4216_v7 = vadd.f32 %v4214_v62, %v4209_v15  ;;  %v4361_v11 = vadd.f32 %v4360_v54, %v4351_v37  ;;  %v4362_v25 = vadd.f32 %v4360_v54, %v4355_v51 }
 0x7b4   :  { %v4074_v13 = vadd.f32 %v4072_v58, %v4069_v5  ;;  %v3928_v17 = vadd.f32 %v3926_v46, %v3923_v3  ;;  %v3929_v18 = vadd.f32 %v3927_v52, %v3924_v4  ;;  %v4075_v49 = vadd.f32 %v4073_v59, %v4070_v6 }
 0x7b5   :  { %v4220_v8 = vadd.f32 %v4218_v1, %v4215_v28  ;;  %v4366_v53 = vadd.f32 %v4364_v19, %v4361_v11  ;;  %v4221_v47 = vadd.f32 %v4219_v16, %v4216_v7  ;;  %v4367_v40 = vadd.f32 %v4365_v24, %v4362_v25 }
 0x7b6   :  { %v4076_v26 = vmul.f32 0.2, %v4074_v13  ;;  %v3930_v29 = vmul.f32 0.2, %v3928_v17  ;;  %v3931_v48 = vmul.f32 0.2, %v3929_v18 }
 0x7b7   :  { %v4222_v30 = vmul.f32 0.2, %v4220_v8  ;;  %v4077_v31 = vmul.f32 0.2, %v4075_v49  ;;  %v4368_v32 = vmul.f32 0.2, %v4366_v53 }
 0x7b8   :  { %v4078_v33 = vmax.f32 %v4074_v13, %v4076_v26  ;;  %v3932_v34 = vmax.f32 %v3928_v17, %v3930_v29  ;;  %v3933_v35 = vmax.f32 %v3929_v18, %v3931_v48  ;;  %v4223_v39 = vmul.f32 0.2, %v4221_v47 }
 0x7b9   :  { %v4224_v56 = vmax.f32 %v4220_v8, %v4222_v30  ;;  %v4079_v38 = vmax.f32 %v4075_v49, %v4077_v31  ;;  %v4370_v23 = vmax.f32 %v4366_v53, %v4368_v32  ;;  %v4369_v45 = vmul.f32 0.2, %v4367_v40 }
 0x7ba   :  { %v4080_v36 = vadd.f32 %v4078_v33, %v9848_v63  ;;  %v3934_v37 = vadd.f32 %v3932_v34, %v9848_v63  ;;  %v3935_v14 = vadd.f32 %v3933_v35, %v9846_v55  ;;  %v4225_v43 = vmax.f32 %v4221_v47, %v4223_v39 }
 0x7bb   :  { %v4226_v15 = vadd.f32 %v4224_v56, %v9848_v63  ;;  %v4081_v50 = vadd.f32 %v4079_v38, %v9846_v55  ;;  %v4372_v52 = vadd.f32 %v4370_v23, %v9848_v63  ;;  %v4371_v62 = vmax.f32 %v4367_v40, %v4369_v45 }
 0x7bc   :  { %v4082_v42 = vsel %vm821_vm3, %v4080_v36, -inf  ;;  %v3936_v12 = vsel %vm821_vm3, %v3934_v37, -inf  ;;  %v3939_v58 = vsel %vm821_vm3, %v3935_v14, -inf  ;;  %v4227_v61 = vadd.f32 %v4225_v43, %v9846_v55 }
 0x7bd   :  { %4083 = vmax.xlane.f32.xlu0 %v4082_v42  ;;  %3937 = vmax.xlane.f32.xlu1 %v3936_v12  ;;  %v4228_v46 = vsel %vm821_vm3, %v4226_v15, -inf  ;;  %v4085_v59 = vsel %vm821_vm3, %v4081_v50, -inf  ;;  %v4374_v60 = vsel %vm821_vm3, %v4372_v52, -inf  ;;  %v4373_v1 = vadd.f32 %v4371_v62, %v9846_v55  ;;  %v8734_v62 = vld [vmem:[#allocation22 + $0xa4] ss:$16 sps:$4 sm:$0xff]  }
 0x7be   :  { %v4231_v54 = vsel %vm821_vm3, %v4227_v61, -inf }
 0x7bf   :  { %v4377_v19 = vsel %vm821_vm3, %v4373_v1, -inf }
 0x7c1   :  { %3940 = vmax.xlane.f32.xlu0 %v3939_v58  ;;  %4229 = vmax.xlane.f32.xlu1 %v4228_v46 }
 0x7c5   :  { %4086 = vmax.xlane.f32.xlu0 %v4085_v59  ;;  %4375 = vmax.xlane.f32.xlu1 %v4374_v60  ;;  %v8728_v59 = vld [vmem:[#allocation22 + $0xc4] ss:$16 sps:$4 sm:$0xff]   ;;  %v8729_v60 = vld [vmem:[#allocation22 + $0x2e0] ss:$16 sps:$4 sm:$0xff]  }
 0x7c9   :  { %4232 = vmax.xlane.f32.xlu0 %v4231_v54  ;;  %v8737_v54 = vld [vmem:[#allocation22 + $0x2c4] ss:$16 sps:$4 sm:$0xff]  }
 0x7cd   :  { %4378 = vmax.xlane.f32.xlu0 %v4377_v19  ;;  %v8735_v19 = vld [vmem:[#allocation22 + $0x2c0] ss:$16 sps:$4 sm:$0xff]  }
 0x846   :  { %v4084_v3 = vpop.xlane.xlu0 %4083  ;;  %v3938_v4 = vpop.xlane.xlu1 %3937 }
 0x847   :  { %v4088_v5 = vsub.f32 %v4080_v36, %v4084_v3  ;;  %v3942_v6 = vsub.f32 %v3934_v37, %v3938_v4  ;;  %v8740_v3 = vld [vmem:[#allocation22 + $0x84] ss:$16 sps:$4 sm:$0xff]  }
 0x848   :  { %v8743_v4 = vld [vmem:[#allocation22 + $0x2a4] ss:$16 sps:$4 sm:$0xff]  }
 0x849   :  { %v3944_v28 = vmul.f32 1.442695, %v3942_v6  ;;  %v4090_v7 = vmul.f32 1.442695, %v4088_v5  ;;  %v8738_v5 = vld [vmem:[#allocation22 + $0x80] ss:$16 sps:$4 sm:$0xff]  }
 0x84a   :  { %v3941_v11 = vpop.xlane.xlu0 %3940  ;;  %v4230_v16 = vpop.xlane.xlu1 %4229  ;;  %v8741_v6 = vld [vmem:[#allocation22 + $0x2a0] ss:$16 sps:$4 sm:$0xff]  }
 0x84b   :  { %v3943_v13 = vsub.f32 %v3935_v14, %v3941_v11  ;;  %v4234_v17 = vsub.f32 %v4226_v15, %v4230_v16  ;;  %9187 = vpow2.f32 %v3944_v28  ;;  %v8746_v28 = vld [vmem:[#allocation22 + $0x64] ss:$16 sps:$4 sm:$0xff]   ;;  %v8744_v11 = vld [vmem:[#allocation22 + $0x60] ss:$16 sps:$4 sm:$0xff]  }
 0x84c   :  { %9189 = vpow2.f32 %v4090_v7  ;;  %v8749_v7 = vld [vmem:[#allocation22 + $0x284] ss:$16 sps:$4 sm:$0xff]   ;;  %v8747_v16 = vld [vmem:[#allocation22 + $0x280] ss:$16 sps:$4 sm:$0xff]  }
 0x84d   :  { %v3946_v18 = vmul.f32 1.442695, %v3943_v13  ;;  %v4236_v49 = vmul.f32 1.442695, %v4234_v17  ;;  %v8752_v13 = vld [vmem:[#allocation22 + $0x44] ss:$16 sps:$4 sm:$0xff]  }
 0x84e   :  { %v4087_v51 = vpop.xlane.xlu0 %4086  ;;  %v4376_v8 = vpop.xlane.xlu1 %4375  ;;  %v8755_v17 = vld [vmem:[#allocation22 + $0x264] ss:$16 sps:$4 sm:$0xff]  }
 0x84f   :  { %9191 = vpow2.f32 %v3946_v18  ;;  %v4089_v53 = vsub.f32 %v4081_v50, %v4087_v51  ;;  %v4380_v24 = vsub.f32 %v4372_v52, %v4376_v8  ;;  %v8723_v52 = vld [vmem:[#allocation22 + $0xe0] ss:$16 sps:$4 sm:$0xff]   ;;  %v8758_v51 = vld [vmem:[#allocation22 + $0x24] ss:$16 sps:$4 sm:$0xff]  }
 0x850   :  { %9193 = vpow2.f32 %v4236_v49  ;;  %v8750_v18 = vld [vmem:[#allocation22 + $0x40] ss:$16 sps:$4 sm:$0xff]   ;;  %v8761_v8 = vld [vmem:[#allocation22 + $0x244] ss:$16 sps:$4 sm:$0xff]  }
 0x851   :  { %v4092_v25 = vmul.f32 1.442695, %v4089_v53  ;;  %v4382_v26 = vmul.f32 1.442695, %v4380_v24  ;;  %v8753_v49 = vld [vmem:[#allocation22 + $0x260] ss:$16 sps:$4 sm:$0xff]  }
 0x852   :  { %v4233_v29 = vpop.xlane.xlu0 %4232  ;;  %v8756_v53 = vld [vmem:[#allocation22 + $0x20] ss:$16 sps:$4 sm:$0xff]  }
 0x853   :  { %9195 = vpow2.f32 %v4092_v25  ;;  %v4235_v48 = vsub.f32 %v4227_v61, %v4233_v29  ;;  %v8731_v61 = vld [vmem:[#allocation22 + $0x2e4] ss:$16 sps:$4 sm:$0xff]   ;;  %v8759_v24 = vld [vmem:[#allocation22 + $0x240] ss:$16 sps:$4 sm:$0xff]  }
 0x854   :  { %9197 = vpow2.f32 %v4382_v26  ;;  %v8764_v25 = vld [vmem:[#allocation22 + $0x4] ss:$16 sps:$4 sm:$0xff]   ;;  %v8762_v29 = vld [vmem:[#allocation22] ss:$16 sps:$4 sm:$0xff]  }
 0x855   :  { %v4238_v30 = vmul.f32 1.442695, %v4235_v48  ;;  %v8767_v26 = vld [vmem:[#allocation22 + $0x224] ss:$16 sps:$4 sm:$0xff]   ;;  %v8765_v48 = vld [vmem:[#allocation22 + $0x220] ss:$16 sps:$4 sm:$0xff]  }
 0x856   :  { %v4379_v31 = vpop.xlane.xlu0 %4378 }
 0x857   :  { %9199 = vpow2.f32 %v4238_v30  ;;  %v4381_v32 = vsub.f32 %v4373_v1, %v4379_v31  ;;  %v8732_v1 = vld [vmem:[#allocation22 + $0xa0] ss:$16 sps:$4 sm:$0xff]   ;;  %v8770_v30 = vld [vmem:[#allocation22 + $0x1e4] ss:$16 sps:$4 sm:$0xff]  }
 0x858   :  { %v9188_v47 = vpop.eup %9187  ;;  %v8773_v31 = vld [vmem:[#allocation22 + $0x204] ss:$16 sps:$4 sm:$0xff]  }
 0x859   :  { %v4384_v33 = vmul.f32 1.442695, %v4381_v32  ;;  %v3948_v34 = vsel %vm821_vm3, %v9188_v47, 0.0  ;;  %v9190_v35 = vpop.eup %9189  ;;  %v8768_v32 = vld [vmem:[#allocation22 + $0x1e0] ss:$16 sps:$4 sm:$0xff]  }
 0x85a   :  { %3949 = vadd.xlane.f32.xlu1 %v3948_v34  ;;  %v4094_v38 = vsel %vm821_vm3, %v9190_v35, 0.0  ;;  %v8779_v34 = vld [vmem:[#allocation22 + $0x3e4] ss:$16 sps:$4 sm:$0xff]  }
 0x85b   :  { %9201 = vpow2.f32 %v4384_v33  ;;  %v8776_v33 = vld [vmem:[#allocation22 + $0x1c4] ss:$16 sps:$4 sm:$0xff]  }
 0x85c   :  { %v9192_v56 = vpop.eup %9191 }
 0x85d   :  { %v3951_v36 = vsel %vm821_vm3, %v9192_v56, 0.0  ;;  %v3956_v37 = vpack.c.bf16 %v9192_v56, %v9188_v47  ;;  %v9194_v23 = vpop.eup %9193  ;;  %v8771_v47 = vld [vmem:[#allocation22 + $0x200] ss:$16 sps:$4 sm:$0xff]  }
 0x85e   :  { %3952 = vadd.xlane.f32.xlu0 %v3951_v36  ;;  %4095 = vadd.xlane.f32.xlu1 %v4094_v38  ;;  %v4240_v12 = vsel %vm821_vm3, %v9194_v23, 0.0  ;;  %v8777_v56 = vld [vmem:[#allocation22 + $0x3e0] ss:$16 sps:$4 sm:$0xff]   ;;  %v8782_v36 = vld [vmem:[#allocation22 + $0x1a4] ss:$16 sps:$4 sm:$0xff]  }
 0x85f   :  { %7887 = vmatmul.mubr.msk.bf16.vlgmr.msra.gmra.mxu0 %vm821_vm3, %v3956_v37  ;;  %v8785_v37 = vld [vmem:[#allocation22 + $0x3c4] ss:$16 sps:$4 sm:$0xff]   ;;  %v8780_v38 = vld [vmem:[#allocation22 + $0x1a0] ss:$16 sps:$4 sm:$0xff]  }
 0x860   :  { %v9196_v39 = vpop.eup %9195  ;;  %4267 = vmatpush1.bf16.msra.mxu0 %v9942_v41  ;;  %4284 = vmatprep.mubr.bf16.mxu0 %v9612_v2 }
 0x861   :  { %v4097_v40 = vsel %vm821_vm3, %v9196_v39, 0.0  ;;  %v4102_v42 = vpack.c.bf16 %v9196_v39, %v9190_v35  ;;  %v9198_v14 = vpop.eup %9197  ;;  %v8774_v35 = vld [vmem:[#allocation22 + $0x1c0] ss:$16 sps:$4 sm:$0xff]   ;;  %v8788_v39 = vld [vmem:[#allocation22 + $0x184] ss:$16 sps:$4 sm:$0xff]  }
 0x862   :  { %4098 = vadd.xlane.f32.xlu0 %v4097_v40  ;;  %4241 = vadd.xlane.f32.xlu1 %v4240_v12  ;;  %v4386_v45 = vsel %vm821_vm3, %v9198_v14, 0.0  ;;  %v8791_v40 = vld [vmem:[#allocation22 + $0x3a4] ss:$16 sps:$4 sm:$0xff]   ;;  %v8789_v12 = vld [vmem:[#allocation22 + $0x3a0] ss:$16 sps:$4 sm:$0xff]  }
 0x863   :  { %7890 = vmatmul.mubr.msk.bf16.vlgmr.msra.gmra.mxu1 %vm821_vm3, %v4102_v42  ;;  %v8786_v42 = vld [vmem:[#allocation22 + $0x180] ss:$16 sps:$4 sm:$0xff]  }
 0x864   :  { %v9200_v15 = vpop.eup %9199  ;;  %4413 = vmatpush1.bf16.msra.mxu1 %v9947_v0  ;;  %4430 = vmatprep.mubr.bf16.mxu1 %v9612_v2  ;;  %v8725_v0 = vld [vmem:[#allocation22 + $0xe4] ss:$16 sps:$4 sm:$0xff]   ;;  %v8726_v2 = vld [vmem:[#allocation22 + $0xc0] ss:$16 sps:$4 sm:$0xff]  }
 0x865   :  { %v4243_v43 = vsel %vm821_vm3, %v9200_v15, 0.0  ;;  %v4248_v41 = vpack.c.bf16 %v9200_v15, %v9194_v23  ;;  %6079 = vmatprep.subr.bf16.mxu0 %v8725_v0  ;;  %6122 = vmatprep.subr.bf16.mxu1 %v8731_v61  ;;  %v8783_v23 = vld [vmem:[#allocation22 + $0x3c0] ss:$16 sps:$4 sm:$0xff]   ;;  %v8797_v15 = vld [vmem:[#allocation22 + $0x384] ss:$16 sps:$4 sm:$0xff]  }
 0x866   :  { %4244 = vadd.xlane.f32.xlu0 %v4243_v43  ;;  %4387 = vadd.xlane.f32.xlu1 %v4386_v45  ;;  %v8792_v43 = vld [vmem:[#allocation22 + $0x160] ss:$16 sps:$4 sm:$0xff]   ;;  %v8800_v45 = vld [vmem:[#allocation22 + $0x144] ss:$16 sps:$4 sm:$0xff]  }
 0x867   :  { %7893 = vmatmul.mubr.msk.bf16.vlgmr.msra.gmra.mxu0 %vm821_vm3, %v4248_v41  ;;  %v8795_v41 = vld [vmem:[#allocation22 + $0x380] ss:$16 sps:$4 sm:$0xff]   ;;  %v8809_v0 = vld [vmem:[#allocation22 + $0x344] ss:$16 sps:$4 sm:$0xff]  }
 0x868   :  { %v9202_v58 = vpop.eup %9201  ;;  %6080 = vmatpush1.bf16.msra.mxu0 %v8723_v52  ;;  %v8806_v52 = vld [vmem:[#allocation22 + $0x124] ss:$16 sps:$4 sm:$0xff]  }
 0x869   :  { %v4389_v46 = vsel %vm821_vm3, %v9202_v58, 0.0  ;;  %v4394_v50 = vpack.c.bf16 %v9202_v58, %v9198_v14  ;;  %6081 = vmatprep.subr.bf16.mxu0 %v8728_v59  ;;  %v8794_v14 = vld [vmem:[#allocation22 + $0x164] ss:$16 sps:$4 sm:$0xff]   ;;  %v8807_v59 = vld [vmem:[#allocation22 + $0x340] ss:$16 sps:$4 sm:$0xff]  }
 0x86a   :  { %4390 = vadd.xlane.f32.xlu0 %v4389_v46  ;;  %v8803_v58 = vld [vmem:[#allocation22 + $0x364] ss:$16 sps:$4 sm:$0xff]   ;;  %v8798_v46 = vld [vmem:[#allocation22 + $0x140] ss:$16 sps:$4 sm:$0xff]  }
 0x86b   :  { %7896 = vmatmul.mubr.msk.bf16.vlgmr.msra.gmra.mxu1 %vm821_vm3, %v4394_v50  ;;  %v8801_v50 = vld [vmem:[#allocation22 + $0x360] ss:$16 sps:$4 sm:$0xff]   ;;  %v8815_v61 = vld [vmem:[#allocation22 + $0x324] ss:$16 sps:$4 sm:$0xff]  }
 0x86c   :  { %6082 = vmatpush1.bf16.msra.mxu0 %v8726_v2  ;;  %6123 = vmatpush1.bf16.msra.mxu1 %v8729_v60  ;;  %v8804_v2 = vld [vmem:[#allocation22 + $0x120] ss:$16 sps:$4 sm:$0xff]   ;;  %v8812_v60 = vld [vmem:[#allocation22 + $0x104] ss:$16 sps:$4 sm:$0xff]  }
 0x86d   :  { %6083 = vmatprep.subr.bf16.mxu0 %v8734_v62  ;;  %6124 = vmatprep.subr.bf16.mxu1 %v8737_v54  ;;  %v8810_v62 = vld [vmem:[#allocation22 + $0x100] ss:$16 sps:$4 sm:$0xff]  }
 0x86e   :  { %v8813_v54 = vld [vmem:[#allocation22 + $0x320] ss:$16 sps:$4 sm:$0xff]  }
 0x870   :  { %6084 = vmatpush1.bf16.msra.mxu0 %v8732_v1  ;;  %6125 = vmatpush1.bf16.msra.mxu1 %v8735_v19  ;;  %v8818_v1 = vld [vmem:[#allocation22 + $0x304] ss:$16 sps:$4 sm:$0xff]  }
 0x871   :  { %6085 = vmatprep.subr.bf16.mxu0 %v8740_v3  ;;  %6126 = vmatprep.subr.bf16.mxu1 %v8743_v4  ;;  %v8821_v19 = vld [vmem:[#allocation22 + $0x4e4] ss:$16 sps:$4 sm:$0xff]   ;;  %v8816_v3 = vld [vmem:[#allocation22 + $0x300] ss:$16 sps:$4 sm:$0xff]  }
 0x872   :  { %v8827_v4 = vld [vmem:[#allocation22 + $0x6e4] ss:$16 sps:$4 sm:$0xff]  }
 0x874   :  { %6086 = vmatpush1.bf16.msra.mxu0 %v8738_v5  ;;  %6127 = vmatpush1.bf16.msra.mxu1 %v8741_v6 }
 0x875   :  { %6087 = vmatprep.subr.bf16.mxu0 %v8746_v28  ;;  %6128 = vmatprep.subr.bf16.mxu1 %v8749_v7 }
 0x878   :  { %6088 = vmatpush1.bf16.msra.mxu0 %v8744_v11  ;;  %6129 = vmatpush1.bf16.msra.mxu1 %v8747_v16 }
 0x879   :  { %6089 = vmatprep.subr.bf16.mxu0 %v8752_v13  ;;  %6130 = vmatprep.subr.bf16.mxu1 %v8755_v17  ;;  %v4007_v17 = vld [vmem:[%s10202_s10] sm:$0x3] }
 0x87c   :  { %6090 = vmatpush1.bf16.msra.mxu0 %v8750_v18  ;;  %6131 = vmatpush1.bf16.msra.mxu1 %v8753_v49 }
 0x87d   :  { %6091 = vmatprep.subr.bf16.mxu0 %v8758_v51  ;;  %6132 = vmatprep.subr.bf16.mxu1 %v8761_v8  ;;  %v4023_v51 = vld [vmem:[%s10203_s11] sm:$0x3]  ;;  %v4153_v8 = vld [vmem:[%s10202_s10 + $0x2] sm:$0x3] }
 0x880   :  { %6092 = vmatpush1.bf16.msra.mxu0 %v8756_v53  ;;  %6133 = vmatpush1.bf16.msra.mxu1 %v8759_v24 }
 0x881   :  { %6093 = vmatprep.subr.bf16.mxu0 %v8764_v25  ;;  %6134 = vmatprep.subr.bf16.mxu1 %v8767_v26  ;;  %v4012_v25 = vrot.slane %v4007_v17, %v9832_v20  ;;  %v4016_v26 = vrot.slane %v4007_v17, %v9834_v21 }
 0x884   :  { %6094 = vmatpush1.bf16.msra.mxu0 %v8762_v29  ;;  %6135 = vmatpush1.bf16.msra.mxu1 %v8765_v48  ;;  %v4169_v29 = vld [vmem:[%s10203_s11 + $0x2] sm:$0x3] }
 0x885   :  { %6095 = vmatprep.subr.bf16.mxu0 %v8770_v30  ;;  %6136 = vmatprep.subr.bf16.mxu1 %v8773_v31  ;;  %v4028_v31 = vrot.slane %v4023_v51, %v9832_v20 }
 0x888   :  { %6096 = vmatpush2.bf16.msra.mxu0 %v8768_v32  ;;  %6137 = vmatpush1.bf16.msra.mxu1 %v8771_v47  ;;  %v4158_v47 = vrot.slane %v4153_v8, %v9832_v20 }
 0x889   :  { %6097 = vmatprep.subr.bf16.mxu0 %v8776_v33  ;;  %6138 = vmatprep.subr.bf16.mxu1 %v8779_v34  ;;  %v4299_v33 = vld [vmem:[%s10202_s10 + $0x4] sm:$0x3] }
 0x88a   :  { %v4315_v34 = vld [vmem:[%s10203_s11 + $0x4] sm:$0x3] }
 0x88c   :  { %6098 = vmatpush2.bf16.msra.mxu0 %v8774_v35  ;;  %6139 = vmatpush2.bf16.msra.mxu1 %v8777_v56  ;;  %v4032_v56 = vrot.slane %v4023_v51, %v9834_v21 }
 0x88d   :  { %6099 = vmatprep.subr.bf16.mxu0 %v8782_v36  ;;  %6140 = vmatprep.subr.bf16.mxu1 %v8785_v37 }
 0x890   :  { %6100 = vmatpush2.bf16.msra.mxu0 %v8780_v38  ;;  %6141 = vmatpush2.bf16.msra.mxu1 %v8783_v23  ;;  %v4174_v38 = vrot.slane %v4169_v29, %v9832_v20  ;;  %v4162_v23 = vrot.slane %v4153_v8, %v9834_v21 }
 0x891   :  { %6101 = vmatprep.subr.bf16.mxu0 %v8788_v39  ;;  %6142 = vmatprep.subr.bf16.mxu1 %v8791_v40  ;;  %v4445_v39 = vld [vmem:[%s10202_s10 + $0x6] sm:$0x3]  ;;  %s8195_s10 = sld [smem:[#allocation28 + $0x8]] }
 0x894   :  { %6102 = vmatpush2.bf16.msra.mxu0 %v8786_v42  ;;  %6143 = vmatpush2.bf16.msra.mxu1 %v8789_v12 }
 0x895   :  { %6103 = vmatprep.subr.bf16.mxu0 %v8794_v14  ;;  %6144 = vmatprep.subr.bf16.mxu1 %v8797_v15  ;;  %v4461_v15 = vld [vmem:[%s10203_s11 + $0x6] sm:$0x3]  ;;  %s10106_s11 = sld [smem:[#allocation28 + $0x9]] }
 0x898   :  { %6104 = vmatpush2.bf16.msra.mxu0 %v8792_v43  ;;  %6145 = vmatpush2.bf16.msra.mxu1 %v8795_v41 }
 0x899   :  { %6105 = vmatprep.subr.bf16.mxu0 %v8800_v45  ;;  %6146 = vmatprep.subr.bf16.mxu1 %v8803_v58  ;;  %v4178_v45 = vrot.slane %v4169_v29, %v9834_v21  ;;  %v4304_v58 = vrot.slane %v4299_v33, %v9832_v20 }
 0x89c   :  { %6106 = vmatpush2.bf16.msra.mxu0 %v8798_v46  ;;  %6147 = vmatpush2.bf16.msra.mxu1 %v8801_v50  ;;  %v4320_v46 = vrot.slane %v4315_v34, %v9832_v20  ;;  %v4308_v50 = vrot.slane %v4299_v33, %v9834_v21 }
 0x89d   :  { %6107 = vmatprep.subr.bf16.mxu0 %v8806_v52  ;;  %6148 = vmatprep.subr.bf16.mxu1 %v8809_v0 }
 0x8a0   :  { %6108 = vmatpush2.bf16.msra.mxu0 %v8804_v2  ;;  %6149 = vmatpush2.bf16.msra.mxu1 %v8807_v59  ;;  %v10033_v2 = vrot.slane %v4315_v34, %v9834_v21  ;;  %v10036_v59 = vrot.slane %v4445_v39, %v9832_v20 }
 0x8a1   :  { %6109 = vmatprep.subr.bf16.mxu0 %v8812_v60  ;;  %6150 = vmatprep.subr.bf16.mxu1 %v8815_v61 }
 0x8a4   :  { %6110 = vmatpush2.bf16.msra.mxu0 %v8810_v62  ;;  %6151 = vmatpush2.bf16.msra.mxu1 %v8813_v54 }
 0x8a5   :  { %6152 = vmatprep.subr.bf16.mxu1 %v8818_v1  ;;  %6165 = vmatprep.subr.bf16.mxu0 %v8821_v19  ;;  %v10039_v19 = vrot.slane %v4461_v15, %v9832_v20 }
 0x8a8   :  { %6153 = vmatpush2.bf16.msra.mxu1 %v8816_v3  ;;  %v10042_v3 = vrot.slane %v4445_v39, %v9834_v21 }
 0x8a9   :  { %6208 = vmatprep.subr.bf16.mxu1 %v8827_v4 }
 0x8e3   :  { %v3950_v5 = vpop.xlane.xlu1 %3949 }
 0x8e4   :  { %9203 = vrcp.f32 %v3950_v5 }
 0x8e7   :  { %v3953_v6 = vpop.xlane.xlu0 %3952  ;;  %v4096_v28 = vpop.xlane.xlu1 %4095 }
 0x8e8   :  { %9205 = vrcp.f32 %v3953_v6 }
 0x8e9   :  { %9207 = vrcp.f32 %v4096_v28 }
 0x8eb   :  { %v4099_v7 = vpop.xlane.xlu0 %4098  ;;  %v4242_v11 = vpop.xlane.xlu1 %4241 }
 0x8ec   :  { %9209 = vrcp.f32 %v4099_v7 }
 0x8ed   :  { %9211 = vrcp.f32 %v4242_v11 }
 0x8ef   :  { %v4245_v16 = vpop.xlane.xlu0 %4244  ;;  %v4388_v13 = vpop.xlane.xlu1 %4387 }
 0x8f0   :  { %9213 = vrcp.f32 %v4245_v16 }
 0x8f1   :  { %v9204_v18 = vpop.eup %9203  ;;  %9215 = vrcp.f32 %v4388_v13 }
 0x8f3   :  { %v4391_v53 = vpop.xlane.xlu0 %4390 }
 0x8f4   :  { %9217 = vrcp.f32 %v4391_v53 }
 0x8f5   :  { %v9206_v30 = vpop.eup %9205 }
 0x8f6   :  { %v9208_v35 = vpop.eup %9207 }
 0x8f9   :  { %v9210_v60 = vpop.eup %9209 }
 0x8fa   :  { %v9212_v4 = vpop.eup %9211 }
 0x91f   :  { %v3994_v49 = vpop.f32.mrf.mxu0 }
 0x920   :  { %v4003_v24 = vmul.f32 %v9204_v18, %v3994_v49 }
 0x921   :  { %v3996_v48 = vpop.f32.mrf.mxu0 }
 0x922   :  { %v4004_v32 = vmul.f32 %v9204_v18, %v3996_v48  ;;  %v4019_v40 = vmul.f32 %v4012_v25, %v4003_v24  ;;  %v4470_v24 = vrot.slane %v4461_v15, %v9834_v21 }
 0x923   :  { %v3998_v36 = vpop.f32.mrf.mxu0  ;;  %v4140_v37 = vpop.f32.mrf.mxu1 }
 0x924   :  { %v4020_v42 = vmul.f32 %v4016_v26, %v4004_v32  ;;  %v4005_v12 = vmul.f32 %v9206_v30, %v3998_v36  ;;  %v4149_v14 = vmul.f32 %v9208_v35, %v4140_v37  ;;  %v4035_v5 = vadd.f32 %v4028_v31, %v4019_v40 }
 0x925   :  { %v4000_v43 = vpop.f32.mrf.mxu0  ;;  %v4142_v41 = vpop.f32.mrf.mxu1 }
 0x926   :  { %v4021_v52 = vmul.f32 %v4012_v25, %v4005_v12  ;;  %v4165_v0 = vmul.f32 %v4158_v47, %v4149_v14  ;;  %v4006_v61 = vmul.f32 %v9206_v30, %v4000_v43  ;;  %v4150_v62 = vmul.f32 %v9208_v35, %v4142_v41  ;;  %v9214_v25 = vpop.eup %9213 }
 0x927   :  { %v4144_v54 = vpop.f32.mrf.mxu1  ;;  %v4286_v1 = vpop.f32.mrf.mxu0  ;;  %v4036_v6 = vadd.f32 %v4032_v56, %v4020_v42 }
 0x928   :  { %v4037_v28 = vadd.f32 %v4028_v31, %v4021_v52  ;;  %v4151_v7 = vmul.f32 %v9210_v60, %v4144_v54  ;;  %v4181_v11 = vadd.f32 %v4174_v38, %v4165_v0  ;;  %v4022_v16 = vmul.f32 %v4016_v26, %v4006_v61  ;;  %v9216_v37 = vpop.eup %9215 }
 0x929   :  { %v4166_v13 = vmul.f32 %v4162_v23, %v4150_v62  ;;  %v4295_v17 = vmul.f32 %v9212_v4, %v4286_v1  ;;  %v4146_v18 = vpop.f32.mrf.mxu1  ;;  %v4288_v49 = vpop.f32.mrf.mxu0  ;;  %v4039_v31 = vmax.f32 %v4035_v5, 0.0  ;;  %v4040_v39 = vmax.f32 %v4036_v6, 0.0 }
 0x92a   :  { %v4041_v51 = vmax.f32 %v4037_v28, 0.0  ;;  %v4167_v8 = vmul.f32 %v4158_v47, %v4151_v7  ;;  %v4152_v53 = vmul.f32 %v9210_v60, %v4146_v18  ;;  %v4038_v29 = vadd.f32 %v4032_v56, %v4022_v16 }
 0x92b   :  { %v4182_v48 = vadd.f32 %v4178_v45, %v4166_v13  ;;  %v4311_v30 = vmul.f32 %v4304_v58, %v4295_v17  ;;  %v4296_v32 = vmul.f32 %v9212_v4, %v4288_v49  ;;  %v4290_v33 = vpop.f32.mrf.mxu0  ;;  %v4432_v34 = vpop.f32.mrf.mxu1  ;;  %v4185_v40 = vmax.f32 %v4181_v11, 0.0  ;;  %v8819_v13 = vld [vmem:[#allocation22 + $0x4e0] ss:$16 sps:$4 sm:$0xff]  }
 0x92c   :  { %v4183_v35 = vadd.f32 %v4174_v38, %v4167_v8  ;;  %v4168_v36 = vmul.f32 %v4162_v23, %v4152_v53  ;;  %v4297_v26 = vmul.f32 %v9214_v25, %v4290_v33  ;;  %v4042_v42 = vmax.f32 %v4038_v29, 0.0  ;;  %v9218_v38 = vpop.eup %9217  ;;  %v8824_v8 = vld [vmem:[#allocation22 + $0x4c4] ss:$16 sps:$4 sm:$0xff]  }
 0x92d   :  { %v4312_v12 = vmul.f32 %v4308_v50, %v4296_v32  ;;  %v4292_v47 = vpop.f32.mrf.mxu0  ;;  %v4434_v14 = vpop.f32.mrf.mxu1  ;;  %v4327_v43 = vadd.f32 %v4320_v46, %v4311_v30  ;;  %v4441_v56 = vmul.f32 %v9216_v37, %v4432_v34  ;;  %v10045_v52 = vpack.c.bf16 %v4041_v51, %v4039_v31  ;;  %v8833_v30 = vld [vmem:[#allocation22 + $0x6c4] ss:$16 sps:$4 sm:$0xff]   ;;  %v8822_v34 = vld [vmem:[#allocation22 + $0x4c0] ss:$16 sps:$4 sm:$0xff]  }
 0x92e   :  { %v4184_v15 = vadd.f32 %v4178_v45, %v4168_v36  ;;  %v4313_v41 = vmul.f32 %v4304_v58, %v4297_v26  ;;  %v4186_v0 = vmax.f32 %v4182_v48, 0.0  ;;  %v4298_v60 = vmul.f32 %v9214_v25, %v4292_v47  ;;  %v8830_v36 = vld [vmem:[#allocation22 + $0x4a4] ss:$16 sps:$4 sm:$0xff]   ;;  %v8831_v26 = vld [vmem:[#allocation22 + $0x6c0] ss:$16 sps:$4 sm:$0xff]  }
 0x92f   :  { %v4442_v61 = vmul.f32 %v9216_v37, %v4434_v14  ;;  %v4436_v62 = vpop.f32.mrf.mxu1  ;;  %v4187_v23 = vmax.f32 %v4183_v35, 0.0  ;;  %v4457_v4 = vmul.f32 %v10036_v59, %v4441_v56  ;;  %v4328_v5 = vadd.f32 %v10033_v2, %v4312_v12  ;;  %v8836_v12 = vld [vmem:[#allocation22 + $0x484] ss:$16 sps:$4 sm:$0xff]   ;;  %v8837_v47 = vld [vmem:[#allocation22 + $0x6a0] ss:$16 sps:$4 sm:$0xff]  }
 0x930   :  { %v4188_v54 = vmax.f32 %v4184_v15, 0.0  ;;  %v4329_v1 = vadd.f32 %v4320_v46, %v4313_v41  ;;  %v4314_v6 = vmul.f32 %v4308_v50, %v4298_v60  ;;  %v4443_v45 = vmul.f32 %v9218_v38, %v4436_v62  ;;  %v8825_v50 = vld [vmem:[#allocation22 + $0x6e0] ss:$16 sps:$4 sm:$0xff]   ;;  %v8845_v14 = vld [vmem:[#allocation22 + $0x684] ss:$16 sps:$4 sm:$0xff]  }
 0x931   :  { %v4458_v28 = vmul.f32 %v10042_v3, %v4442_v61  ;;  %v4438_v58 = vpop.f32.mrf.mxu1  ;;  %v4331_v7 = vmax.f32 %v4327_v43, 0.0  ;;  %v10050_v16 = vpack.c.bf16 %v4042_v42, %v4040_v39  ;;  %v4473_v18 = vadd.f32 %v10039_v19, %v4457_v4  ;;  %v8834_v43 = vld [vmem:[#allocation22 + $0x480] ss:$16 sps:$4 sm:$0xff]   ;;  %v8842_v15 = vld [vmem:[#allocation22 + $0x464] ss:$16 sps:$4 sm:$0xff]  }
 0x932   :  { %v4333_v11 = vmax.f32 %v4329_v1, 0.0  ;;  %v4444_v17 = vmul.f32 %v9218_v38, %v4438_v58  ;;  %v4330_v49 = vadd.f32 %v10033_v2, %v4314_v6  ;;  %v4459_v46 = vmul.f32 %v10036_v59, %v4443_v45  ;;  %v8843_v41 = vld [vmem:[#allocation22 + $0x680] ss:$16 sps:$4 sm:$0xff]   ;;  %v8851_v56 = vld [vmem:[#allocation22 + $0x664] ss:$16 sps:$4 sm:$0xff]  }
 0x933   :  { %v10055_v51 = vpack.c.bf16 %v4188_v54, %v4186_v0  ;;  %v10057_v53 = vpack.c.bf16 %v4187_v23, %v4185_v40  ;;  %v4474_v29 = vadd.f32 %v4470_v24, %v4458_v28  ;;  %6111 = vmatprep.mubr.bf16.mxu0 %v10050_v16  ;;  %v4332_v32 = vmax.f32 %v4328_v5, 0.0  ;;  %v8840_v0 = vld [vmem:[#allocation22 + $0x460] ss:$16 sps:$4 sm:$0xff]   ;;  %v8848_v60 = vld [vmem:[#allocation22 + $0x444] ss:$16 sps:$4 sm:$0xff]  }
 0x934   :  { %v10059_v25 = vpack.c.bf16 %v4333_v11, %v4331_v7  ;;  %v4460_v48 = vmul.f32 %v10042_v3, %v4444_v17  ;;  %v4334_v33 = vmax.f32 %v4330_v49, 0.0  ;;  %v4475_v2 = vadd.f32 %v10039_v19, %v4459_v46  ;;  %6112 = vmatmul.mubr.bf16.vlgmr.msra.gmra.mxu0 %v10045_v52  ;;  %v8839_v19 = vld [vmem:[#allocation22 + $0x6a4] ss:$16 sps:$4 sm:$0xff]   ;;  %v8849_v61 = vld [vmem:[#allocation22 + $0x660] ss:$16 sps:$4 sm:$0xff]  }
 0x935   :  { %6154 = vmatprep.mubr.bf16.mxu1 %v10055_v51  ;;  %6166 = vmatpush1.bf16.msra.mxu0 %v8819_v13  ;;  %v4477_v31 = vmax.f32 %v4473_v18, 0.0  ;;  %v4478_v37 = vmax.f32 %v4474_v29, 0.0  ;;  %v8857_v62 = vld [vmem:[#allocation22 + $0x644] ss:$16 sps:$4 sm:$0xff]   ;;  %v8846_v38 = vld [vmem:[#allocation22 + $0x440] ss:$16 sps:$4 sm:$0xff]  }
 0x936   :  { %v4476_v59 = vadd.f32 %v4470_v24, %v4460_v48  ;;  %6155 = vmatmul.mubr.bf16.vlgmr.msra.gmra.mxu1 %v10057_v53  ;;  %v4479_v35 = vmax.f32 %v4475_v2, 0.0  ;;  %6167 = vmatprep.subr.bf16.mxu0 %v8824_v8  ;;  %v10067_v3 = vpack.c.bf16 %v4334_v33, %v4332_v32  ;;  %v8828_v24 = vld [vmem:[#allocation22 + $0x4a0] ss:$16 sps:$4 sm:$0xff]   ;;  %v8854_v23 = vld [vmem:[#allocation22 + $0x424] ss:$16 sps:$4 sm:$0xff]  }
 0x937   :  { %6209 = vmatpush1.bf16.msra.mxu1 %v8825_v50  ;;  %v8855_v54 = vld [vmem:[#allocation22 + $0x640] ss:$16 sps:$4 sm:$0xff]   ;;  %v8863_v1 = vld [vmem:[#allocation22 + $0x624] ss:$16 sps:$4 sm:$0xff]  }
 0x938   :  { %v4480_v39 = vmax.f32 %v4476_v59, 0.0  ;;  %6210 = vmatprep.subr.bf16.mxu1 %v8833_v30  ;;  %v10069_v40 = vpack.c.bf16 %v4479_v35, %v4477_v31  ;;  %6197 = vmatprep.mubr.bf16.mxu0 %v10067_v3  ;;  %v8852_v4 = vld [vmem:[#allocation22 + $0x420] ss:$16 sps:$4 sm:$0xff]   ;;  %v8860_v5 = vld [vmem:[#allocation22 + $0x404] ss:$16 sps:$4 sm:$0xff]  }
 0x939   :  { %6168 = vmatpush1.bf16.msra.mxu0 %v8822_v34  ;;  %v8861_v6 = vld [vmem:[#allocation22 + $0x620] ss:$16 sps:$4 sm:$0xff]   ;;  %v8869_v28 = vld [vmem:[#allocation22 + $0x604] ss:$16 sps:$4 sm:$0xff]  }
 0x93a   :  { %v10072_v42 = vpack.c.bf16 %v4480_v39, %v4478_v37  ;;  %6169 = vmatprep.subr.bf16.mxu0 %v8830_v36  ;;  %v8858_v45 = vld [vmem:[#allocation22 + $0x400] ss:$16 sps:$4 sm:$0xff]   ;;  %v8866_v58 = vld [vmem:[#allocation22 + $0x5e4] ss:$16 sps:$4 sm:$0xff]  }
 0x93b   :  { %6211 = vmatpush1.bf16.msra.mxu1 %v8831_v26  ;;  %v8867_v7 = vld [vmem:[#allocation22 + $0x600] ss:$16 sps:$4 sm:$0xff]   ;;  %v8875_v11 = vld [vmem:[#allocation22 + $0x7e4] ss:$16 sps:$4 sm:$0xff]  }
 0x93c   :  { %6212 = vmatprep.subr.bf16.mxu1 %v8839_v19  ;;  %6240 = vmatprep.mubr.bf16.mxu1 %v10072_v42  ;;  %v8864_v13 = vld [vmem:[#allocation22 + $0x5e0] ss:$16 sps:$4 sm:$0xff]   ;;  %v8872_v17 = vld [vmem:[#allocation22 + $0x5c4] ss:$16 sps:$4 sm:$0xff]  }
 0x93d   :  { %6170 = vmatpush1.bf16.msra.mxu0 %v8828_v24  ;;  %v8873_v18 = vld [vmem:[#allocation22 + $0x7e0] ss:$16 sps:$4 sm:$0xff]   ;;  %v8881_v49 = vld [vmem:[#allocation22 + $0x7c4] ss:$16 sps:$4 sm:$0xff]  }
 0x93e   :  { %6171 = vmatprep.subr.bf16.mxu0 %v8836_v12  ;;  %v8870_v46 = vld [vmem:[#allocation22 + $0x5c0] ss:$16 sps:$4 sm:$0xff]   ;;  %v8878_v8 = vld [vmem:[#allocation22 + $0x5a4] ss:$16 sps:$4 sm:$0xff]  }
 0x93f   :  { %6213 = vmatpush1.bf16.msra.mxu1 %v8837_v47  ;;  %v8879_v50 = vld [vmem:[#allocation22 + $0x7c0] ss:$16 sps:$4 sm:$0xff]   ;;  %v8887_v29 = vld [vmem:[#allocation22 + $0x7a4] ss:$16 sps:$4 sm:$0xff]  }
 0x940   :  { %6214 = vmatprep.subr.bf16.mxu1 %v8845_v14  ;;  %v8876_v48 = vld [vmem:[#allocation22 + $0x5a0] ss:$16 sps:$4 sm:$0xff]   ;;  %v8884_v30 = vld [vmem:[#allocation22 + $0x584] ss:$16 sps:$4 sm:$0xff]  }
 0x941   :  { %6172 = vmatpush1.bf16.msra.mxu0 %v8834_v43  ;;  %v8885_v32 = vld [vmem:[#allocation22 + $0x7a0] ss:$16 sps:$4 sm:$0xff]   ;;  %v8893_v33 = vld [vmem:[#allocation22 + $0x784] ss:$16 sps:$4 sm:$0xff]  }
 0x942   :  { %6173 = vmatprep.subr.bf16.mxu0 %v8842_v15  ;;  %v8882_v2 = vld [vmem:[#allocation22 + $0x580] ss:$16 sps:$4 sm:$0xff]   ;;  %v8890_v59 = vld [vmem:[#allocation22 + $0x564] ss:$16 sps:$4 sm:$0xff]  }
 0x943   :  { %6215 = vmatpush1.bf16.msra.mxu1 %v8843_v41  ;;  %v8891_v34 = vld [vmem:[#allocation22 + $0x780] ss:$16 sps:$4 sm:$0xff]   ;;  %v8899_v31 = vld [vmem:[#allocation22 + $0x764] ss:$16 sps:$4 sm:$0xff]  }
 0x944   :  { %6216 = vmatprep.subr.bf16.mxu1 %v8851_v56  ;;  %v8888_v35 = vld [vmem:[#allocation22 + $0x560] ss:$16 sps:$4 sm:$0xff]   ;;  %v8896_v36 = vld [vmem:[#allocation22 + $0x544] ss:$16 sps:$4 sm:$0xff]  }
 0x945   :  { %6174 = vmatpush1.bf16.msra.mxu0 %v8840_v0  ;;  %v8897_v26 = vld [vmem:[#allocation22 + $0x760] ss:$16 sps:$4 sm:$0xff]   ;;  %v8905_v37 = vld [vmem:[#allocation22 + $0x744] ss:$16 sps:$4 sm:$0xff]   ;;  %v8917_v0 = vld [vmem:[#allocation22 + $0xec] ss:$16 sps:$4 sm:$0xff]  }
 0x946   :  { %6175 = vmatprep.subr.bf16.mxu0 %v8848_v60  ;;  %v8894_v39 = vld [vmem:[#allocation22 + $0x540] ss:$16 sps:$4 sm:$0xff]   ;;  %v8902_v19 = vld [vmem:[#allocation22 + $0x524] ss:$16 sps:$4 sm:$0xff]   ;;  %v8923_v60 = vld [vmem:[#allocation22 + $0x2ec] ss:$16 sps:$4 sm:$0xff]  }
 0x947   :  { %6217 = vmatpush1.bf16.msra.mxu1 %v8849_v61  ;;  %v8903_v24 = vld [vmem:[#allocation22 + $0x740] ss:$16 sps:$4 sm:$0xff]   ;;  %v8911_v12 = vld [vmem:[#allocation22 + $0x724] ss:$16 sps:$4 sm:$0xff]   ;;  %v8915_v61 = vld [vmem:[#allocation22 + $0xe8] ss:$16 sps:$4 sm:$0xff]  }
 0x948   :  { %6218 = vmatprep.subr.bf16.mxu1 %v8857_v62  ;;  %v8900_v47 = vld [vmem:[#allocation22 + $0x520] ss:$16 sps:$4 sm:$0xff]   ;;  %v8908_v14 = vld [vmem:[#allocation22 + $0x504] ss:$16 sps:$4 sm:$0xff]   ;;  %v8920_v62 = vld [vmem:[#allocation22 + $0xcc] ss:$16 sps:$4 sm:$0xff]  }
 0x949   :  { %6176 = vmatpush1.bf16.msra.mxu0 %v8846_v38  ;;  %v8909_v43 = vld [vmem:[#allocation22 + $0x720] ss:$16 sps:$4 sm:$0xff]   ;;  %v8914_v15 = vld [vmem:[#allocation22 + $0x704] ss:$16 sps:$4 sm:$0xff]   ;;  %v8921_v38 = vld [vmem:[#allocation22 + $0x2e8] ss:$16 sps:$4 sm:$0xff]  }
 0x94a   :  { %6177 = vmatprep.subr.bf16.mxu0 %v8854_v23  ;;  %v8906_v41 = vld [vmem:[#allocation22 + $0x500] ss:$16 sps:$4 sm:$0xff]   ;;  %v8929_v23 = vld [vmem:[#allocation22 + $0x2cc] ss:$16 sps:$4 sm:$0xff]  }
 0x94b   :  { %6219 = vmatpush1.bf16.msra.mxu1 %v8855_v54  ;;  %v8912_v56 = vld [vmem:[#allocation22 + $0x700] ss:$16 sps:$4 sm:$0xff]   ;;  %v8918_v54 = vld [vmem:[#allocation22 + $0xc8] ss:$16 sps:$4 sm:$0xff]  }
 0x94c   :  { %6220 = vmatprep.subr.bf16.mxu1 %v8863_v1  ;;  %v8926_v1 = vld [vmem:[#allocation22 + $0xac] ss:$16 sps:$4 sm:$0xff]  }
 0x94d   :  { %6178 = vmatpush1.bf16.msra.mxu0 %v8852_v4  ;;  %v8927_v4 = vld [vmem:[#allocation22 + $0x2c8] ss:$16 sps:$4 sm:$0xff]  }
 0x94e   :  { %6179 = vmatprep.subr.bf16.mxu0 %v8860_v5  ;;  %v8935_v5 = vld [vmem:[#allocation22 + $0x2ac] ss:$16 sps:$4 sm:$0xff]  }
 0x94f   :  { %6221 = vmatpush1.bf16.msra.mxu1 %v8861_v6  ;;  %v8924_v6 = vld [vmem:[#allocation22 + $0xa8] ss:$16 sps:$4 sm:$0xff]  }
 0x950   :  { %6222 = vmatprep.subr.bf16.mxu1 %v8869_v28  ;;  %v8932_v28 = vld [vmem:[#allocation22 + $0x8c] ss:$16 sps:$4 sm:$0xff]  }
 0x951   :  { %6180 = vmatpush1.bf16.msra.mxu0 %v8858_v45  ;;  %v8933_v45 = vld [vmem:[#allocation22 + $0x2a8] ss:$16 sps:$4 sm:$0xff]  }
 0x952   :  { %6181 = vmatprep.subr.bf16.mxu0 %v8866_v58  ;;  %v8941_v58 = vld [vmem:[#allocation22 + $0x28c] ss:$16 sps:$4 sm:$0xff]  }
 0x953   :  { %6223 = vmatpush1.bf16.msra.mxu1 %v8867_v7  ;;  %v8938_v7 = vld [vmem:[#allocation22 + $0x6c] ss:$16 sps:$4 sm:$0xff]  }
 0x954   :  { %6224 = vmatprep.subr.bf16.mxu1 %v8875_v11  ;;  %v8939_v11 = vld [vmem:[#allocation22 + $0x288] ss:$16 sps:$4 sm:$0xff]  }
 0x955   :  { %6182 = vmatpush2.bf16.msra.mxu0 %v8864_v13  ;;  %v8947_v13 = vld [vmem:[#allocation22 + $0x26c] ss:$16 sps:$4 sm:$0xff]  }
 0x956   :  { %6183 = vmatprep.subr.bf16.mxu0 %v8872_v17  ;;  %v8944_v17 = vld [vmem:[#allocation22 + $0x4c] ss:$16 sps:$4 sm:$0xff]  }
 0x957   :  { %6225 = vmatpush2.bf16.msra.mxu1 %v8873_v18  ;;  %v8945_v18 = vld [vmem:[#allocation22 + $0x268] ss:$16 sps:$4 sm:$0xff]  }
 0x958   :  { %6226 = vmatprep.subr.bf16.mxu1 %v8881_v49  ;;  %v8953_v49 = vld [vmem:[#allocation22 + $0x24c] ss:$16 sps:$4 sm:$0xff]  }
 0x959   :  { %6184 = vmatpush2.bf16.msra.mxu0 %v8870_v46  ;;  %v8942_v46 = vld [vmem:[#allocation22 + $0x48] ss:$16 sps:$4 sm:$0xff]  }
 0x95a   :  { %6185 = vmatprep.subr.bf16.mxu0 %v8878_v8  ;;  %v8950_v8 = vld [vmem:[#allocation22 + $0x2c] ss:$16 sps:$4 sm:$0xff]  }
 0x95b   :  { %6227 = vmatpush2.bf16.msra.mxu1 %v8879_v50  ;;  %v8951_v50 = vld [vmem:[#allocation22 + $0x248] ss:$16 sps:$4 sm:$0xff]  }
 0x95c   :  { %6228 = vmatprep.subr.bf16.mxu1 %v8887_v29  ;;  %v8959_v29 = vld [vmem:[#allocation22 + $0x22c] ss:$16 sps:$4 sm:$0xff]  }
 0x95d   :  { %6186 = vmatpush2.bf16.msra.mxu0 %v8876_v48  ;;  %v8948_v48 = vld [vmem:[#allocation22 + $0x28] ss:$16 sps:$4 sm:$0xff]  }
 0x95e   :  { %6187 = vmatprep.subr.bf16.mxu0 %v8884_v30  ;;  %v8956_v30 = vld [vmem:[#allocation22 + $0xc] ss:$16 sps:$4 sm:$0xff]  }
 0x95f   :  { %6229 = vmatpush2.bf16.msra.mxu1 %v8885_v32  ;;  %v8957_v32 = vld [vmem:[#allocation22 + $0x228] ss:$16 sps:$4 sm:$0xff]  }
 0x960   :  { %6230 = vmatprep.subr.bf16.mxu1 %v8893_v33  ;;  %v8965_v33 = vld [vmem:[#allocation22 + $0x20c] ss:$16 sps:$4 sm:$0xff]  }
 0x961   :  { %6188 = vmatpush2.bf16.msra.mxu0 %v8882_v2  ;;  %v8954_v2 = vld [vmem:[#allocation22 + $0x8] ss:$16 sps:$4 sm:$0xff]  }
 0x962   :  { %6189 = vmatprep.subr.bf16.mxu0 %v8890_v59  ;;  %v8962_v59 = vld [vmem:[#allocation22 + $0x1ec] ss:$16 sps:$4 sm:$0xff]  }
 0x963   :  { %6231 = vmatpush2.bf16.msra.mxu1 %v8891_v34  ;;  %v8963_v34 = vld [vmem:[#allocation22 + $0x208] ss:$16 sps:$4 sm:$0xff]  }
 0x964   :  { %6232 = vmatprep.subr.bf16.mxu1 %v8899_v31  ;;  %v8971_v31 = vld [vmem:[#allocation22 + $0x3ec] ss:$16 sps:$4 sm:$0xff]  }
 0x965   :  { %6190 = vmatpush2.bf16.msra.mxu0 %v8888_v35  ;;  %v8960_v35 = vld [vmem:[#allocation22 + $0x1e8] ss:$16 sps:$4 sm:$0xff]  }
 0x966   :  { %6191 = vmatprep.subr.bf16.mxu0 %v8896_v36  ;;  %v8968_v36 = vld [vmem:[#allocation22 + $0x1cc] ss:$16 sps:$4 sm:$0xff]  }
 0x967   :  { %6233 = vmatpush2.bf16.msra.mxu1 %v8897_v26  ;;  %v8969_v26 = vld [vmem:[#allocation22 + $0x3e8] ss:$16 sps:$4 sm:$0xff]  }
 0x968   :  { %6234 = vmatprep.subr.bf16.mxu1 %v8905_v37  ;;  %v8977_v37 = vld [vmem:[#allocation22 + $0x3cc] ss:$16 sps:$4 sm:$0xff]  }
 0x969   :  { %6192 = vmatpush2.bf16.msra.mxu0 %v8894_v39  ;;  %v8966_v39 = vld [vmem:[#allocation22 + $0x1c8] ss:$16 sps:$4 sm:$0xff]  }
 0x96a   :  { %6193 = vmatprep.subr.bf16.mxu0 %v8902_v19  ;;  %v8974_v19 = vld [vmem:[#allocation22 + $0x1ac] ss:$16 sps:$4 sm:$0xff]  }
 0x96b   :  { %6235 = vmatpush2.bf16.msra.mxu1 %v8903_v24  ;;  %v8975_v24 = vld [vmem:[#allocation22 + $0x3c8] ss:$16 sps:$4 sm:$0xff]  }
 0x96c   :  { %6236 = vmatprep.subr.bf16.mxu1 %v8911_v12  ;;  %v8983_v12 = vld [vmem:[#allocation22 + $0x3ac] ss:$16 sps:$4 sm:$0xff]  }
 0x96d   :  { %6194 = vmatpush2.bf16.msra.mxu0 %v8900_v47  ;;  %v8972_v47 = vld [vmem:[#allocation22 + $0x1a8] ss:$16 sps:$4 sm:$0xff]  }
 0x96e   :  { %6195 = vmatprep.subr.bf16.mxu0 %v8908_v14  ;;  %v8980_v14 = vld [vmem:[#allocation22 + $0x18c] ss:$16 sps:$4 sm:$0xff]  }
 0x96f   :  { %6237 = vmatpush2.bf16.msra.mxu1 %v8909_v43  ;;  %v8981_v43 = vld [vmem:[#allocation22 + $0x3a8] ss:$16 sps:$4 sm:$0xff]  }
 0x970   :  { %6238 = vmatprep.subr.bf16.mxu1 %v8914_v15  ;;  %v8989_v15 = vld [vmem:[#allocation22 + $0x38c] ss:$16 sps:$4 sm:$0xff]  }
 0x971   :  { %6196 = vmatpush2.bf16.msra.mxu0 %v8906_v41  ;;  %v8978_v41 = vld [vmem:[#allocation22 + $0x188] ss:$16 sps:$4 sm:$0xff]  }
 0x972   :  { %6251 = vmatprep.subr.bf16.mxu0 %v8917_v0  ;;  %v8987_v0 = vld [vmem:[#allocation22 + $0x388] ss:$16 sps:$4 sm:$0xff]  }
 0x973   :  { %6239 = vmatpush2.bf16.msra.mxu1 %v8912_v56  ;;  %v8986_v56 = vld [vmem:[#allocation22 + $0x16c] ss:$16 sps:$4 sm:$0xff]  }
 0x974   :  { %6294 = vmatprep.subr.bf16.mxu1 %v8923_v60  ;;  %6198 = vmatmul.mubr.bf16.vlgmr.msra.gmra.mxu0 %v10059_v25  ;;  %v8995_v60 = vld [vmem:[#allocation22 + $0x36c] ss:$16 sps:$4 sm:$0xff]  }
 0x975   :  { %6252 = vmatpush1.bf16.msra.mxu0 %v8915_v61  ;;  %6283 = vmatprep.mubr.bf16.mxu0 %v10050_v16  ;;  %v8930_v16 = vld [vmem:[#allocation22 + $0x88] ss:$16 sps:$4 sm:$0xff]  }
 0x976   :  { %6241 = vmatmul.mubr.bf16.vlgmr.msra.gmra.mxu1 %v10069_v40  ;;  %6253 = vmatprep.subr.bf16.mxu0 %v8920_v62  ;;  %v8984_v61 = vld [vmem:[#allocation22 + $0x168] ss:$16 sps:$4 sm:$0xff]   ;;  %v8992_v62 = vld [vmem:[#allocation22 + $0x14c] ss:$16 sps:$4 sm:$0xff]  }
 0x977   :  { %6295 = vmatpush1.bf16.msra.mxu1 %v8921_v38  ;;  %6326 = vmatprep.mubr.bf16.mxu1 %v10055_v51  ;;  %v8936_v51 = vld [vmem:[#allocation22 + $0x68] ss:$16 sps:$4 sm:$0xff]  }
 0x978   :  { %6296 = vmatprep.subr.bf16.mxu1 %v8929_v23  ;;  %v8993_v38 = vld [vmem:[#allocation22 + $0x368] ss:$16 sps:$4 sm:$0xff]   ;;  %v9001_v23 = vld [vmem:[#allocation22 + $0x34c] ss:$16 sps:$4 sm:$0xff]  }
 0x979   :  { %6254 = vmatpush1.bf16.msra.mxu0 %v8918_v54  ;;  %v8990_v54 = vld [vmem:[#allocation22 + $0x148] ss:$16 sps:$4 sm:$0xff]  }
 0x97a   :  { %6255 = vmatprep.subr.bf16.mxu0 %v8926_v1  ;;  %v8998_v1 = vld [vmem:[#allocation22 + $0x12c] ss:$16 sps:$4 sm:$0xff]  }
 0x97b   :  { %6297 = vmatpush1.bf16.msra.mxu1 %v8927_v4  ;;  %v8999_v4 = vld [vmem:[#allocation22 + $0x348] ss:$16 sps:$4 sm:$0xff]  }
 0x97c   :  { %6298 = vmatprep.subr.bf16.mxu1 %v8935_v5  ;;  %v9007_v5 = vld [vmem:[#allocation22 + $0x32c] ss:$16 sps:$4 sm:$0xff]  }
 0x97d   :  { %6256 = vmatpush1.bf16.msra.mxu0 %v8924_v6  ;;  %v8996_v6 = vld [vmem:[#allocation22 + $0x128] ss:$16 sps:$4 sm:$0xff]  }
 0x97e   :  { %6257 = vmatprep.subr.bf16.mxu0 %v8932_v28  ;;  %v9004_v28 = vld [vmem:[#allocation22 + $0x10c] ss:$16 sps:$4 sm:$0xff]  }
 0x97f   :  { %6299 = vmatpush1.bf16.msra.mxu1 %v8933_v45  ;;  %v9005_v45 = vld [vmem:[#allocation22 + $0x328] ss:$16 sps:$4 sm:$0xff]  }
 0x980   :  { %6300 = vmatprep.subr.bf16.mxu1 %v8941_v58  ;;  %v9010_v58 = vld [vmem:[#allocation22 + $0x30c] ss:$16 sps:$4 sm:$0xff]  }
 0x981   :  { %6258 = vmatpush1.bf16.msra.mxu0 %v8930_v16  ;;  %v9002_v16 = vld [vmem:[#allocation22 + $0x108] ss:$16 sps:$4 sm:$0xff]  }
 0x982   :  { %6259 = vmatprep.subr.bf16.mxu0 %v8938_v7  ;;  %v9013_v7 = vld [vmem:[#allocation22 + $0x4ec] ss:$16 sps:$4 sm:$0xff]  }
 0x983   :  { %6301 = vmatpush1.bf16.msra.mxu1 %v8939_v11  ;;  %v9008_v11 = vld [vmem:[#allocation22 + $0x308] ss:$16 sps:$4 sm:$0xff]  }
 0x984   :  { %6302 = vmatprep.subr.bf16.mxu1 %v8947_v13  ;;  %v9019_v13 = vld [vmem:[#allocation22 + $0x6ec] ss:$16 sps:$4 sm:$0xff]  }
 0x985   :  { %6260 = vmatpush1.bf16.msra.mxu0 %v8936_v51  ;;  %v9011_v51 = vld [vmem:[#allocation22 + $0x4e8] ss:$16 sps:$4 sm:$0xff]  }
 0x986   :  { %6261 = vmatprep.subr.bf16.mxu0 %v8944_v17  ;;  %v9016_v17 = vld [vmem:[#allocation22 + $0x4cc] ss:$16 sps:$4 sm:$0xff]  }
 0x987   :  { %6303 = vmatpush1.bf16.msra.mxu1 %v8945_v18  ;;  %v9017_v18 = vld [vmem:[#allocation22 + $0x6e8] ss:$16 sps:$4 sm:$0xff]  }
 0x988   :  { %6304 = vmatprep.subr.bf16.mxu1 %v8953_v49  ;;  %v9025_v49 = vld [vmem:[#allocation22 + $0x6cc] ss:$16 sps:$4 sm:$0xff]  }
 0x989   :  { %6262 = vmatpush1.bf16.msra.mxu0 %v8942_v46  ;;  %v9014_v46 = vld [vmem:[#allocation22 + $0x4c8] ss:$16 sps:$4 sm:$0xff]  }
 0x98a   :  { %6263 = vmatprep.subr.bf16.mxu0 %v8950_v8  ;;  %v9022_v8 = vld [vmem:[#allocation22 + $0x4ac] ss:$16 sps:$4 sm:$0xff]  }
 0x98b   :  { %6305 = vmatpush1.bf16.msra.mxu1 %v8951_v50  ;;  %v9023_v50 = vld [vmem:[#allocation22 + $0x6c8] ss:$16 sps:$4 sm:$0xff]  }
 0x98c   :  { %6306 = vmatprep.subr.bf16.mxu1 %v8959_v29  ;;  %v9031_v29 = vld [vmem:[#allocation22 + $0x6ac] ss:$16 sps:$4 sm:$0xff]  }
 0x98d   :  { %6264 = vmatpush1.bf16.msra.mxu0 %v8948_v48  ;;  %v9020_v48 = vld [vmem:[#allocation22 + $0x4a8] ss:$16 sps:$4 sm:$0xff]  }
 0x98e   :  { %6265 = vmatprep.subr.bf16.mxu0 %v8956_v30  ;;  %v9029_v30 = vld [vmem:[#allocation22 + $0x6a8] ss:$16 sps:$4 sm:$0xff]  }
 0x98f   :  { %6307 = vmatpush1.bf16.msra.mxu1 %v8957_v32  ;;  %v9037_v32 = vld [vmem:[#allocation22 + $0x68c] ss:$16 sps:$4 sm:$0xff]  }
 0x990   :  { %6308 = vmatprep.subr.bf16.mxu1 %v8965_v33  ;;  %v9035_v33 = vld [vmem:[#allocation22 + $0x688] ss:$16 sps:$4 sm:$0xff]  }
 0x991   :  { %6266 = vmatpush1.bf16.msra.mxu0 %v8954_v2  ;;  %v9043_v2 = vld [vmem:[#allocation22 + $0x66c] ss:$16 sps:$4 sm:$0xff]  }
 0x992   :  { %6267 = vmatprep.subr.bf16.mxu0 %v8962_v59  ;;  %v9040_v59 = vld [vmem:[#allocation22 + $0x44c] ss:$16 sps:$4 sm:$0xff]  }
 0x993   :  { %6309 = vmatpush1.bf16.msra.mxu1 %v8963_v34  ;;  %v9041_v34 = vld [vmem:[#allocation22 + $0x668] ss:$16 sps:$4 sm:$0xff]  }
 0x994   :  { %6310 = vmatprep.subr.bf16.mxu1 %v8971_v31  ;;  %v9049_v31 = vld [vmem:[#allocation22 + $0x64c] ss:$16 sps:$4 sm:$0xff]  }
 0x995   :  { %6268 = vmatpush2.bf16.msra.mxu0 %v8960_v35  ;;  %v9038_v35 = vld [vmem:[#allocation22 + $0x448] ss:$16 sps:$4 sm:$0xff]  }
 0x996   :  { %6269 = vmatprep.subr.bf16.mxu0 %v8968_v36  ;;  %v9046_v36 = vld [vmem:[#allocation22 + $0x42c] ss:$16 sps:$4 sm:$0xff]  }
 0x997   :  { %6311 = vmatpush2.bf16.msra.mxu1 %v8969_v26  ;;  %v9047_v26 = vld [vmem:[#allocation22 + $0x648] ss:$16 sps:$4 sm:$0xff]  }
 0x998   :  { %6312 = vmatprep.subr.bf16.mxu1 %v8977_v37  ;;  %v9055_v37 = vld [vmem:[#allocation22 + $0x62c] ss:$16 sps:$4 sm:$0xff]  }
 0x999   :  { %6270 = vmatpush2.bf16.msra.mxu0 %v8966_v39  ;;  %v9044_v39 = vld [vmem:[#allocation22 + $0x428] ss:$16 sps:$4 sm:$0xff]  }
 0x99a   :  { %6271 = vmatprep.subr.bf16.mxu0 %v8974_v19  ;;  %v9052_v19 = vld [vmem:[#allocation22 + $0x40c] ss:$16 sps:$4 sm:$0xff]  }
 0x99b   :  { %6313 = vmatpush2.bf16.msra.mxu1 %v8975_v24  ;;  %v9053_v24 = vld [vmem:[#allocation22 + $0x628] ss:$16 sps:$4 sm:$0xff]  }
 0x99c   :  { %6314 = vmatprep.subr.bf16.mxu1 %v8983_v12  ;;  %v9061_v12 = vld [vmem:[#allocation22 + $0x60c] ss:$16 sps:$4 sm:$0xff]  }
 0x99d   :  { %6272 = vmatpush2.bf16.msra.mxu0 %v8972_v47  ;;  %v9050_v47 = vld [vmem:[#allocation22 + $0x408] ss:$16 sps:$4 sm:$0xff]  }
 0x99e   :  { %6273 = vmatprep.subr.bf16.mxu0 %v8980_v14  ;;  %v9058_v14 = vld [vmem:[#allocation22 + $0x5ec] ss:$16 sps:$4 sm:$0xff]  }
 0x99f   :  { %6315 = vmatpush2.bf16.msra.mxu1 %v8981_v43  ;;  %v9059_v43 = vld [vmem:[#allocation22 + $0x608] ss:$16 sps:$4 sm:$0xff]  }
 0x9a0   :  { %6316 = vmatprep.subr.bf16.mxu1 %v8989_v15  ;;  %v9067_v15 = vld [vmem:[#allocation22 + $0x7ec] ss:$16 sps:$4 sm:$0xff]  }
 0x9a1   :  { %6274 = vmatpush2.bf16.msra.mxu0 %v8978_v41  ;;  %v9056_v41 = vld [vmem:[#allocation22 + $0x5e8] ss:$16 sps:$4 sm:$0xff]  }
 0x9a2   :  { %6275 = vmatprep.subr.bf16.mxu0 %v8986_v56  ;;  %v9064_v56 = vld [vmem:[#allocation22 + $0x5cc] ss:$16 sps:$4 sm:$0xff]  }
 0x9a3   :  { %6317 = vmatpush2.bf16.msra.mxu1 %v8987_v0  ;;  %v9065_v0 = vld [vmem:[#allocation22 + $0x7e8] ss:$16 sps:$4 sm:$0xff]  }
 0x9a4   :  { %6318 = vmatprep.subr.bf16.mxu1 %v8995_v60  ;;  %v9073_v60 = vld [vmem:[#allocation22 + $0x7cc] ss:$16 sps:$4 sm:$0xff]  }
 0x9a5   :  { %6276 = vmatpush2.bf16.msra.mxu0 %v8984_v61  ;;  %v9062_v61 = vld [vmem:[#allocation22 + $0x5c8] ss:$16 sps:$4 sm:$0xff]  }
 0x9a6   :  { %6277 = vmatprep.subr.bf16.mxu0 %v8992_v62  ;;  %v9070_v62 = vld [vmem:[#allocation22 + $0x5ac] ss:$16 sps:$4 sm:$0xff]  }
 0x9a7   :  { %6319 = vmatpush2.bf16.msra.mxu1 %v8993_v38  ;;  %v9071_v38 = vld [vmem:[#allocation22 + $0x7c8] ss:$16 sps:$4 sm:$0xff]  }
 0x9a8   :  { %6320 = vmatprep.subr.bf16.mxu1 %v9001_v23  ;;  %v9079_v23 = vld [vmem:[#allocation22 + $0x7ac] ss:$16 sps:$4 sm:$0xff]  }
 0x9a9   :  { %6278 = vmatpush2.bf16.msra.mxu0 %v8990_v54  ;;  %v9068_v54 = vld [vmem:[#allocation22 + $0x5a8] ss:$16 sps:$4 sm:$0xff]  }
 0x9aa   :  { %6279 = vmatprep.subr.bf16.mxu0 %v8998_v1  ;;  %v9076_v1 = vld [vmem:[#allocation22 + $0x58c] ss:$16 sps:$4 sm:$0xff]  }
 0x9ab   :  { %6321 = vmatpush2.bf16.msra.mxu1 %v8999_v4  ;;  %v9077_v4 = vld [vmem:[#allocation22 + $0x7a8] ss:$16 sps:$4 sm:$0xff]  }
 0x9ac   :  { %6322 = vmatprep.subr.bf16.mxu1 %v9007_v5  ;;  %v9085_v5 = vld [vmem:[#allocation22 + $0x78c] ss:$16 sps:$4 sm:$0xff]  }
 0x9ad   :  { %6280 = vmatpush2.bf16.msra.mxu0 %v8996_v6  ;;  %v9074_v6 = vld [vmem:[#allocation22 + $0x588] ss:$16 sps:$4 sm:$0xff]  }
 0x9ae   :  { %6281 = vmatprep.subr.bf16.mxu0 %v9004_v28  ;;  %v9082_v28 = vld [vmem:[#allocation22 + $0x56c] ss:$16 sps:$4 sm:$0xff]  }
 0x9af   :  { %6323 = vmatpush2.bf16.msra.mxu1 %v9005_v45  ;;  %v9083_v45 = vld [vmem:[#allocation22 + $0x788] ss:$16 sps:$4 sm:$0xff]  }
 0x9b0   :  { %6324 = vmatprep.subr.bf16.mxu1 %v9010_v58  ;;  %v9091_v58 = vld [vmem:[#allocation22 + $0x76c] ss:$16 sps:$4 sm:$0xff]  }
 0x9b1   :  { %6282 = vmatpush2.bf16.msra.mxu0 %v9002_v16  ;;  %v9080_v16 = vld [vmem:[#allocation22 + $0x568] ss:$16 sps:$4 sm:$0xff]  }
 0x9b2   :  { %6337 = vmatprep.subr.bf16.mxu0 %v9013_v7  ;;  %v9088_v7 = vld [vmem:[#allocation22 + $0x54c] ss:$16 sps:$4 sm:$0xff]  }
 0x9b3   :  { %6325 = vmatpush2.bf16.msra.mxu1 %v9008_v11  ;;  %v9089_v11 = vld [vmem:[#allocation22 + $0x768] ss:$16 sps:$4 sm:$0xff]  }
 0x9b4   :  { %6284 = vmatmul.mubr.bf16.vlgmr.msra.gmra.mxu0 %v10045_v52  ;;  %6380 = vmatprep.subr.bf16.mxu1 %v9019_v13  ;;  %v9028_v52 = vld [vmem:[#allocation22 + $0x48c] ss:$16 sps:$4 sm:$0xff]  }
 0x9b5   :  { %6338 = vmatpush1.bf16.msra.mxu0 %v9011_v51  ;;  %6369 = vmatprep.mubr.bf16.mxu0 %v10067_v3  ;;  %v9026_v3 = vld [vmem:[#allocation22 + $0x488] ss:$16 sps:$4 sm:$0xff]   ;;  %v9097_v13 = vld [vmem:[#allocation22 + $0x74c] ss:$16 sps:$4 sm:$0xff]  }
 0x9b6   :  { %6327 = vmatmul.mubr.bf16.vlgmr.msra.gmra.mxu1 %v10057_v53  ;;  %6339 = vmatprep.subr.bf16.mxu0 %v9016_v17  ;;  %v9034_v53 = vld [vmem:[#allocation22 + $0x46c] ss:$16 sps:$4 sm:$0xff]   ;;  %v9086_v51 = vld [vmem:[#allocation22 + $0x548] ss:$16 sps:$4 sm:$0xff]  }
 0x9b7   :  { %6381 = vmatpush1.bf16.msra.mxu1 %v9017_v18  ;;  %6412 = vmatprep.mubr.bf16.mxu1 %v10072_v42  ;;  %v9032_v42 = vld [vmem:[#allocation22 + $0x468] ss:$16 sps:$4 sm:$0xff]   ;;  %v9094_v17 = vld [vmem:[#allocation22 + $0x52c] ss:$16 sps:$4 sm:$0xff]  }
 0x9b8   :  { %6382 = vmatprep.subr.bf16.mxu1 %v9025_v49  ;;  %v9095_v18 = vld [vmem:[#allocation22 + $0x748] ss:$16 sps:$4 sm:$0xff]   ;;  %v9103_v49 = vld [vmem:[#allocation22 + $0x72c] ss:$16 sps:$4 sm:$0xff]  }
 0x9b9   :  { %6340 = vmatpush1.bf16.msra.mxu0 %v9014_v46  ;;  %v9092_v46 = vld [vmem:[#allocation22 + $0x528] ss:$16 sps:$4 sm:$0xff]  }
 0x9ba   :  { %6341 = vmatprep.subr.bf16.mxu0 %v9022_v8  ;;  %v9100_v8 = vld [vmem:[#allocation22 + $0x50c] ss:$16 sps:$4 sm:$0xff]  }
 0x9bb   :  { %6383 = vmatpush1.bf16.msra.mxu1 %v9023_v50  ;;  %v9101_v50 = vld [vmem:[#allocation22 + $0x728] ss:$16 sps:$4 sm:$0xff]  }
 0x9bc   :  { %6384 = vmatprep.subr.bf16.mxu1 %v9031_v29  ;;  %v9106_v29 = vld [vmem:[#allocation22 + $0x70c] ss:$16 sps:$4 sm:$0xff]  }
 0x9bd   :  { %6342 = vmatpush1.bf16.msra.mxu0 %v9020_v48  ;;  %v9098_v48 = vld [vmem:[#allocation22 + $0x508] ss:$16 sps:$4 sm:$0xff]  }
 0x9be   :  { %6343 = vmatprep.subr.bf16.mxu0 %v9028_v52  ;;  %v9107_v52 = vld [vmem:[#allocation23 + $0x78] sm:$0xff]  }
 0x9bf   :  { %6385 = vmatpush1.bf16.msra.mxu1 %v9029_v30  ;;  %v9104_v30 = vld [vmem:[#allocation22 + $0x708] ss:$16 sps:$4 sm:$0xff]  }
 0x9c0   :  { %6386 = vmatprep.subr.bf16.mxu1 %v9037_v32  ;;  %v9108_v32 = vld [vmem:[#allocation23 + $0x38] sm:$0xff]  }
 0x9c1   :  { %6344 = vmatpush1.bf16.msra.mxu0 %v9026_v3  ;;  %v9109_v3 = vld [vmem:[#allocation23 + $0x70] sm:$0xff]  }
 0x9c2   :  { %6345 = vmatprep.subr.bf16.mxu0 %v9034_v53  ;;  %v9110_v53 = vld [vmem:[#allocation23 + $0x30] sm:$0xff]  }
 0x9c3   :  { %6387 = vmatpush1.bf16.msra.mxu1 %v9035_v33  ;;  %v9111_v33 = vld [vmem:[#allocation23 + $0x68] sm:$0xff]  }
 0x9c4   :  { %6388 = vmatprep.subr.bf16.mxu1 %v9043_v2  ;;  %v9112_v2 = vld [vmem:[#allocation23 + $0x28] sm:$0xff]  }
 0x9c5   :  { %6346 = vmatpush1.bf16.msra.mxu0 %v9032_v42  ;;  %v9113_v42 = vld [vmem:[#allocation23 + $0x60] sm:$0xff]  }
 0x9c6   :  { %6347 = vmatprep.subr.bf16.mxu0 %v9040_v59  ;;  %v9114_v59 = vld [vmem:[#allocation23 + $0x20] sm:$0xff]  }
 0x9c7   :  { %6389 = vmatpush1.bf16.msra.mxu1 %v9041_v34  ;;  %v9123_v34 = vld [vmem:[#allocation23 + $0xf8] sm:$0xff]  }
 0x9c8   :  { %6390 = vmatprep.subr.bf16.mxu1 %v9049_v31  ;;  %v9124_v31 = vld [vmem:[#allocation23 + $0xb8] sm:$0xff]  }
 0x9c9   :  { %6348 = vmatpush1.bf16.msra.mxu0 %v9038_v35  ;;  %v9125_v35 = vld [vmem:[#allocation23 + $0xf0] sm:$0xff]  }
 0x9ca   :  { %6349 = vmatprep.subr.bf16.mxu0 %v9046_v36  ;;  %v9115_v36 = vld [vmem:[#allocation23 + $0x58] sm:$0xff]  }
 0x9cb   :  { %6391 = vmatpush1.bf16.msra.mxu1 %v9047_v26  ;;  %v9116_v26 = vld [vmem:[#allocation23 + $0x18] sm:$0xff]  }
 0x9cc   :  { %6392 = vmatprep.subr.bf16.mxu1 %v9055_v37  ;;  %v9117_v37 = vld [vmem:[#allocation23 + $0x50] sm:$0xff]  }
 0x9cd   :  { %6350 = vmatpush1.bf16.msra.mxu0 %v9044_v39  ;;  %v9128_v39 = vld [vmem:[#allocation23 + $0xa8] sm:$0xff]  }
 0x9ce   :  { %6351 = vmatprep.subr.bf16.mxu0 %v9052_v19  ;;  %v9118_v19 = vld [vmem:[#allocation23 + $0x10] sm:$0xff]  }
 0x9cf   :  { %6393 = vmatpush1.bf16.msra.mxu1 %v9053_v24  ;;  %v9129_v24 = vld [vmem:[#allocation23 + $0xe0] sm:$0xff]  }
 0x9d0   :  { %6394 = vmatprep.subr.bf16.mxu1 %v9061_v12  ;;  %v9119_v12 = vld [vmem:[#allocation23 + $0x48] sm:$0xff]  }
 0x9d1   :  { %6352 = vmatpush1.bf16.msra.mxu0 %v9050_v47  ;;  %v9130_v47 = vld [vmem:[#allocation23 + $0xa0] sm:$0xff]  }
 0x9d2   :  { %6353 = vmatprep.subr.bf16.mxu0 %v9058_v14  ;;  %v9120_v14 = vld [vmem:[#allocation23 + $0x8] sm:$0xff]  }
 0x9d3   :  { %6395 = vmatpush1.bf16.msra.mxu1 %v9059_v43  ;;  %v9131_v43 = vld [vmem:[#allocation23 + $0xd8] sm:$0xff]  }
 0x9d4   :  { %6396 = vmatprep.subr.bf16.mxu1 %v9067_v15  ;;  %v9121_v15 = vld [vmem:[#allocation23 + $0x40] sm:$0xff]  }
 0x9d5   :  { %6354 = vmatpush2.bf16.msra.mxu0 %v9056_v41  ;;  %v9122_v41 = vld [vmem:[#allocation23] sm:$0xff]  }
 0x9d6   :  { %6355 = vmatprep.subr.bf16.mxu0 %v9064_v56 }
 0x9d7   :  { %6397 = vmatpush2.bf16.msra.mxu1 %v9065_v0 }
 0x9d8   :  { %6398 = vmatprep.subr.bf16.mxu1 %v9073_v60 }
 0x9d9   :  { %6356 = vmatpush2.bf16.msra.mxu0 %v9062_v61 }
 0x9da   :  { %6357 = vmatprep.subr.bf16.mxu0 %v9070_v62 }
 0x9db   :  { %6399 = vmatpush2.bf16.msra.mxu1 %v9071_v38 }
 0x9dc   :  { %6400 = vmatprep.subr.bf16.mxu1 %v9079_v23 }
 0x9dd   :  { %6358 = vmatpush2.bf16.msra.mxu0 %v9068_v54  ;;  %v9132_v54 = vld [vmem:[#allocation23 + $0x98] sm:$0xff]  }
 0x9de   :  { %6359 = vmatprep.subr.bf16.mxu0 %v9076_v1 }
 0x9df   :  { %6401 = vmatpush2.bf16.msra.mxu1 %v9077_v4 }
 0x9e0   :  { %6402 = vmatprep.subr.bf16.mxu1 %v9085_v5  ;;  %v9133_v5 = vld [vmem:[#allocation23 + $0xd0] sm:$0xff]  }
 0x9e1   :  { %6360 = vmatpush2.bf16.msra.mxu0 %v9074_v6 }
 0x9e2   :  { %6361 = vmatprep.subr.bf16.mxu0 %v9082_v28 }
 0x9e3   :  { %6403 = vmatpush2.bf16.msra.mxu1 %v9083_v45  ;;  %v9134_v45 = vld [vmem:[#allocation23 + $0x90] sm:$0xff]  }
 0x9e4   :  { %6404 = vmatprep.subr.bf16.mxu1 %v9091_v58 }
 0x9e5   :  { %6362 = vmatpush2.bf16.msra.mxu0 %v9080_v16 }
 0x9e6   :  { %6363 = vmatprep.subr.bf16.mxu0 %v9088_v7 }
 0x9e7   :  { %6405 = vmatpush2.bf16.msra.mxu1 %v9089_v11 }
 0x9e8   :  { %6406 = vmatprep.subr.bf16.mxu1 %v9097_v13 }
 0x9e9   :  { %6364 = vmatpush2.bf16.msra.mxu0 %v9086_v51  ;;  %v9135_v51 = vld [vmem:[#allocation23 + $0xc8] sm:$0xff]  }
 0x9ea   :  { %6365 = vmatprep.subr.bf16.mxu0 %v9094_v17 }
 0x9eb   :  { %6407 = vmatpush2.bf16.msra.mxu1 %v9095_v18 }
 0x9ec   :  { %6408 = vmatprep.subr.bf16.mxu1 %v9103_v49 }
 0x9ed   :  { %6366 = vmatpush2.bf16.msra.mxu0 %v9092_v46 }
 0x9ee   :  { %6367 = vmatprep.subr.bf16.mxu0 %v9100_v8  ;;  %v9136_v8 = vld [vmem:[#allocation23 + $0x88] sm:$0xff]  }
 0x9ef   :  { %6409 = vmatpush2.bf16.msra.mxu1 %v9101_v50 }
 0x9f0   :  { %6410 = vmatprep.subr.bf16.mxu1 %v9106_v29 }
 0x9f1   :  { %6368 = vmatpush2.bf16.msra.mxu0 %v9098_v48 }
 0x9f2   :  { %8388 = vmatprep.subr.bf16.mxu0 %v9107_v52 }
 0x9f3   :  { %6411 = vmatpush2.bf16.msra.mxu1 %v9104_v30 }
 0x9f4   :  { %6370 = vmatmul.mubr.bf16.vlgmr.msra.gmra.mxu0 %v10059_v25  ;;  %8410 = vmatprep.subr.bf16.mxu1 %v9123_v34  ;;  %v9126_v25 = vld [vmem:[#allocation23 + $0xb0] sm:$0xff]   ;;  %v6113_v56 = vpop.f32.mrf.mxu0 }
 0x9f5   :  { %8389 = vmatpush3.bf16.msra.mxu0 %v9108_v32 }
 0x9f6   :  { %6413 = vmatmul.mubr.bf16.vlgmr.msra.gmra.mxu1 %v10069_v40  ;;  %8390 = vmatprep.subr.bf16.mxu0 %v9109_v3  ;;  %v9127_v40 = vld [vmem:[#allocation23 + $0xe8] sm:$0xff]   ;;  %v6156_v0 = vpop.f32.mrf.mxu1  ;;  %v6115_v60 = vpop.f32.mrf.mxu0 }
 0x9f7   :  { %8411 = vmatpush3.bf16.msra.mxu1 %v9124_v31  ;;  %v6157_v17 = vadd.f32 %v6156_v0, %v6113_v56 }
 0x9f8   :  { %8412 = vmatprep.subr.bf16.mxu1 %v9125_v35  ;;  %v6158_v61 = vpop.f32.mrf.mxu1  ;;  %v6117_v62 = vpop.f32.mrf.mxu0 }
 0x9f9   :  { %8391 = vmatpush3.bf16.msra.mxu0 %v9110_v53  ;;  %v6159_v11 = vadd.f32 %v6158_v61, %v6115_v60  ;;  %v9137_v53 = vld [vmem:[#allocation23 + $0xc0] sm:$0xff]  }
 0x9fa   :  { %8392 = vmatprep.subr.bf16.mxu0 %v9111_v33  ;;  %v6160_v38 = vpop.f32.mrf.mxu1  ;;  %v6119_v23 = vpop.f32.mrf.mxu0 }
 0x9fb   :  { %8413 = vmatpush3.bf16.msra.mxu1 %v9126_v25  ;;  %v6161_v58 = vadd.f32 %v6160_v38, %v6117_v62 }
 0x9fc   :  { %8414 = vmatprep.subr.bf16.mxu1 %v9127_v40  ;;  %v6162_v1 = vpop.f32.mrf.mxu1 }
 0x9fd   :  { %8393 = vmatpush3.bf16.msra.mxu0 %v9112_v2  ;;  %v6163_v13 = vadd.f32 %v6162_v1, %v6119_v23  ;;  %v9138_v2 = vld [vmem:[#allocation23 + $0x80] sm:$0xff]  }
 0x9fe   :  { %8394 = vmatprep.subr.bf16.mxu0 %v9113_v42 }
 0x9ff   :  { %8415 = vmatpush3.bf16.msra.mxu1 %v9128_v39 }
 0xa00   :  { %8416 = vmatprep.subr.bf16.mxu1 %v9129_v24 }
 0xa01   :  { %8395 = vmatpush3.bf16.msra.mxu0 %v9114_v59 }
 0xa02   :  { %8396 = vmatprep.subr.bf16.mxu0 %v9115_v36 }
 0xa03   :  { %8417 = vmatpush3.bf16.msra.mxu1 %v9130_v47 }
 0xa04   :  { %8418 = vmatprep.subr.bf16.mxu1 %v9131_v43 }
 0xa05   :  { %8397 = vmatpush3.bf16.msra.mxu0 %v9116_v26 }
 0xa06   :  { %8398 = vmatprep.subr.bf16.mxu0 %v9117_v37 }
 0xa07   :  { %8419 = vmatpush3.bf16.msra.mxu1 %v9132_v54 }
 0xa08   :  { %8420 = vmatprep.subr.bf16.mxu1 %v9133_v5 }
 0xa09   :  { %8399 = vmatpush3.bf16.msra.mxu0 %v9118_v19 }
 0xa0a   :  { %8400 = vmatprep.subr.bf16.mxu0 %v9119_v12 }
 0xa0b   :  { %8421 = vmatpush3.bf16.msra.mxu1 %v9134_v45 }
 0xa0c   :  { %8422 = vmatprep.subr.bf16.mxu1 %v9135_v51 }
 0xa0d   :  { %8401 = vmatpush3.bf16.msra.mxu0 %v9120_v14 }
 0xa0e   :  { %8402 = vmatprep.subr.bf16.mxu0 %v9121_v15 }
 0xa0f   :  { %8423 = vmatpush3.bf16.msra.mxu1 %v9136_v8 }
 0xa10   :  { %8424 = vmatprep.subr.bf16.mxu1 %v9137_v53 }
 0xa11   :  { %8403 = vmatpush3.bf16.msra.mxu0 %v9122_v41 }
 0xa12   :  { %8484 = vmatprep.subr.bf16.mxu0 %v9613_v44 }
 0xa13   :  { %8425 = vmatpush3.bf16.msra.mxu1 %v9138_v2  ;;  %v7097_v2 = vstv %s10110_s25 }
 0xa14   :  { %8490 = vmatprep.subr.bf16.mxu1 %v9613_v44 }
 0xa34   :  { %v6199_v4 = vpop.f32.mrf.mxu0 }
 0xa35   :  { %v6200_v48 = vadd.f32 %v6199_v4, %v6157_v17 }
 0xa36   :  { %v6201_v6 = vpop.f32.mrf.mxu0  ;;  %v6242_v28 = vpop.f32.mrf.mxu1 }
 0xa37   :  { %v6202_v50 = vadd.f32 %v6201_v6, %v6159_v11  ;;  %v6243_v33 = vadd.f32 %v6242_v28, %v6200_v48 }
 0xa38   :  { %v6203_v16 = vpop.f32.mrf.mxu0  ;;  %v6244_v7 = vpop.f32.mrf.mxu1 }
 0xa39   :  { %v6204_v18 = vadd.f32 %v6203_v16, %v6161_v58  ;;  %v6245_v32 = vadd.f32 %v6244_v7, %v6202_v50 }
 0xa3a   :  { %v6205_v49 = vpop.f32.mrf.mxu0  ;;  %v6246_v46 = vpop.f32.mrf.mxu1 }
 0xa3b   :  { %v6206_v29 = vadd.f32 %v6205_v49, %v6163_v13  ;;  %v6247_v52 = vadd.f32 %v6246_v46, %v6204_v18 }
 0xa3c   :  { %v6248_v30 = vpop.f32.mrf.mxu1 }
 0xa3d   :  { %v6249_v3 = vadd.f32 %v6248_v30, %v6206_v29  ;;  %v6423_v59 = vpack.c.bf16 %v6247_v52, %v6243_v33  ;;  %v7003_v33 = vstv %s10108_s18 }
 0xa3f   :  { %v6424_v42 = vpack.c.bf16 %v6249_v3, %v6245_v32 }
 0xa41   :  { %6715 = vmatprep.mubr.bf16.mxu0 %v6424_v42 }
 0xa42   :  { %6716 = vmatmul.mubr.bf16.vlgmr.msra.gmra.mxu0 %v6423_v59 }
 0xa43   :  { %8485 = vmatpush3.bf16.msra.mxu0 %v6423_v59  ;;  %8486 = vmatprep.mubr.msk.bf16.mxu0 %vm9619_vm4, %v9613_v44  ;;  %v9255_v59 = vld [vmem:[#allocation10] sm:$0xff] }
 0xa44   :  { %8496 = vmatprep.subr.bf16.mxu0 %v9613_v44 }
 0xa74   :  { %v6285_v34 = vpop.f32.mrf.mxu0 }
 0xa76   :  { %v6328_v31 = vpop.f32.mrf.mxu1  ;;  %v6287_v35 = vpop.f32.mrf.mxu0 }
 0xa77   :  { %v6329_v41 = vadd.f32 %v6328_v31, %v6285_v34 }
 0xa78   :  { %v6330_v36 = vpop.f32.mrf.mxu1  ;;  %v6289_v25 = vpop.f32.mrf.mxu0 }
 0xa79   :  { %v6331_v43 = vadd.f32 %v6330_v36, %v6287_v35 }
 0xa7a   :  { %v6332_v26 = vpop.f32.mrf.mxu1  ;;  %v6291_v40 = vpop.f32.mrf.mxu0 }
 0xa7b   :  { %v6333_v12 = vadd.f32 %v6332_v26, %v6289_v25 }
 0xa7c   :  { %v6334_v37 = vpop.f32.mrf.mxu1 }
 0xa7d   :  { %v6335_v15 = vadd.f32 %v6334_v37, %v6291_v40  ;;  %v7004_v40 = vmul.f32 %v9255_v59, %v7003_v33  ;;  %v7098_v37 = vmul.f32 %v9255_v59, %v7097_v2 }
 0xab4   :  { %v6371_v39 = vpop.f32.mrf.mxu0 }
 0xab5   :  { %v6372_v38 = vadd.f32 %v6371_v39, %v6329_v41  ;;  %v9256_v41 = vld [vmem:[#allocation10 + $0x8] sm:$0xff] }
 0xab6   :  { %v6373_v19 = vpop.f32.mrf.mxu0  ;;  %v6414_v24 = vpop.f32.mrf.mxu1 }
 0xab7   :  { %v6374_v61 = vadd.f32 %v6373_v19, %v6331_v43  ;;  %v6415_v5 = vadd.f32 %v6414_v24, %v6372_v38 }
 0xab8   :  { %v6375_v47 = vpop.f32.mrf.mxu0  ;;  %v6416_v14 = vpop.f32.mrf.mxu1 }
 0xab9   :  { %v6376_v56 = vadd.f32 %v6375_v47, %v6333_v12  ;;  %v6417_v1 = vadd.f32 %v6416_v14, %v6374_v61 }
 0xaba   :  { %v6377_v0 = vpop.f32.mrf.mxu0  ;;  %v6418_v60 = vpop.f32.mrf.mxu1 }
 0xabb   :  { %v6378_v62 = vadd.f32 %v6377_v0, %v6335_v15  ;;  %v6419_v23 = vadd.f32 %v6418_v60, %v6376_v56 }
 0xabc   :  { %v6420_v54 = vpop.f32.mrf.mxu1 }
 0xabd   :  { %v6421_v4 = vadd.f32 %v6420_v54, %v6378_v62  ;;  %v10092_v28 = vpack.c.bf16 %v6419_v23, %v6415_v5 }
 0xabf   :  { %v10090_v6 = vpack.c.bf16 %v6421_v4, %v6417_v1 }
 0xac1   :  { %6756 = vmatprep.mubr.bf16.mxu1 %v10090_v6 }
 0xac2   :  { %6757 = vmatmul.mubr.bf16.vlgmr.msra.gmra.mxu1 %v10092_v28 }
 0xac3   :  { %8491 = vmatpush3.bf16.msra.mxu1 %v6424_v42  ;;  %8492 = vmatprep.mubr.msk.bf16.mxu1 %vm9619_vm4, %v9613_v44 }
 0xac4   :  { %8502 = vmatprep.subr.bf16.mxu1 %v9613_v44 }
 0xb02   :  { %v8404_v45 = vpop.f32.mrf.mxu0 }
 0xb04   :  { %v8405_v58 = vpop.f32.mrf.mxu0 }
 0xb05   :  { %v8406_v13 = vadd.f32 %v8405_v58, %v8404_v45 }
 0xb06   :  { %v8407_v16 = vpop.f32.mrf.mxu0 }
 0xb08   :  { %v8408_v17 = vpop.f32.mrf.mxu0 }
 0xb09   :  { %v8409_v8 = vadd.f32 %v8408_v17, %v8407_v16  ;;  %v7005_v16 = vmul.f32 %v9256_v41, %v7003_v33 }
 0xb82   :  { %v8426_v7 = vpop.f32.mrf.mxu1 }
 0xb84   :  { %v8427_v11 = vpop.f32.mrf.mxu1 }
 0xb85   :  { %v8428_v51 = vadd.f32 %v8427_v11, %v8426_v7 }
 0xb86   :  { %v8429_v18 = vpop.f32.mrf.mxu1 }
 0xb87   :  { %v6759_v49 = vadd.f32 %v8428_v51, %v8406_v13 }
 0xb88   :  { %v8430_v46 = vpop.f32.mrf.mxu1 }
 0xb89   :  { %v8431_v50 = vadd.f32 %v8430_v46, %v8429_v18  ;;  %6803 = vperm.xlu1 %8600, %v6759_v49   ;;  %v7099_v46 = vmul.f32 %v9256_v41, %v7097_v2 }
 0xb8b   :  { %v6762_v29 = vadd.f32 %v8431_v50, %v8409_v8 }
 0xb8d   :  { %6808 = vperm.xlu0 %8601, %v6762_v29   ;;  %8602 = vset.pattern.permute.xlu1 %v9614_v57 }
 0xb8e   :  { %6896 = vperm.xlu1 %8602, %v6759_v49  }
 0xb91   :  { %8608 = vset.pattern.permute.xlu0 %v9616_v9 }
 0xb92   :  { %8603 = vset.pattern.permute.xlu1 %v9617_v10 }
 0xb93   :  { %6990 = vperm.xlu1 %8603, %v6759_v49  }
 0xb97   :  { %8604 = vset.pattern.permute.xlu1 %v9616_v9 }
 0xb98   :  { %7084 = vperm.xlu1 %8604, %v6759_v49  }
 0xb9c   :  { %8605 = vset.pattern.permute.xlu1 %v9614_v57 }
 0xb9d   :  { %6900 = vperm.xlu1 %8605, %v6762_v29  }
 0xba1   :  { %8606 = vset.pattern.permute.xlu1 %v9617_v10  ;;  %v6909_v10 = vstv %s10106_s11 }
 0xba2   :  { %6994 = vperm.xlu1 %8606, %v6762_v29   ;;  %v6910_v31 = vmul.f32 %v9255_v59, %v6909_v10  ;;  %v6911_v62 = vmul.f32 %v9256_v41, %v6909_v10 }
 0xba6   :  { %8607 = vset.pattern.permute.xlu1 %v9616_v9  ;;  %v6817_v9 = vstv %s8195_s10 }
 0xba7   :  { %7088 = vperm.xlu1 %8607, %v6762_v29   ;;  %v6818_v34 = vmul.f32 %v9255_v59, %v6817_v9  ;;  %v6819_v56 = vmul.f32 %v9256_v41, %v6817_v9 }
 0xbd0   :  { %6765 = vxpose.xlu1.b32.start [1/2] (short) (narrow) %v6759_v49, 8 }
 0xbd4   :  { %6766 = vxpose.xlu1.b32.end [2/2] (short) (narrow) %v6762_v29, 8 }
 0xc04   :  { %v6804_v48 = vpop.permute.xlu1 %6803 }
 0xc08   :  { %v6809_v24 = vpop.permute.xlu0 %6808 }
 0xc09   :  { %v6897_v52 = vpop.permute.xlu1 %6896 }
 0xc0e   :  { %v6991_v30 = vpop.permute.xlu1 %6990 }
 0xc13   :  { %v7085_v32 = vpop.permute.xlu1 %7084 }
 0xc18   :  { %v6901_v3 = vpop.permute.xlu1 %6900 }
 0xc1d   :  { %v6995_v53 = vpop.permute.xlu1 %6994 }
 0xc22   :  { %v7089_v57 = vpop.permute.xlu1 %7088 }
 0xc4c   :  { %v6781_v42 = vpop.trf.xlu1 }
 0xc4d   :  { %v6814_v35 = vrot.slane %v6781_v42, %v9832_v20  ;;  %v6906_v36 = vrot.slane %v6781_v42, %v9834_v21  ;;  %v7000_v25 = vrot.slane %v6781_v42, %v9836_v22  ;;  %v7094_v26 = vrot.slane %v6781_v42, %v9838_v27 }
 0xc4f   :  { %v6815_v39 = vadd.f32 %v6814_v35, %v6804_v48  ;;  %v6907_v19 = vadd.f32 %v6906_v36, %v6897_v52  ;;  %v7001_v12 = vadd.f32 %v7000_v25, %v6991_v30  ;;  %v7095_v47 = vadd.f32 %v7094_v26, %v7085_v32 }
 0xc50   :  { %v6816_v14 = vadd.f32 %v6814_v35, %v6809_v24  ;;  %v6908_v61 = vadd.f32 %v6906_v36, %v6901_v3  ;;  %v7002_v5 = vadd.f32 %v7000_v25, %v6995_v53  ;;  %v7096_v18 = vadd.f32 %v7094_v26, %v7089_v57 }
 0xc51   :  { %v6820_v43 = vadd.f32 %v6818_v34, %v6815_v39  ;;  %v6912_v15 = vadd.f32 %v6910_v31, %v6907_v19  ;;  %v7006_v0 = vadd.f32 %v7004_v40, %v7001_v12  ;;  %v7100_v20 = vadd.f32 %v7098_v37, %v7095_v47 }
 0xc52   :  { %v6821_v54 = vadd.f32 %v6819_v56, %v6816_v14  ;;  %v6913_v58 = vadd.f32 %v6911_v62, %v6908_v61  ;;  %v7007_v49 = vadd.f32 %v7005_v16, %v7002_v5  ;;  %v7101_v52 = vadd.f32 %v7099_v46, %v7096_v18 }
 0xc53   :  { %v6822_v60 = vmul.f32 0.2, %v6820_v43  ;;  %v6914_v21 = vmul.f32 0.2, %v6912_v15  ;;  %v7008_v22 = vmul.f32 0.2, %v7006_v0 }
 0xc54   :  { %v7102_v23 = vmul.f32 0.2, %v7100_v20  ;;  %v6823_v51 = vmul.f32 0.2, %v6821_v54  ;;  %v6915_v48 = vmul.f32 0.2, %v6913_v58 }
 0xc55   :  { %v6824_v27 = vmax.f32 %v6820_v43, %v6822_v60  ;;  %v6916_v38 = vmax.f32 %v6912_v15, %v6914_v21  ;;  %v7010_v1 = vmax.f32 %v7006_v0, %v7008_v22  ;;  %v7009_v53 = vmul.f32 0.2, %v7007_v49 }
 0xc56   :  { %v7104_v13 = vmax.f32 %v7100_v20, %v7102_v23  ;;  %v6825_v29 = vmax.f32 %v6821_v54, %v6823_v51  ;;  %v6917_v3 = vmax.f32 %v6913_v58, %v6915_v48  ;;  %v7103_v33 = vmul.f32 0.2, %v7101_v52  ;;  %v9142_v48 = vld [vmem:[#allocation25 + $0x20] sm:$0xff]  }
 0xc57   :  { %v6826_v4 = vadd.f32 %v6824_v27, %v9848_v63  ;;  %v7012_v45 = vadd.f32 %v7010_v1, %v9848_v63  ;;  %v6918_v11 = vadd.f32 %v6916_v38, %v9848_v63  ;;  %v7011_v10 = vmax.f32 %v7007_v49, %v7009_v53 }
 0xc58   :  { %v7106_v50 = vadd.f32 %v7104_v13, %v9848_v63  ;;  %v6827_v32 = vadd.f32 %v6825_v29, %v9846_v55  ;;  %v6919_v57 = vadd.f32 %v6917_v3, %v9846_v55  ;;  %v7105_v42 = vmax.f32 %v7101_v52, %v7103_v33  ;;  %v9141_v29 = vld [vmem:[#allocation25 + $0x28] sm:$0xff]   ;;  %v9143_v52 = vld [vmem:[#allocation25 + $0x18] sm:$0xff]  }
 0xc59   :  { %v6828_v7 = vsel %vm821_vm3, %v6826_v4, -inf  ;;  %v7014_v17 = vsel %vm821_vm3, %v7012_v45, -inf  ;;  %v6920_v8 = vsel %vm821_vm3, %v6918_v11, -inf  ;;  %v7013_v2 = vadd.f32 %v7011_v10, %v9846_v55 }
 0xc5a   :  { %6829 = vmax.xlane.f32.xlu0 %v6828_v7  ;;  %7015 = vmax.xlane.f32.xlu1 %v7014_v17  ;;  %v7108_v30 = vsel %vm821_vm3, %v7106_v50, -inf  ;;  %v6831_v9 = vsel %vm821_vm3, %v6827_v32, -inf  ;;  %v6923_v63 = vsel %vm821_vm3, %v6919_v57, -inf  ;;  %v7107_v34 = vadd.f32 %v7105_v42, %v9846_v55 }
 0xc5b   :  { %v7017_v59 = vsel %vm821_vm3, %v7013_v2, -inf }
 0xc5c   :  { %v7111_v31 = vsel %vm821_vm3, %v7107_v34, -inf }
 0xc5e   :  { %6921 = vmax.xlane.f32.xlu0 %v6920_v8  ;;  %v9139_v8 = vld [vmem:[#allocation25 + $0x38] sm:$0xff]  }
 0xc62   :  { %7109 = vmax.xlane.f32.xlu0 %v7108_v30  ;;  %v9144_v30 = vld [vmem:[#allocation25 + $0x10] sm:$0xff]  }
 0xc66   :  { %6832 = vmax.xlane.f32.xlu0 %v6831_v9 }
 0xc6a   :  { %6924 = vmax.xlane.f32.xlu0 %v6923_v63 }
 0xc6e   :  { %7018 = vmax.xlane.f32.xlu0 %v7017_v59 }
 0xc72   :  { %7112 = vmax.xlane.f32.xlu0 %v7111_v31 }
 0xce3   :  { %v6830_v35 = vpop.xlane.xlu0 %6829  ;;  %v7016_v36 = vpop.xlane.xlu1 %7015 }
 0xce4   :  { %v6834_v25 = vsub.f32 %v6826_v4, %v6830_v35  ;;  %v7020_v26 = vsub.f32 %v7012_v45, %v7016_v36 }
 0xce6   :  { %v6836_v40 = vmul.f32 1.442695, %v6834_v25  ;;  %v7022_v19 = vmul.f32 1.442695, %v7020_v26 }
 0xce7   :  { %v6922_v37 = vpop.xlane.xlu0 %6921 }
 0xce8   :  { %9219 = vpow2.f32 %v6836_v40  ;;  %v6926_v39 = vsub.f32 %v6918_v11, %v6922_v37 }
 0xcea   :  { %v6928_v24 = vmul.f32 1.442695, %v6926_v39 }
 0xceb   :  { %v7110_v12 = vpop.xlane.xlu0 %7109 }
 0xcec   :  { %9221 = vpow2.f32 %v6928_v24  ;;  %v7114_v56 = vsub.f32 %v7106_v50, %v7110_v12  ;;  %v9140_v50 = vld [vmem:[#allocation25 + $0x30] sm:$0xff]  }
 0xced   :  { %9223 = vpow2.f32 %v7022_v19 }
 0xcee   :  { %v7116_v22 = vmul.f32 1.442695, %v7114_v56 }
 0xcef   :  { %v6833_v47 = vpop.xlane.xlu0 %6832 }
 0xcf0   :  { %v6835_v14 = vsub.f32 %v6827_v32, %v6833_v47  ;;  %v9145_v32 = vld [vmem:[#allocation25 + $0x8] sm:$0xff]  }
 0xcf2   :  { %v6838_v55 = vmul.f32 1.442695, %v6835_v14 }
 0xcf3   :  { %v6925_v43 = vpop.xlane.xlu0 %6924 }
 0xcf4   :  { %9225 = vpow2.f32 %v6838_v55  ;;  %v6927_v15 = vsub.f32 %v6919_v57, %v6925_v43 }
 0xcf5   :  { %v9220_v41 = vpop.eup %9219 }
 0xcf6   :  { %v6930_v0 = vmul.f32 1.442695, %v6927_v15  ;;  %v6840_v20 = vsel %vm821_vm3, %v9220_v41, 0.0 }
 0xcf7   :  { %6841 = vadd.xlane.f32.xlu0 %v6840_v20  ;;  %v7019_v60 = vpop.xlane.xlu0 %7018 }
 0xcf8   :  { %9227 = vpow2.f32 %v6930_v0  ;;  %v7021_v21 = vsub.f32 %v7013_v2, %v7019_v60 }
 0xcf9   :  { %v9222_v61 = vpop.eup %9221 }
 0xcfa   :  { %v7024_v62 = vmul.f32 1.442695, %v7021_v21  ;;  %v6932_v27 = vsel %vm821_vm3, %v9222_v61, 0.0  ;;  %v9224_v38 = vpop.eup %9223 }
 0xcfb   :  { %6933 = vadd.xlane.f32.xlu0 %v6932_v27  ;;  %v7113_v23 = vpop.xlane.xlu0 %7112  ;;  %v7026_v4 = vsel %vm821_vm3, %v9224_v38, 0.0 }
 0xcfc   :  { %9229 = vpow2.f32 %v7024_v62  ;;  %v7115_v54 = vsub.f32 %v7107_v34, %v7113_v23 }
 0xcfd   :  { %9231 = vpow2.f32 %v7116_v22 }
 0xcfe   :  { %v7118_v1 = vmul.f32 1.442695, %v7115_v54 }
 0xcff   :  { %7027 = vadd.xlane.f32.xlu0 %v7026_v4  ;;  %v8203_v4 = vld [vmem:[%s10206_s14] ss:$0 sm:$0xff] }
 0xd00   :  { %9233 = vpow2.f32 %v7118_v1 }
 0xd01   :  { %v9226_v5 = vpop.eup %9225 }
 0xd02   :  { %v6843_v45 = vsel %vm821_vm3, %v9226_v5, 0.0  ;;  %v6848_v58 = vpack.c.bf16 %v9226_v5, %v9220_v41 }
 0xd03   :  { %6844 = vadd.xlane.f32.xlu0 %v6843_v45 }
 0xd04   :  { %8487 = vmatmul.mubr.msk.bf16.vlgmr.msra.gmra.mxu0 %vm821_vm3, %v6848_v58 }
 0xd05   :  { %v9228_v16 = vpop.eup %9227  ;;  %8497 = vmatpush3.bf16.msra.mxu0 %v10092_v28  ;;  %8498 = vmatprep.mubr.msk.bf16.mxu0 %vm9619_vm4, %v9613_v44 }
 0xd06   :  { %v6935_v7 = vsel %vm821_vm3, %v9228_v16, 0.0  ;;  %v6940_v11 = vpack.c.bf16 %v9228_v16, %v9222_v61  ;;  %8508 = vmatprep.subr.bf16.mxu0 %v9613_v44 }
 0xd07   :  { %6936 = vadd.xlane.f32.xlu0 %v6935_v7 }
 0xd08   :  { %8493 = vmatmul.mubr.msk.bf16.vlgmr.msra.gmra.mxu1 %vm821_vm3, %v6940_v11 }
 0xd09   :  { %v9230_v13 = vpop.eup %9229  ;;  %8503 = vmatpush3.bf16.msra.mxu1 %v10090_v6  ;;  %8504 = vmatprep.mubr.msk.bf16.mxu1 %vm9619_vm4, %v9613_v44 }
 0xd0a   :  { %v7029_v51 = vsel %vm821_vm3, %v9230_v13, 0.0  ;;  %v7034_v28 = vpack.c.bf16 %v9230_v13, %v9224_v38  ;;  %8514 = vmatprep.subr.bf16.mxu1 %v9613_v44  ;;  %v9232_v17 = vpop.eup %9231 }
 0xd0b   :  { %7030 = vadd.xlane.f32.xlu0 %v7029_v51  ;;  %v7120_v49 = vsel %vm821_vm3, %v9232_v17, 0.0  ;;  %v8204_v51 = vld [vmem:[%s10207_s15] ss:$0 sm:$0xff] }
 0xd0c   :  { %8499 = vmatmul.mubr.msk.bf16.vlgmr.msra.gmra.mxu0 %vm821_vm3, %v7034_v28 }
 0xd0d   :  { %v9234_v18 = vpop.eup %9233  ;;  %8510 = vmatprep.mubr.msk.bf16.mxu0 %vm9619_vm4, %v9613_v44 }
 0xd0e   :  { %v7123_v6 = vsel %vm821_vm3, %v9234_v18, 0.0  ;;  %v7128_v46 = vpack.c.bf16 %v9234_v18, %v9232_v17 }
 0xd0f   :  { %7121 = vadd.xlane.f32.xlu0 %v7120_v49  ;;  %7124 = vadd.xlane.f32.xlu1 %v7123_v6 }
 0xd10   :  { %8505 = vmatmul.mubr.msk.bf16.vlgmr.msra.gmra.mxu1 %vm821_vm3, %v7128_v46 }
 0xd11   :  { %8530 = vmatprep.mubr.msk.bf16.mxu1 %vm9619_vm4, %v9613_v44  ;;  %8515 = vmatpush3.bf16.msra.mxu1 %v9139_v8  ;;  %v7199_v8 = vld [vmem:[#allocation11] sm:$0x3] }
 0xd12   :  { %8516 = vmatprep.subr.bf16.mxu1 %v9613_v44 }
 0xd15   :  { %8517 = vmatpush3.bf16.msra.mxu1 %v9140_v50 }
 0xd16   :  { %8518 = vmatprep.subr.bf16.mxu1 %v9613_v44 }
 0xd19   :  { %8519 = vmatpush3.bf16.msra.mxu1 %v9141_v29  ;;  %v7200_v29 = vpack.c.bf16 %v7199_v8, %v7199_v8 }
 0xd1a   :  { %8520 = vmatprep.subr.bf16.mxu1 %v9613_v44 }
 0xd1d   :  { %8521 = vmatpush3.bf16.msra.mxu1 %v9142_v48  ;;  %v9146_v48 = vld [vmem:[#allocation25] sm:$0xff]  }
 0xd1e   :  { %8522 = vmatprep.subr.bf16.mxu1 %v9613_v44 }
 0xd21   :  { %8523 = vmatpush3.bf16.msra.mxu1 %v9143_v52  ;;  %v9147_v52 = vld [vmem:[#allocation26 + $0x38] sm:$0xff]  }
 0xd22   :  { %8524 = vmatprep.subr.bf16.mxu1 %v9613_v44 }
 0xd25   :  { %8525 = vmatpush3.bf16.msra.mxu1 %v9144_v30  ;;  %v9148_v30 = vld [vmem:[#allocation26 + $0x30] sm:$0xff]  }
 0xd26   :  { %8526 = vmatprep.subr.bf16.mxu1 %v9613_v44 }
 0xd29   :  { %8527 = vmatpush3.bf16.msra.mxu1 %v9145_v32  ;;  %v9149_v32 = vld [vmem:[#allocation26 + $0x28] sm:$0xff]  }
 0xd2a   :  { %8528 = vmatprep.subr.bf16.mxu1 %v9613_v44 }
 0xd2d   :  { %8529 = vmatpush3.bf16.msra.mxu1 %v9146_v48 }
 0xd80   :  { %v6842_v3 = vpop.xlane.xlu0 %6841 }
 0xd84   :  { %v6934_v53 = vpop.xlane.xlu0 %6933 }
 0xd85   :  { %9235 = vrcp.f32 %v6934_v53  ;;  %v9151_v53 = vld [vmem:[#allocation26 + $0x18] sm:$0xff]  }
 0xd86   :  { %9237 = vrcp.f32 %v6842_v3  ;;  %v9150_v3 = vld [vmem:[#allocation26 + $0x20] sm:$0xff]  }
 0xd88   :  { %v7028_v9 = vpop.xlane.xlu0 %7027 }
 0xd89   :  { %9239 = vrcp.f32 %v7028_v9  ;;  %v9152_v9 = vld [vmem:[#allocation26 + $0x10] sm:$0xff]  }
 0xd8c   :  { %v6845_v57 = vpop.xlane.xlu0 %6844 }
 0xd8d   :  { %9241 = vrcp.f32 %v6845_v57 }
 0xd90   :  { %v6937_v10 = vpop.xlane.xlu0 %6936 }
 0xd91   :  { %9243 = vrcp.f32 %v6937_v10 }
 0xd92   :  { %v9236_v35 = vpop.eup %9235 }
 0xd93   :  { %v9238_v26 = vpop.eup %9237 }
 0xd94   :  { %v7031_v33 = vpop.xlane.xlu0 %7030 }
 0xd95   :  { %9245 = vrcp.f32 %v7031_v33 }
 0xd96   :  { %v9240_v37 = vpop.eup %9239 }
 0xd98   :  { %v7122_v63 = vpop.xlane.xlu0 %7121  ;;  %v7125_v2 = vpop.xlane.xlu1 %7124 }
 0xd99   :  { %9247 = vrcp.f32 %v7122_v63 }
 0xd9a   :  { %9249 = vrcp.f32 %v7125_v2  ;;  %v9242_v24 = vpop.eup %9241 }
 0xd9e   :  { %v9244_v14 = vpop.eup %9243 }
 0xda2   :  { %v9246_v15 = vpop.eup %9245 }
 0xda6   :  { %v9248_v0 = vpop.eup %9247 }
 0xda7   :  { %v9250_v1 = vpop.eup %9249 }
 0xdc4   :  { %v6886_v42 = vpop.f32.mrf.mxu0 }
 0xdc5   :  { %v6893_v12 = vmul.f32 %v9238_v26, %v6886_v42  ;;  %v9153_v42 = vld [vmem:[#allocation26 + $0x8] sm:$0xff]  }
 0xdc6   :  { %v8488_v59 = vpop.f32.mrf.mxu0 }
 0xdc7   :  { %v9154_v59 = vld [vmem:[#allocation26] sm:$0xff]  }
 0xdc8   :  { %v6889_v34 = vpop.f32.mrf.mxu0  ;;  %v6978_v31 = vpop.f32.mrf.mxu1 }
 0xdc9   :  { %v6985_v40 = vmul.f32 %v9236_v35, %v6978_v31  ;;  %v6894_v21 = vmul.f32 %v9242_v24, %v6889_v34  ;;  %v8206_v34 = vld [vmem:[%s10209_s17] ss:$0 sm:$0xff]  ;;  %s9549_s17 = scalar_lea.vmem %s7478_s4, 32 }
 0xdca   :  { %v8489_v36 = vpop.f32.mrf.mxu0  ;;  %v8494_v25 = vpop.f32.mrf.mxu1  ;;  %p9550_p5 = scmp.ne.s32.totalorder %s7478_s4, %s9549_s17  ;;  %p9555_p7 = scmp.lt.s32.totalorder %s9549_s17, %s9549_s17 }
 0xdcb   :  { %v6987_v41 = vadd.f32 %v6985_v40, %v6893_v12 }
 0xdcc   :  { %v6981_v39 = vpop.f32.mrf.mxu1  ;;  %v7072_v19 = vpop.f32.mrf.mxu0  ;;  %p9556_p8 = por %p9555_p7, %p9554_p6 }
 0xdcd   :  { %v7079_v47 = vmul.f32 %v9240_v37, %v7072_v19  ;;  %v6986_v56 = vmul.f32 %v9244_v14, %v6981_v39  ;;  %v8215_v39 = vld [vmem:[%s10211_s19] ss:$0 sm:$0xff] }
 0xdce   :  { %v8495_v55 = vpop.f32.mrf.mxu1  ;;  %v8500_v43 = vpop.f32.mrf.mxu0  ;;  %p9557_p9 = pnand %p9556_p8, %p9550_p5 }
 0xdcf   :  { %v7081_v61 = vadd.f32 %v7079_v47, %v6987_v41  ;;  %v6988_v23 = vadd.f32 %v6986_v56, %v6894_v21 }
 0xdd0   :  { %v7075_v20 = vpop.f32.mrf.mxu0  ;;  %v7166_v60 = vpop.f32.mrf.mxu1 }
 0xdd1   :  { %v7080_v22 = vmul.f32 %v9246_v15, %v7075_v20  ;;  %v7173_v62 = vmul.f32 %v9248_v0, %v7166_v60 }
 0xdd2   :  { %v8501_v27 = vpop.f32.mrf.mxu0  ;;  %v8506_v38 = vpop.f32.mrf.mxu1 }
 0xdd3   :  { %v7175_v54 = vadd.f32 %v7173_v62, %v7081_v61  ;;  %v7082_v45 = vadd.f32 %v7080_v22, %v6988_v23 }
 0xdd4   :  { %v7169_v5 = vpop.f32.mrf.mxu1 }
 0xdd5   :  { %v7177_v58 = vmul.f32 0.25, %v7175_v54  ;;  %v7174_v16 = vmul.f32 %v9250_v1, %v7169_v5 }
 0xdd6   :  { %v8507_v7 = vpop.f32.mrf.mxu1 }
 0xdd7   :  { %v7186_v11 = vmul.f32 %v8203_v4, %v7177_v58  ;;  %v7176_v13 = vadd.f32 %v7174_v16, %v7082_v45 }
 0xdd9   :  { %v7178_v28 = vmul.f32 0.25, %v7176_v13  ;;  %v7195_v17 = vadd.f32 %v8204_v51, %v7186_v11 }
 0xddb   :  { %v7187_v18 = vmul.f32 %v8203_v4, %v7178_v28  ;;  %v7197_v6 = vmax.f32 %v7195_v17, 0.0 }
 0xddd   :  { %v7196_v49 = vadd.f32 %v8204_v51, %v7187_v18 }
 0xddf   :  { %v7198_v46 = vmax.f32 %v7196_v49, 0.0 }
 0xde1   :  { %v7201_v50 = vpack.c.bf16 %v7198_v46, %v7197_v6 }
 0xde3   :  { %8509 = vmatpush3.bf16.msra.mxu0 %v7201_v50 }
 0xde4   :  { %8534 = vmatprep.subr.bf16.mxu0 %v9613_v44 }
 0xde6   :  { %8511 = vmatmul.mubr.msk.bf16.vlgmr.msra.gmra.mxu0 %vm821_vm3, %v7200_v29 }
 0xde7   :  { %8550 = vmatprep.mubr.msk.bf16.mxu0 %vm9619_vm4, %v9613_v44  ;;  %8535 = vmatpush3.bf16.msra.mxu0 %v9147_v52 }
 0xde8   :  { %8536 = vmatprep.subr.bf16.mxu0 %v9613_v44 }
 0xdeb   :  { %8537 = vmatpush3.bf16.msra.mxu0 %v9148_v30 }
 0xdec   :  { %8538 = vmatprep.subr.bf16.mxu0 %v9613_v44 }
 0xdef   :  { %8539 = vmatpush3.bf16.msra.mxu0 %v9149_v32 }
 0xdf0   :  { %8540 = vmatprep.subr.bf16.mxu0 %v9613_v44 }
 0xdf3   :  { %8541 = vmatpush3.bf16.msra.mxu0 %v9150_v3 }
 0xdf4   :  { %8542 = vmatprep.subr.bf16.mxu0 %v9613_v44 }
 0xdf7   :  { %8543 = vmatpush3.bf16.msra.mxu0 %v9151_v53 }
 0xdf8   :  { %8544 = vmatprep.subr.bf16.mxu0 %v9613_v44 }
 0xdfb   :  { %8545 = vmatpush3.bf16.msra.mxu0 %v9152_v9 }
 0xdfc   :  { %8546 = vmatprep.subr.bf16.mxu0 %v9613_v44 }
 0xdff   :  { %8547 = vmatpush3.bf16.msra.mxu0 %v9153_v42 }
 0xe00   :  { %8548 = vmatprep.subr.bf16.mxu0 %v9613_v44 }
 0xe03   :  { %8549 = vmatpush3.bf16.msra.mxu0 %v9154_v59 }
 0xea6   :  { %v7239_v57 = vpop.f32.mrf.mxu0 }
 0xea7   :  { %v7245_v10 = vpack.c.bf16 %v7239_v57, %v7239_v57 }
 0xea8   :  { %v8512_v33 = vpop.f32.mrf.mxu0 }
 0xea9   :  { %8531 = vmatmul.mubr.bf16.vlgmr.msra.gmra.mxu1 %v7245_v10 }
 0xeaa   :  { %v7242_v63 = vpop.f32.mrf.mxu0 }
 0xeac   :  { %v8513_v2 = vpop.f32.mrf.mxu0 }
 0xf69   :  { %v7351_v31 = vpop.f32.mrf.mxu1 }
 0xf6a   :  { %v7352_v35 = vadd.f32 %v8206_v34, %v7351_v31 }
 0xf6b   :  { %v8532_v36 = vpop.f32.mrf.mxu1 }
 0xf6c   :  { %v7357_v25 = vmax.f32 %v7352_v35, 0.0 }
 0xf6d   :  { %v7354_v26 = vpop.f32.mrf.mxu1 }
 0xf6e   :  { %v7358_v40 = vpack.c.bf16 %v7357_v25, %v7357_v25 }
 0xf6f   :  { %v8533_v37 = vpop.f32.mrf.mxu1 }
 0xf70   :  { %8551 = vmatmul.mubr.bf16.vlgmr.msra.gmra.mxu0 %v7358_v40 }
0x1030   :  { %v7464_v44 = vpop.f32.mrf.mxu0 }
0x1031   :  { %v7465_v19 = vadd.f32 %v8215_v39, %v7464_v44 }
0x1032   :  { %v8552_v24 = vpop.f32.mrf.mxu0 }
0x1033   :  { %7470 = vst [vmem:[#allocation29] sm:$0x3] %v7465_v19 }
0x1034   :  { %v7467_v12 = vpop.f32.mrf.mxu0 }
0x1035   :  { %9560 = shalt.err (!%p9557_p9)
}
0x1036   :  { %7480 = dma.vmem_to_hbm [thread:$0]  %s7478_s4, 32, %s10213_s21, [#allocation6]   ;;  %v8553_v47 = vpop.f32.mrf.mxu0 }
0x1037   :  { %9587 = dma.done.wait [#allocation6], 32  }
0x1038   :  { %9588 = vsyncadd [#allocation6], 4294967264 }
0x1039   :  { %7484 = vsyncpa [#allocation5], 1 }
0x103a   :  { %7485 = vsyncpa [#allocation9], 1 }
0x103b   :  { %7486 = vsyncpa [#allocation12], 1 }
0x103c   :  { %7487 = vsyncpa [#allocation15], 1 }
0x103d   :  { %7488 = vsyncpa [#allocation18], 1 }
0x103e   :  { %7489 = vsyncpa [#allocation21], 1 }
0x103f   :  { %7490 = vsyncpa [#allocation24], 1 }
0x1040   :  { %7491 = vsyncpa [#allocation27], 1 }
0x1041   :  { %7492 = vsyncpa [#allocation6], 1 }
0x1042   :  { %7493 = vsyncpa [#allocation7], 1 }

</bundles_post_ra>
